<compile_context>
chip_gen: v7x
topology: tpu7x:2x2x1
jax: 0.10.0
libtpu: 0.0.40
codegen_flags: <defaults>
</compile_context>

<pallas_src>
import numpy as np
import jax
import jax.numpy as jnp
from jax import lax
from jax.experimental import pallas as pl
from jax.experimental.pallas import tpu as pltpu


def _round_up(x, m):
    return (x + m - 1) // m * m


# ----------------------------------------------------------------------------
# Host-precomputed depthwise boundary masks (8 non-centre taps x 2 dilations).
# Order matches the kernel's (d, ky, kx) loop with the centre tap skipped.
# ----------------------------------------------------------------------------
def build_masks(H, W, dilations=(1, 2)):
    HW = H * W
    col = np.arange(HW)
    hh = col // W
    ww = col % W
    ms = []
    for d in dilations:
        for ky in range(3):
            for kx in range(3):
                if ky == 1 and kx == 1:
                    continue
                dy = (ky - 1) * d
                dx = (kx - 1) * d
                m = ((hh + dy >= 0) & (hh + dy < H) &
                     (ww + dx >= 0) & (ww + dx < W))
                ms.append(m.astype(np.float32))
    return np.stack(ms).reshape(len(ms), 1, HW)


# ----------------------------------------------------------------------------
# Pallas kernel
# ----------------------------------------------------------------------------
def make_mirb2_kernel(C, H, W, tb, Cp, Chp):
    HW = H * W

    def kernel(x_ref, masks_ref, gw1_ref, gw23_ref, gb_ref, dw_ref, db_ref,
               pw_ref, pb_ref, lw_ref, lb_ref, o_ref):

        def lrelu(v):
            return jnp.maximum(v, 0.2 * v)            # LeakyReLU(0.2)

        def depthwise(y, blk, d):
            """3x3 depthwise conv (padding=d, dilation=d) on a (Cp, HW) tile."""
            taps = dw_ref[blk]                         # (9, Cp, 1)
            moff = 0 if d == 1 else 8                  # mask bank for dilation
            acc = y * taps[4] + db_ref[blk]            # centre tap: unmasked
            ti = 0
            for ky in range(3):
                for kx in range(3):
                    if ky == 1 and kx == 1:
                        continue
                    s = ((ky - 1) * d) * W + (kx - 1) * d
                    rolled = pltpu.roll(y, shift=(-s) % HW, axis=1)
                    acc = acc + (rolled * masks_ref[moff + ti]) * taps[ky * 3 + kx]
                    ti += 1
            return acc

        def conv_level(inp, gw, lvl, blk_a, blk_b):
            # one stacked grouped-1x1 dot -> both branch pre-activations
            y = jnp.dot(gw, inp, preferred_element_type=jnp.float32) + gb_ref[lvl]
            z1 = depthwise(y[:Cp], blk_a, 1)           # conv3_x branch (d=1)
            z2 = depthwise(y[Cp:], blk_b, 2)           # convd_x branch (d=2)
            # pointwise 1x1 with fused concat placement (two dots summed)
            cat = (jnp.dot(pw_ref[blk_a], z1, preferred_element_type=jnp.float32)
                   + jnp.dot(pw_ref[blk_b], z2, preferred_element_type=jnp.float32)
                   + pb_ref[lvl])
            return lrelu(cat)                          # (Ccat, HW); pad rows stay 0

        gw1 = gw1_ref[...]
        gw2 = gw23_ref[0]
        gw3 = gw23_ref[1]
        lw = lw_ref[...]
        lb = lb_ref[...]

        for b in range(tb):                            # static unrolled, tb small
            x = x_ref[b]                               # (C, HW) channels-major
            if Cp > C:                                 # zero-extend to Cp sublanes
                xp = jnp.concatenate(
                    [x, jnp.zeros((Cp - C, HW), x.dtype)], axis=0)
            else:
                xp = x
            cat1 = conv_level(xp,   gw1, 0, 0, 1)      # conv3_1 / convd_1
            cat2 = conv_level(cat1, gw2, 1, 2, 3)      # conv3_2 / convd_2
            cat3 = conv_level(cat2, gw3, 2, 4, 5)      # conv3_3 / convd_3
            out = jnp.dot(lw, cat3, preferred_element_type=jnp.float32) + lb
            o_ref[b] = out[:C] + x                     # residual, drop pad rows

    return kernel


def _pick_images_per_block(N, HW, target_lanes=2048):
    tb = max(1, min(N, max(1, target_lanes // max(HW, 1))))
    # keep >=2 grid steps when possible (v7x megacore + DMA double buffering)
    while tb > 1 and (N % tb != 0 or (N // tb) < 2):
        tb -= 1
    if N % tb != 0:
        tb = 1
    return tb


def mirb2_pallas(x_nchw, kp):
    N, C, H, W = x_nchw.shape
    HW = H * W
    Cp = _round_up(C, 8)
    Chp = _round_up(C // 2, 8)

    x3 = x_nchw.reshape(N, C, HW)                      # metadata-only, no copy
    tb = _pick_images_per_block(N, HW)

    kernel = make_mirb2_kernel(C, H, W, tb, Cp, Chp)

    params = [kp['masks'], kp['gw1'], kp['gw23'], kp['gb'], kp['dw'],
              kp['db'], kp['pw'], kp['pb'], kp['lw'], kp['lb']]
    in_specs = [pl.BlockSpec((tb, C, HW), lambda b: (b, 0, 0))]
    for p in params:
        nd = p.ndim
        in_specs.append(pl.BlockSpec(p.shape, lambda b, nd=nd: (0,) * nd))

    out = pl.pallas_call(
        kernel,
        out_shape=jax.ShapeDtypeStruct((N, C, HW), jnp.float32),
        grid=(N // tb,),
        in_specs=in_specs,
        out_specs=pl.BlockSpec((tb, C, HW), lambda b: (b, 0, 0)),
        compiler_params=pltpu.CompilerParams(
            dimension_semantics=("parallel",),         # batch -> both TCs on v7x
            vmem_limit_bytes=48 * 1024 * 1024),
    )(x3, *params)

    return out.reshape(N, C, H, W)


# ----------------------------------------------------------------------------
# Deterministic parameter init (weight_norm: w = g * v / ||v|| per out channel)
# ----------------------------------------------------------------------------
def weight_norm_conv_init(key, out_c, in_c_pg, kh, kw, scale=0.2):
    k1, k2, k3 = jax.random.split(key, 3)
    v = jax.random.normal(k1, (out_c, in_c_pg, kh, kw), jnp.float32) * scale
    g = jax.random.uniform(k2, (out_c,), jnp.float32, 0.5, 1.5)
    b = jax.random.normal(k3, (out_c,), jnp.float32) * 0.1
    norm = jnp.sqrt(jnp.sum(v * v, axis=(1, 2, 3), keepdims=True))
    w = v * (g.reshape(-1, 1, 1, 1) / norm)
    return w, b


def init_params(key, C, groups=3):
    Ch = C // 2
    gs = C // groups
    keys = jax.random.split(key, 19)
    blocks, ki = [], 0
    for _ in range(6):
        gw, gb = weight_norm_conv_init(keys[ki], C, gs, 1, 1); ki += 1
        dw, db = weight_norm_conv_init(keys[ki], C, 1, 3, 3); ki += 1
        pw, pb = weight_norm_conv_init(keys[ki], Ch, C, 1, 1); ki += 1
        blocks.append(dict(gw=gw, gb=gb, dw=dw, db=db, pw=pw, pb=pb))
    lw, lb = weight_norm_conv_init(keys[ki], C, C, 1, 1)
    return blocks, lw, lb


# ----------------------------------------------------------------------------
# Glue: densify grouped 1x1, stack branches, fuse concat into pointwise slots
# ----------------------------------------------------------------------------
def to_kernel_params(blocks, lw, lb, C, H, W, groups=3):
    Ch = C // 2
    Cp = _round_up(C, 8)
    Chp = _round_up(Ch, 8)
    Ccat = 2 * Chp
    gs = C // groups

    def group_dense(w):                 # grouped 1x1 (C, gs, 1, 1) -> dense (C, C)
        M = np.zeros((C, C), np.float32)
        wn_ = np.asarray(w)
        for o in range(C):
            g = o // gs
            M[o, g * gs:(g + 1) * gs] = wn_[o, :, 0, 0]
        return M

    def remap_cols_to_cat(M):           # cols [c1|c2] -> cat slots [0:Ch],[Chp:Chp+Ch]
        out = np.zeros((M.shape[0], Ccat), np.float32)
        out[:, :Ch] = M[:, :Ch]
        out[:, Chp:Chp + Ch] = M[:, Ch:]
        return out

    # level 1 stacked grouped weights (input = padded x): (2*Cp, Cp)
    gw1 = np.zeros((2 * Cp, Cp), np.float32)
    gw1[:C, :C] = group_dense(blocks[0]['gw'])
    gw1[Cp:Cp + C, :C] = group_dense(blocks[1]['gw'])

    # levels 2,3 stacked grouped weights with cat-column remap: (2, 2*Cp, Ccat)
    gw23 = np.zeros((2, 2 * Cp, Ccat), np.float32)
    for li, (ba, bb) in enumerate([(2, 3), (4, 5)]):
        gw23[li, :C, :] = remap_cols_to_cat(group_dense(blocks[ba]['gw']))
        gw23[li, Cp:Cp + C, :] = remap_cols_to_cat(group_dense(blocks[bb]['gw']))

    # grouped biases stacked per level: (3, 2*Cp, 1)
    gb = np.zeros((3, 2 * Cp, 1), np.float32)
    for li, (ba, bb) in enumerate([(0, 1), (2, 3), (4, 5)]):
        gb[li, :C, 0] = np.asarray(blocks[ba]['gb'])
        gb[li, Cp:Cp + C, 0] = np.asarray(blocks[bb]['gb'])

    # depthwise taps / bias per branch block: (6, 9, Cp, 1), (6, Cp, 1)
    dw = np.zeros((6, 9, Cp, 1), np.float32)
    db = np.zeros((6, Cp, 1), np.float32)
    for i in range(6):
        dw[i, :, :C, 0] = (np.asarray(blocks[i]['dw'])[:, 0]
                           .transpose(1, 2, 0).reshape(9, C))
        db[i, :C, 0] = np.asarray(blocks[i]['db'])

    # pointwise weights with fused concat placement: (6, Ccat, Cp)
    pw = np.zeros((6, Ccat, Cp), np.float32)
    pb = np.zeros((3, Ccat, 1), np.float32)
    for i in range(6):
        row0 = 0 if (i % 2 == 0) else Chp      # branch A -> [0:Ch], B -> [Chp:Chp+Ch]
        pw[i, row0:row0 + Ch, :C] = np.asarray(blocks[i]['pw'])[:, :, 0, 0]
    for li, (ba, bb) in enumerate([(0, 1), (2, 3), (4, 5)]):
        pb[li, :Ch, 0] = np.asarray(blocks[ba]['pb'])
        pb[li, Chp:Chp + Ch, 0] = np.asarray(blocks[bb]['pb'])

    # conv_last: (Cp, Ccat) aligned output rows (pad rows zero), bias (Cp, 1)
    lwp = np.zeros((Cp, Ccat), np.float32)
    lwp[:C, :] = remap_cols_to_cat(np.asarray(lw)[:, :, 0, 0])
    lbp = np.zeros((Cp, 1), np.float32)
    lbp[:C, 0] = np.asarray(lb)

    masks = build_masks(H, W)

    return dict(masks=jnp.asarray(masks),
                gw1=jnp.asarray(gw1), gw23=jnp.asarray(gw23),
                gb=jnp.asarray(gb), dw=jnp.asarray(dw), db=jnp.asarray(db),
                pw=jnp.asarray(pw), pb=jnp.asarray(pb),
                lw=jnp.asarray(lwp), lb=jnp.asarray(lbp))


# ----------------------------------------------------------------------------
# Pure-JAX reference (mirrors the PyTorch module exactly, NCHW)
# ----------------------------------------------------------------------------
def conv2d_ref(x, w, b, groups=1, padding=0, dilation=1):
    out = lax.conv_general_dilated(
        x, w, window_strides=(1, 1),
        padding=((padding, padding), (padding, padding)),
        rhs_dilation=(dilation, dilation),
        dimension_numbers=('NCHW', 'OIHW', 'NCHW'),
        feature_group_count=groups,
        precision=lax.Precision.HIGHEST)
    return out + b.reshape(1, -1, 1, 1)


def convblock_ref(x, p, d):
    C = x.shape[1]
    y = conv2d_ref(x, p['gw'], p['gb'], groups=3)
    y = conv2d_ref(y, p['dw'], p['db'], groups=C, padding=d, dilation=d)
    y = conv2d_ref(y, p['pw'], p['pb'])
    return y


def mirb2_ref(x, blocks, lw, lb):
    lrelu = lambda v: jnp.where(v >= 0, v, 0.2 * v)
    res = x
    c1_1 = lrelu(convblock_ref(res, blocks[0], 1))
    c2_1 = lrelu(convblock_ref(res, blocks[1], 2))
    cat1 = jnp.concatenate([c1_1, c2_1], axis=1)
    c1_2 = lrelu(convblock_ref(cat1, blocks[2], 1))
    c2_2 = lrelu(convblock_ref(cat1, blocks[3], 2))
    cat2 = jnp.concatenate([c1_2, c2_2], axis=1)
    c1_4 = lrelu(convblock_ref(cat2, blocks[4], 1))
    c2_4 = lrelu(convblock_ref(cat2, blocks[5], 2))
    out = conv2d_ref(jnp.concatenate([c1_4, c2_4], axis=1), lw, lb)
    return out + x


# ----------------------------------------------------------------------------
if __name__ == "__main__":
    # n_feats must be divisible by groups=3 and by 2 -> 12
    N, C, H, W = 2, 12, 16, 16
    key = jax.random.PRNGKey(0)
    kx, kparams = jax.random.split(key)
    x = jax.random.normal(kx, (N, C, H, W), jnp.float32)

    blocks, lw, lb = init_params(kparams, C)
    kp = to_kernel_params(blocks, lw, lb, C, H, W)

    out = jax.block_until_ready(mirb2_pallas(x, kp))

    ref = jax.block_until_ready(mirb2_ref(x, blocks, lw, lb))
    np.testing.assert_allclose(np.asarray(out), np.asarray(ref),
                               rtol=5e-3, atol=5e-3)
    print("KERNEL_OK")
</pallas_src>

<mosaic_0001>
module attributes {stable_mosaic.version = 11 : i64} {
  func.func @kernel(%arg0: i32, %arg1: memref<1x12x256xf32, #tpu.memory_space<vmem>>, %arg2: memref<16x1x256xf32, #tpu.memory_space<vmem>>, %arg3: memref<32x16xf32, #tpu.memory_space<vmem>>, %arg4: memref<2x32x16xf32, #tpu.memory_space<vmem>>, %arg5: memref<3x32x1xf32, #tpu.memory_space<vmem>>, %arg6: memref<6x9x16x1xf32, #tpu.memory_space<vmem>>, %arg7: memref<6x16x1xf32, #tpu.memory_space<vmem>>, %arg8: memref<6x16x16xf32, #tpu.memory_space<vmem>>, %arg9: memref<3x16x1xf32, #tpu.memory_space<vmem>>, %arg10: memref<16x16xf32, #tpu.memory_space<vmem>>, %arg11: memref<16x1xf32, #tpu.memory_space<vmem>>, %arg12: memref<1x12x256xf32, #tpu.memory_space<vmem>>) attributes {dimension_semantics = [#tpu.dimension_semantics<parallel>], iteration_bounds = array<i64: 2>, scalar_prefetch = 0 : i64, scratch_operands = 0 : i64, tpu.core_type = #tpu.core_type<tc>, window_params = [{transform_indices = @transform_0, window_bounds = array<i64: 1, 12, 256>}, {pipeline_mode = #tpu.pipeline_mode<synchronous>, transform_indices = @transform_1, window_bounds = array<i64: 16, 1, 256>}, {pipeline_mode = #tpu.pipeline_mode<synchronous>, transform_indices = @transform_2, window_bounds = array<i64: 32, 16>}, {pipeline_mode = #tpu.pipeline_mode<synchronous>, transform_indices = @transform_3, window_bounds = array<i64: 2, 32, 16>}, {pipeline_mode = #tpu.pipeline_mode<synchronous>, transform_indices = @transform_4, window_bounds = array<i64: 3, 32, 1>}, {pipeline_mode = #tpu.pipeline_mode<synchronous>, transform_indices = @transform_5, window_bounds = array<i64: 6, 9, 16, 1>}, {pipeline_mode = #tpu.pipeline_mode<synchronous>, transform_indices = @transform_6, window_bounds = array<i64: 6, 16, 1>}, {pipeline_mode = #tpu.pipeline_mode<synchronous>, transform_indices = @transform_7, window_bounds = array<i64: 6, 16, 16>}, {pipeline_mode = #tpu.pipeline_mode<synchronous>, transform_indices = @transform_8, window_bounds = array<i64: 3, 16, 1>}, {pipeline_mode = #tpu.pipeline_mode<synchronous>, transform_indices = @transform_9, window_bounds = array<i64: 16, 16>}, {pipeline_mode = #tpu.pipeline_mode<synchronous>, transform_indices = @transform_10, window_bounds = array<i64: 16, 1>}, {transform_indices = @transform_11, window_bounds = array<i64: 1, 12, 256>}]} {
    %c0 = arith.constant 0 : index
    %c0_0 = arith.constant 0 : index
    %0 = vector.load %arg3[%c0, %c0_0] : memref<32x16xf32, #tpu.memory_space<vmem>>, vector<32x16xf32>
    %c0_1 = arith.constant 0 : index
    %c0_2 = arith.constant 0 : index
    %c0_3 = arith.constant 0 : index
    %1 = vector.load %arg4[%c0_1, %c0_2, %c0_3] : memref<2x32x16xf32, #tpu.memory_space<vmem>>, vector<1x32x16xf32>
    %2 = vector.shape_cast %1 : vector<1x32x16xf32> to vector<32x16xf32>
    %c1 = arith.constant 1 : index
    %c0_4 = arith.constant 0 : index
    %c0_5 = arith.constant 0 : index
    %3 = vector.load %arg4[%c1, %c0_4, %c0_5] : memref<2x32x16xf32, #tpu.memory_space<vmem>>, vector<1x32x16xf32>
    %4 = vector.shape_cast %3 : vector<1x32x16xf32> to vector<32x16xf32>
    %c0_6 = arith.constant 0 : index
    %c0_7 = arith.constant 0 : index
    %5 = vector.load %arg10[%c0_6, %c0_7] : memref<16x16xf32, #tpu.memory_space<vmem>>, vector<16x16xf32>
    %c0_8 = arith.constant 0 : index
    %c0_9 = arith.constant 0 : index
    %6 = vector.load %arg11[%c0_8, %c0_9] : memref<16x1xf32, #tpu.memory_space<vmem>>, vector<16x1xf32>
    %c0_10 = arith.constant 0 : index
    %c0_11 = arith.constant 0 : index
    %c0_12 = arith.constant 0 : index
    %7 = vector.load %arg1[%c0_10, %c0_11, %c0_12] : memref<1x12x256xf32, #tpu.memory_space<vmem>>, vector<1x12x256xf32>
    %8 = vector.shape_cast %7 : vector<1x12x256xf32> to vector<12x256xf32>
    %cst = arith.constant 0.000000e+00 : f32
    %9 = vector.broadcast %cst : f32 to vector<4x256xf32>
    %10 = tpu.concatenate %8, %9 in 0 : vector<12x256xf32>, vector<4x256xf32> -> vector<16x256xf32>
    %cst_13 = arith.constant dense<0.000000e+00> : vector<32x256xf32>
    %11 = tpu.matmul %0, %10, %cst_13 {dimension_numbers = #tpu.dot_dimension_numbers<[1], [0], [0], [1], [0, 0, 1, 1], [], []>} : vector<32x16xf32>, vector<16x256xf32>, vector<32x256xf32> -> vector<32x256xf32>
    %c0_14 = arith.constant 0 : index
    %c0_15 = arith.constant 0 : index
    %c0_16 = arith.constant 0 : index
    %12 = vector.load %arg5[%c0_14, %c0_15, %c0_16] : memref<3x32x1xf32, #tpu.memory_space<vmem>>, vector<1x32x1xf32>
    %13 = vector.shape_cast %12 : vector<1x32x1xf32> to vector<32x1xf32>
    %14 = vector.broadcast %13 : vector<32x1xf32> to vector<32x256xf32>
    %15 = arith.addf %11, %14 : vector<32x256xf32>
    %16 = vector.extract_strided_slice %15 {offsets = [0, 0], sizes = [16, 256], strides = [1, 1]} : vector<32x256xf32> to vector<16x256xf32>
    %c0_17 = arith.constant 0 : index
    %c0_18 = arith.constant 0 : index
    %c0_19 = arith.constant 0 : index
    %c0_20 = arith.constant 0 : index
    %17 = vector.load %arg6[%c0_17, %c0_18, %c0_19, %c0_20] : memref<6x9x16x1xf32, #tpu.memory_space<vmem>>, vector<1x9x16x1xf32>
    %18 = vector.shape_cast %17 : vector<1x9x16x1xf32> to vector<9x16x1xf32>
    %19 = vector.extract_strided_slice %18 {offsets = [4, 0, 0], sizes = [1, 16, 1], strides = [1, 1, 1]} : vector<9x16x1xf32> to vector<1x16x1xf32>
    %20 = vector.shape_cast %19 : vector<1x16x1xf32> to vector<16x1xf32>
    %21 = vector.broadcast %20 : vector<16x1xf32> to vector<16x256xf32>
    %22 = arith.mulf %16, %21 : vector<16x256xf32>
    %c0_21 = arith.constant 0 : index
    %c0_22 = arith.constant 0 : index
    %c0_23 = arith.constant 0 : index
    %23 = vector.load %arg7[%c0_21, %c0_22, %c0_23] : memref<6x16x1xf32, #tpu.memory_space<vmem>>, vector<1x16x1xf32>
    %24 = vector.shape_cast %23 : vector<1x16x1xf32> to vector<16x1xf32>
    %25 = vector.broadcast %24 : vector<16x1xf32> to vector<16x256xf32>
    %26 = arith.addf %22, %25 : vector<16x256xf32>
    %c17_i32 = arith.constant 17 : i32
    %27 = tpu.dynamic_rotate %16 by %c17_i32 dim 1 : vector<16x256xf32>, i32 -> vector<16x256xf32>
    %c0_24 = arith.constant 0 : index
    %c0_25 = arith.constant 0 : index
    %c0_26 = arith.constant 0 : index
    %28 = vector.load %arg2[%c0_24, %c0_25, %c0_26] : memref<16x1x256xf32, #tpu.memory_space<vmem>>, vector<1x1x256xf32>
    %29 = vector.shape_cast %28 : vector<1x1x256xf32> to vector<1x256xf32>
    %30 = vector.broadcast %29 : vector<1x256xf32> to vector<16x256xf32>
    %31 = arith.mulf %27, %30 : vector<16x256xf32>
    %32 = vector.extract_strided_slice %18 {offsets = [0, 0, 0], sizes = [1, 16, 1], strides = [1, 1, 1]} : vector<9x16x1xf32> to vector<1x16x1xf32>
    %33 = vector.shape_cast %32 : vector<1x16x1xf32> to vector<16x1xf32>
    %34 = vector.broadcast %33 : vector<16x1xf32> to vector<16x256xf32>
    %35 = arith.mulf %31, %34 : vector<16x256xf32>
    %36 = arith.addf %26, %35 : vector<16x256xf32>
    %c16_i32 = arith.constant 16 : i32
    %37 = tpu.dynamic_rotate %16 by %c16_i32 dim 1 : vector<16x256xf32>, i32 -> vector<16x256xf32>
    %c1_27 = arith.constant 1 : index
    %c0_28 = arith.constant 0 : index
    %c0_29 = arith.constant 0 : index
    %38 = vector.load %arg2[%c1_27, %c0_28, %c0_29] : memref<16x1x256xf32, #tpu.memory_space<vmem>>, vector<1x1x256xf32>
    %39 = vector.shape_cast %38 : vector<1x1x256xf32> to vector<1x256xf32>
    %40 = vector.broadcast %39 : vector<1x256xf32> to vector<16x256xf32>
    %41 = arith.mulf %37, %40 : vector<16x256xf32>
    %42 = vector.extract_strided_slice %18 {offsets = [1, 0, 0], sizes = [1, 16, 1], strides = [1, 1, 1]} : vector<9x16x1xf32> to vector<1x16x1xf32>
    %43 = vector.shape_cast %42 : vector<1x16x1xf32> to vector<16x1xf32>
    %44 = vector.broadcast %43 : vector<16x1xf32> to vector<16x256xf32>
    %45 = arith.mulf %41, %44 : vector<16x256xf32>
    %46 = arith.addf %36, %45 : vector<16x256xf32>
    %c15_i32 = arith.constant 15 : i32
    %47 = tpu.dynamic_rotate %16 by %c15_i32 dim 1 : vector<16x256xf32>, i32 -> vector<16x256xf32>
    %c2 = arith.constant 2 : index
    %c0_30 = arith.constant 0 : index
    %c0_31 = arith.constant 0 : index
    %48 = vector.load %arg2[%c2, %c0_30, %c0_31] : memref<16x1x256xf32, #tpu.memory_space<vmem>>, vector<1x1x256xf32>
    %49 = vector.shape_cast %48 : vector<1x1x256xf32> to vector<1x256xf32>
    %50 = vector.broadcast %49 : vector<1x256xf32> to vector<16x256xf32>
    %51 = arith.mulf %47, %50 : vector<16x256xf32>
    %52 = vector.extract_strided_slice %18 {offsets = [2, 0, 0], sizes = [1, 16, 1], strides = [1, 1, 1]} : vector<9x16x1xf32> to vector<1x16x1xf32>
    %53 = vector.shape_cast %52 : vector<1x16x1xf32> to vector<16x1xf32>
    %54 = vector.broadcast %53 : vector<16x1xf32> to vector<16x256xf32>
    %55 = arith.mulf %51, %54 : vector<16x256xf32>
    %56 = arith.addf %46, %55 : vector<16x256xf32>
    %c1_i32 = arith.constant 1 : i32
    %57 = tpu.dynamic_rotate %16 by %c1_i32 dim 1 : vector<16x256xf32>, i32 -> vector<16x256xf32>
    %c3 = arith.constant 3 : index
    %c0_32 = arith.constant 0 : index
    %c0_33 = arith.constant 0 : index
    %58 = vector.load %arg2[%c3, %c0_32, %c0_33] : memref<16x1x256xf32, #tpu.memory_space<vmem>>, vector<1x1x256xf32>
    %59 = vector.shape_cast %58 : vector<1x1x256xf32> to vector<1x256xf32>
    %60 = vector.broadcast %59 : vector<1x256xf32> to vector<16x256xf32>
    %61 = arith.mulf %57, %60 : vector<16x256xf32>
    %62 = vector.extract_strided_slice %18 {offsets = [3, 0, 0], sizes = [1, 16, 1], strides = [1, 1, 1]} : vector<9x16x1xf32> to vector<1x16x1xf32>
    %63 = vector.shape_cast %62 : vector<1x16x1xf32> to vector<16x1xf32>
    %64 = vector.broadcast %63 : vector<16x1xf32> to vector<16x256xf32>
    %65 = arith.mulf %61, %64 : vector<16x256xf32>
    %66 = arith.addf %56, %65 : vector<16x256xf32>
    %c255_i32 = arith.constant 255 : i32
    %67 = tpu.dynamic_rotate %16 by %c255_i32 dim 1 : vector<16x256xf32>, i32 -> vector<16x256xf32>
    %c4 = arith.constant 4 : index
    %c0_34 = arith.constant 0 : index
    %c0_35 = arith.constant 0 : index
    %68 = vector.load %arg2[%c4, %c0_34, %c0_35] : memref<16x1x256xf32, #tpu.memory_space<vmem>>, vector<1x1x256xf32>
    %69 = vector.shape_cast %68 : vector<1x1x256xf32> to vector<1x256xf32>
    %70 = vector.broadcast %69 : vector<1x256xf32> to vector<16x256xf32>
    %71 = arith.mulf %67, %70 : vector<16x256xf32>
    %72 = vector.extract_strided_slice %18 {offsets = [5, 0, 0], sizes = [1, 16, 1], strides = [1, 1, 1]} : vector<9x16x1xf32> to vector<1x16x1xf32>
    %73 = vector.shape_cast %72 : vector<1x16x1xf32> to vector<16x1xf32>
    %74 = vector.broadcast %73 : vector<16x1xf32> to vector<16x256xf32>
    %75 = arith.mulf %71, %74 : vector<16x256xf32>
    %76 = arith.addf %66, %75 : vector<16x256xf32>
    %c241_i32 = arith.constant 241 : i32
    %77 = tpu.dynamic_rotate %16 by %c241_i32 dim 1 : vector<16x256xf32>, i32 -> vector<16x256xf32>
    %c5 = arith.constant 5 : index
    %c0_36 = arith.constant 0 : index
    %c0_37 = arith.constant 0 : index
    %78 = vector.load %arg2[%c5, %c0_36, %c0_37] : memref<16x1x256xf32, #tpu.memory_space<vmem>>, vector<1x1x256xf32>
    %79 = vector.shape_cast %78 : vector<1x1x256xf32> to vector<1x256xf32>
    %80 = vector.broadcast %79 : vector<1x256xf32> to vector<16x256xf32>
    %81 = arith.mulf %77, %80 : vector<16x256xf32>
    %82 = vector.extract_strided_slice %18 {offsets = [6, 0, 0], sizes = [1, 16, 1], strides = [1, 1, 1]} : vector<9x16x1xf32> to vector<1x16x1xf32>
    %83 = vector.shape_cast %82 : vector<1x16x1xf32> to vector<16x1xf32>
    %84 = vector.broadcast %83 : vector<16x1xf32> to vector<16x256xf32>
    %85 = arith.mulf %81, %84 : vector<16x256xf32>
    %86 = arith.addf %76, %85 : vector<16x256xf32>
    %c240_i32 = arith.constant 240 : i32
    %87 = tpu.dynamic_rotate %16 by %c240_i32 dim 1 : vector<16x256xf32>, i32 -> vector<16x256xf32>
    %c6 = arith.constant 6 : index
    %c0_38 = arith.constant 0 : index
    %c0_39 = arith.constant 0 : index
    %88 = vector.load %arg2[%c6, %c0_38, %c0_39] : memref<16x1x256xf32, #tpu.memory_space<vmem>>, vector<1x1x256xf32>
    %89 = vector.shape_cast %88 : vector<1x1x256xf32> to vector<1x256xf32>
    %90 = vector.broadcast %89 : vector<1x256xf32> to vector<16x256xf32>
    %91 = arith.mulf %87, %90 : vector<16x256xf32>
    %92 = vector.extract_strided_slice %18 {offsets = [7, 0, 0], sizes = [1, 16, 1], strides = [1, 1, 1]} : vector<9x16x1xf32> to vector<1x16x1xf32>
    %93 = vector.shape_cast %92 : vector<1x16x1xf32> to vector<16x1xf32>
    %94 = vector.broadcast %93 : vector<16x1xf32> to vector<16x256xf32>
    %95 = arith.mulf %91, %94 : vector<16x256xf32>
    %96 = arith.addf %86, %95 : vector<16x256xf32>
    %c239_i32 = arith.constant 239 : i32
    %97 = tpu.dynamic_rotate %16 by %c239_i32 dim 1 : vector<16x256xf32>, i32 -> vector<16x256xf32>
    %c7 = arith.constant 7 : index
    %c0_40 = arith.constant 0 : index
    %c0_41 = arith.constant 0 : index
    %98 = vector.load %arg2[%c7, %c0_40, %c0_41] : memref<16x1x256xf32, #tpu.memory_space<vmem>>, vector<1x1x256xf32>
    %99 = vector.shape_cast %98 : vector<1x1x256xf32> to vector<1x256xf32>
    %100 = vector.broadcast %99 : vector<1x256xf32> to vector<16x256xf32>
    %101 = arith.mulf %97, %100 : vector<16x256xf32>
    %102 = vector.extract_strided_slice %18 {offsets = [8, 0, 0], sizes = [1, 16, 1], strides = [1, 1, 1]} : vector<9x16x1xf32> to vector<1x16x1xf32>
    %103 = vector.shape_cast %102 : vector<1x16x1xf32> to vector<16x1xf32>
    %104 = vector.broadcast %103 : vector<16x1xf32> to vector<16x256xf32>
    %105 = arith.mulf %101, %104 : vector<16x256xf32>
    %106 = arith.addf %96, %105 : vector<16x256xf32>
    %107 = vector.extract_strided_slice %15 {offsets = [16, 0], sizes = [16, 256], strides = [1, 1]} : vector<32x256xf32> to vector<16x256xf32>
    %c1_42 = arith.constant 1 : index
    %c0_43 = arith.constant 0 : index
    %c0_44 = arith.constant 0 : index
    %c0_45 = arith.constant 0 : index
    %108 = vector.load %arg6[%c1_42, %c0_43, %c0_44, %c0_45] : memref<6x9x16x1xf32, #tpu.memory_space<vmem>>, vector<1x9x16x1xf32>
    %109 = vector.shape_cast %108 : vector<1x9x16x1xf32> to vector<9x16x1xf32>
    %110 = vector.extract_strided_slice %109 {offsets = [4, 0, 0], sizes = [1, 16, 1], strides = [1, 1, 1]} : vector<9x16x1xf32> to vector<1x16x1xf32>
    %111 = vector.shape_cast %110 : vector<1x16x1xf32> to vector<16x1xf32>
    %112 = vector.broadcast %111 : vector<16x1xf32> to vector<16x256xf32>
    %113 = arith.mulf %107, %112 : vector<16x256xf32>
    %c1_46 = arith.constant 1 : index
    %c0_47 = arith.constant 0 : index
    %c0_48 = arith.constant 0 : index
    %114 = vector.load %arg7[%c1_46, %c0_47, %c0_48] : memref<6x16x1xf32, #tpu.memory_space<vmem>>, vector<1x16x1xf32>
    %115 = vector.shape_cast %114 : vector<1x16x1xf32> to vector<16x1xf32>
    %116 = vector.broadcast %115 : vector<16x1xf32> to vector<16x256xf32>
    %117 = arith.addf %113, %116 : vector<16x256xf32>
    %c34_i32 = arith.constant 34 : i32
    %118 = tpu.dynamic_rotate %107 by %c34_i32 dim 1 : vector<16x256xf32>, i32 -> vector<16x256xf32>
    %c8 = arith.constant 8 : index
    %c0_49 = arith.constant 0 : index
    %c0_50 = arith.constant 0 : index
    %119 = vector.load %arg2[%c8, %c0_49, %c0_50] : memref<16x1x256xf32, #tpu.memory_space<vmem>>, vector<1x1x256xf32>
    %120 = vector.shape_cast %119 : vector<1x1x256xf32> to vector<1x256xf32>
    %121 = vector.broadcast %120 : vector<1x256xf32> to vector<16x256xf32>
    %122 = arith.mulf %118, %121 : vector<16x256xf32>
    %123 = vector.extract_strided_slice %109 {offsets = [0, 0, 0], sizes = [1, 16, 1], strides = [1, 1, 1]} : vector<9x16x1xf32> to vector<1x16x1xf32>
    %124 = vector.shape_cast %123 : vector<1x16x1xf32> to vector<16x1xf32>
    %125 = vector.broadcast %124 : vector<16x1xf32> to vector<16x256xf32>
    %126 = arith.mulf %122, %125 : vector<16x256xf32>
    %127 = arith.addf %117, %126 : vector<16x256xf32>
    %c32_i32 = arith.constant 32 : i32
    %128 = tpu.dynamic_rotate %107 by %c32_i32 dim 1 : vector<16x256xf32>, i32 -> vector<16x256xf32>
    %c9 = arith.constant 9 : index
    %c0_51 = arith.constant 0 : index
    %c0_52 = arith.constant 0 : index
    %129 = vector.load %arg2[%c9, %c0_51, %c0_52] : memref<16x1x256xf32, #tpu.memory_space<vmem>>, vector<1x1x256xf32>
    %130 = vector.shape_cast %129 : vector<1x1x256xf32> to vector<1x256xf32>
    %131 = vector.broadcast %130 : vector<1x256xf32> to vector<16x256xf32>
    %132 = arith.mulf %128, %131 : vector<16x256xf32>
    %133 = vector.extract_strided_slice %109 {offsets = [1, 0, 0], sizes = [1, 16, 1], strides = [1, 1, 1]} : vector<9x16x1xf32> to vector<1x16x1xf32>
    %134 = vector.shape_cast %133 : vector<1x16x1xf32> to vector<16x1xf32>
    %135 = vector.broadcast %134 : vector<16x1xf32> to vector<16x256xf32>
    %136 = arith.mulf %132, %135 : vector<16x256xf32>
    %137 = arith.addf %127, %136 : vector<16x256xf32>
    %c30_i32 = arith.constant 30 : i32
    %138 = tpu.dynamic_rotate %107 by %c30_i32 dim 1 : vector<16x256xf32>, i32 -> vector<16x256xf32>
    %c10 = arith.constant 10 : index
    %c0_53 = arith.constant 0 : index
    %c0_54 = arith.constant 0 : index
    %139 = vector.load %arg2[%c10, %c0_53, %c0_54] : memref<16x1x256xf32, #tpu.memory_space<vmem>>, vector<1x1x256xf32>
    %140 = vector.shape_cast %139 : vector<1x1x256xf32> to vector<1x256xf32>
    %141 = vector.broadcast %140 : vector<1x256xf32> to vector<16x256xf32>
    %142 = arith.mulf %138, %141 : vector<16x256xf32>
    %143 = vector.extract_strided_slice %109 {offsets = [2, 0, 0], sizes = [1, 16, 1], strides = [1, 1, 1]} : vector<9x16x1xf32> to vector<1x16x1xf32>
    %144 = vector.shape_cast %143 : vector<1x16x1xf32> to vector<16x1xf32>
    %145 = vector.broadcast %144 : vector<16x1xf32> to vector<16x256xf32>
    %146 = arith.mulf %142, %145 : vector<16x256xf32>
    %147 = arith.addf %137, %146 : vector<16x256xf32>
    %c2_i32 = arith.constant 2 : i32
    %148 = tpu.dynamic_rotate %107 by %c2_i32 dim 1 : vector<16x256xf32>, i32 -> vector<16x256xf32>
    %c11 = arith.constant 11 : index
    %c0_55 = arith.constant 0 : index
    %c0_56 = arith.constant 0 : index
    %149 = vector.load %arg2[%c11, %c0_55, %c0_56] : memref<16x1x256xf32, #tpu.memory_space<vmem>>, vector<1x1x256xf32>
    %150 = vector.shape_cast %149 : vector<1x1x256xf32> to vector<1x256xf32>
    %151 = vector.broadcast %150 : vector<1x256xf32> to vector<16x256xf32>
    %152 = arith.mulf %148, %151 : vector<16x256xf32>
    %153 = vector.extract_strided_slice %109 {offsets = [3, 0, 0], sizes = [1, 16, 1], strides = [1, 1, 1]} : vector<9x16x1xf32> to vector<1x16x1xf32>
    %154 = vector.shape_cast %153 : vector<1x16x1xf32> to vector<16x1xf32>
    %155 = vector.broadcast %154 : vector<16x1xf32> to vector<16x256xf32>
    %156 = arith.mulf %152, %155 : vector<16x256xf32>
    %157 = arith.addf %147, %156 : vector<16x256xf32>
    %c254_i32 = arith.constant 254 : i32
    %158 = tpu.dynamic_rotate %107 by %c254_i32 dim 1 : vector<16x256xf32>, i32 -> vector<16x256xf32>
    %c12 = arith.constant 12 : index
    %c0_57 = arith.constant 0 : index
    %c0_58 = arith.constant 0 : index
    %159 = vector.load %arg2[%c12, %c0_57, %c0_58] : memref<16x1x256xf32, #tpu.memory_space<vmem>>, vector<1x1x256xf32>
    %160 = vector.shape_cast %159 : vector<1x1x256xf32> to vector<1x256xf32>
    %161 = vector.broadcast %160 : vector<1x256xf32> to vector<16x256xf32>
    %162 = arith.mulf %158, %161 : vector<16x256xf32>
    %163 = vector.extract_strided_slice %109 {offsets = [5, 0, 0], sizes = [1, 16, 1], strides = [1, 1, 1]} : vector<9x16x1xf32> to vector<1x16x1xf32>
    %164 = vector.shape_cast %163 : vector<1x16x1xf32> to vector<16x1xf32>
    %165 = vector.broadcast %164 : vector<16x1xf32> to vector<16x256xf32>
    %166 = arith.mulf %162, %165 : vector<16x256xf32>
    %167 = arith.addf %157, %166 : vector<16x256xf32>
    %c226_i32 = arith.constant 226 : i32
    %168 = tpu.dynamic_rotate %107 by %c226_i32 dim 1 : vector<16x256xf32>, i32 -> vector<16x256xf32>
    %c13 = arith.constant 13 : index
    %c0_59 = arith.constant 0 : index
    %c0_60 = arith.constant 0 : index
    %169 = vector.load %arg2[%c13, %c0_59, %c0_60] : memref<16x1x256xf32, #tpu.memory_space<vmem>>, vector<1x1x256xf32>
    %170 = vector.shape_cast %169 : vector<1x1x256xf32> to vector<1x256xf32>
    %171 = vector.broadcast %170 : vector<1x256xf32> to vector<16x256xf32>
    %172 = arith.mulf %168, %171 : vector<16x256xf32>
    %173 = vector.extract_strided_slice %109 {offsets = [6, 0, 0], sizes = [1, 16, 1], strides = [1, 1, 1]} : vector<9x16x1xf32> to vector<1x16x1xf32>
    %174 = vector.shape_cast %173 : vector<1x16x1xf32> to vector<16x1xf32>
    %175 = vector.broadcast %174 : vector<16x1xf32> to vector<16x256xf32>
    %176 = arith.mulf %172, %175 : vector<16x256xf32>
    %177 = arith.addf %167, %176 : vector<16x256xf32>
    %c224_i32 = arith.constant 224 : i32
    %178 = tpu.dynamic_rotate %107 by %c224_i32 dim 1 : vector<16x256xf32>, i32 -> vector<16x256xf32>
    %c14 = arith.constant 14 : index
    %c0_61 = arith.constant 0 : index
    %c0_62 = arith.constant 0 : index
    %179 = vector.load %arg2[%c14, %c0_61, %c0_62] : memref<16x1x256xf32, #tpu.memory_space<vmem>>, vector<1x1x256xf32>
    %180 = vector.shape_cast %179 : vector<1x1x256xf32> to vector<1x256xf32>
    %181 = vector.broadcast %180 : vector<1x256xf32> to vector<16x256xf32>
    %182 = arith.mulf %178, %181 : vector<16x256xf32>
    %183 = vector.extract_strided_slice %109 {offsets = [7, 0, 0], sizes = [1, 16, 1], strides = [1, 1, 1]} : vector<9x16x1xf32> to vector<1x16x1xf32>
    %184 = vector.shape_cast %183 : vector<1x16x1xf32> to vector<16x1xf32>
    %185 = vector.broadcast %184 : vector<16x1xf32> to vector<16x256xf32>
    %186 = arith.mulf %182, %185 : vector<16x256xf32>
    %187 = arith.addf %177, %186 : vector<16x256xf32>
    %c222_i32 = arith.constant 222 : i32
    %188 = tpu.dynamic_rotate %107 by %c222_i32 dim 1 : vector<16x256xf32>, i32 -> vector<16x256xf32>
    %c15 = arith.constant 15 : index
    %c0_63 = arith.constant 0 : index
    %c0_64 = arith.constant 0 : index
    %189 = vector.load %arg2[%c15, %c0_63, %c0_64] : memref<16x1x256xf32, #tpu.memory_space<vmem>>, vector<1x1x256xf32>
    %190 = vector.shape_cast %189 : vector<1x1x256xf32> to vector<1x256xf32>
    %191 = vector.broadcast %190 : vector<1x256xf32> to vector<16x256xf32>
    %192 = arith.mulf %188, %191 : vector<16x256xf32>
    %193 = vector.extract_strided_slice %109 {offsets = [8, 0, 0], sizes = [1, 16, 1], strides = [1, 1, 1]} : vector<9x16x1xf32> to vector<1x16x1xf32>
    %194 = vector.shape_cast %193 : vector<1x16x1xf32> to vector<16x1xf32>
    %195 = vector.broadcast %194 : vector<16x1xf32> to vector<16x256xf32>
    %196 = arith.mulf %192, %195 : vector<16x256xf32>
    %197 = arith.addf %187, %196 : vector<16x256xf32>
    %c0_65 = arith.constant 0 : index
    %c0_66 = arith.constant 0 : index
    %c0_67 = arith.constant 0 : index
    %198 = vector.load %arg8[%c0_65, %c0_66, %c0_67] : memref<6x16x16xf32, #tpu.memory_space<vmem>>, vector<1x16x16xf32>
    %199 = vector.shape_cast %198 : vector<1x16x16xf32> to vector<16x16xf32>
    %cst_68 = arith.constant dense<0.000000e+00> : vector<16x256xf32>
    %200 = tpu.matmul %199, %106, %cst_68 {dimension_numbers = #tpu.dot_dimension_numbers<[1], [0], [0], [1], [0, 0, 1, 1], [], []>} : vector<16x16xf32>, vector<16x256xf32>, vector<16x256xf32> -> vector<16x256xf32>
    %c1_69 = arith.constant 1 : index
    %c0_70 = arith.constant 0 : index
    %c0_71 = arith.constant 0 : index
    %201 = vector.load %arg8[%c1_69, %c0_70, %c0_71] : memref<6x16x16xf32, #tpu.memory_space<vmem>>, vector<1x16x16xf32>
    %202 = vector.shape_cast %201 : vector<1x16x16xf32> to vector<16x16xf32>
    %cst_72 = arith.constant dense<0.000000e+00> : vector<16x256xf32>
    %203 = tpu.matmul %202, %197, %cst_72 {dimension_numbers = #tpu.dot_dimension_numbers<[1], [0], [0], [1], [0, 0, 1, 1], [], []>} : vector<16x16xf32>, vector<16x256xf32>, vector<16x256xf32> -> vector<16x256xf32>
    %204 = arith.addf %200, %203 : vector<16x256xf32>
    %c0_73 = arith.constant 0 : index
    %c0_74 = arith.constant 0 : index
    %c0_75 = arith.constant 0 : index
    %205 = vector.load %arg9[%c0_73, %c0_74, %c0_75] : memref<3x16x1xf32, #tpu.memory_space<vmem>>, vector<1x16x1xf32>
    %206 = vector.shape_cast %205 : vector<1x16x1xf32> to vector<16x1xf32>
    %207 = vector.broadcast %206 : vector<16x1xf32> to vector<16x256xf32>
    %208 = arith.addf %204, %207 : vector<16x256xf32>
    %cst_76 = arith.constant 2.000000e-01 : f32
    %209 = vector.broadcast %cst_76 : f32 to vector<16x256xf32>
    %210 = arith.mulf %209, %208 : vector<16x256xf32>
    %211 = arith.maximumf %208, %210 : vector<16x256xf32>
    %cst_77 = arith.constant dense<0.000000e+00> : vector<32x256xf32>
    %212 = tpu.matmul %2, %211, %cst_77 {dimension_numbers = #tpu.dot_dimension_numbers<[1], [0], [0], [1], [0, 0, 1, 1], [], []>} : vector<32x16xf32>, vector<16x256xf32>, vector<32x256xf32> -> vector<32x256xf32>
    %c1_78 = arith.constant 1 : index
    %c0_79 = arith.constant 0 : index
    %c0_80 = arith.constant 0 : index
    %213 = vector.load %arg5[%c1_78, %c0_79, %c0_80] : memref<3x32x1xf32, #tpu.memory_space<vmem>>, vector<1x32x1xf32>
    %214 = vector.shape_cast %213 : vector<1x32x1xf32> to vector<32x1xf32>
    %215 = vector.broadcast %214 : vector<32x1xf32> to vector<32x256xf32>
    %216 = arith.addf %212, %215 : vector<32x256xf32>
    %217 = vector.extract_strided_slice %216 {offsets = [0, 0], sizes = [16, 256], strides = [1, 1]} : vector<32x256xf32> to vector<16x256xf32>
    %c2_81 = arith.constant 2 : index
    %c0_82 = arith.constant 0 : index
    %c0_83 = arith.constant 0 : index
    %c0_84 = arith.constant 0 : index
    %218 = vector.load %arg6[%c2_81, %c0_82, %c0_83, %c0_84] : memref<6x9x16x1xf32, #tpu.memory_space<vmem>>, vector<1x9x16x1xf32>
    %219 = vector.shape_cast %218 : vector<1x9x16x1xf32> to vector<9x16x1xf32>
    %220 = vector.extract_strided_slice %219 {offsets = [4, 0, 0], sizes = [1, 16, 1], strides = [1, 1, 1]} : vector<9x16x1xf32> to vector<1x16x1xf32>
    %221 = vector.shape_cast %220 : vector<1x16x1xf32> to vector<16x1xf32>
    %222 = vector.broadcast %221 : vector<16x1xf32> to vector<16x256xf32>
    %223 = arith.mulf %217, %222 : vector<16x256xf32>
    %c2_85 = arith.constant 2 : index
    %c0_86 = arith.constant 0 : index
    %c0_87 = arith.constant 0 : index
    %224 = vector.load %arg7[%c2_85, %c0_86, %c0_87] : memref<6x16x1xf32, #tpu.memory_space<vmem>>, vector<1x16x1xf32>
    %225 = vector.shape_cast %224 : vector<1x16x1xf32> to vector<16x1xf32>
    %226 = vector.broadcast %225 : vector<16x1xf32> to vector<16x256xf32>
    %227 = arith.addf %223, %226 : vector<16x256xf32>
    %c17_i32_88 = arith.constant 17 : i32
    %228 = tpu.dynamic_rotate %217 by %c17_i32_88 dim 1 : vector<16x256xf32>, i32 -> vector<16x256xf32>
    %c0_89 = arith.constant 0 : index
    %c0_90 = arith.constant 0 : index
    %c0_91 = arith.constant 0 : index
    %229 = vector.load %arg2[%c0_89, %c0_90, %c0_91] : memref<16x1x256xf32, #tpu.memory_space<vmem>>, vector<1x1x256xf32>
    %230 = vector.shape_cast %229 : vector<1x1x256xf32> to vector<1x256xf32>
    %231 = vector.broadcast %230 : vector<1x256xf32> to vector<16x256xf32>
    %232 = arith.mulf %228, %231 : vector<16x256xf32>
    %233 = vector.extract_strided_slice %219 {offsets = [0, 0, 0], sizes = [1, 16, 1], strides = [1, 1, 1]} : vector<9x16x1xf32> to vector<1x16x1xf32>
    %234 = vector.shape_cast %233 : vector<1x16x1xf32> to vector<16x1xf32>
    %235 = vector.broadcast %234 : vector<16x1xf32> to vector<16x256xf32>
    %236 = arith.mulf %232, %235 : vector<16x256xf32>
    %237 = arith.addf %227, %236 : vector<16x256xf32>
    %c16_i32_92 = arith.constant 16 : i32
    %238 = tpu.dynamic_rotate %217 by %c16_i32_92 dim 1 : vector<16x256xf32>, i32 -> vector<16x256xf32>
    %c1_93 = arith.constant 1 : index
    %c0_94 = arith.constant 0 : index
    %c0_95 = arith.constant 0 : index
    %239 = vector.load %arg2[%c1_93, %c0_94, %c0_95] : memref<16x1x256xf32, #tpu.memory_space<vmem>>, vector<1x1x256xf32>
    %240 = vector.shape_cast %239 : vector<1x1x256xf32> to vector<1x256xf32>
    %241 = vector.broadcast %240 : vector<1x256xf32> to vector<16x256xf32>
    %242 = arith.mulf %238, %241 : vector<16x256xf32>
    %243 = vector.extract_strided_slice %219 {offsets = [1, 0, 0], sizes = [1, 16, 1], strides = [1, 1, 1]} : vector<9x16x1xf32> to vector<1x16x1xf32>
    %244 = vector.shape_cast %243 : vector<1x16x1xf32> to vector<16x1xf32>
    %245 = vector.broadcast %244 : vector<16x1xf32> to vector<16x256xf32>
    %246 = arith.mulf %242, %245 : vector<16x256xf32>
    %247 = arith.addf %237, %246 : vector<16x256xf32>
    %c15_i32_96 = arith.constant 15 : i32
    %248 = tpu.dynamic_rotate %217 by %c15_i32_96 dim 1 : vector<16x256xf32>, i32 -> vector<16x256xf32>
    %c2_97 = arith.constant 2 : index
    %c0_98 = arith.constant 0 : index
    %c0_99 = arith.constant 0 : index
    %249 = vector.load %arg2[%c2_97, %c0_98, %c0_99] : memref<16x1x256xf32, #tpu.memory_space<vmem>>, vector<1x1x256xf32>
    %250 = vector.shape_cast %249 : vector<1x1x256xf32> to vector<1x256xf32>
    %251 = vector.broadcast %250 : vector<1x256xf32> to vector<16x256xf32>
    %252 = arith.mulf %248, %251 : vector<16x256xf32>
    %253 = vector.extract_strided_slice %219 {offsets = [2, 0, 0], sizes = [1, 16, 1], strides = [1, 1, 1]} : vector<9x16x1xf32> to vector<1x16x1xf32>
    %254 = vector.shape_cast %253 : vector<1x16x1xf32> to vector<16x1xf32>
    %255 = vector.broadcast %254 : vector<16x1xf32> to vector<16x256xf32>
    %256 = arith.mulf %252, %255 : vector<16x256xf32>
    %257 = arith.addf %247, %256 : vector<16x256xf32>
    %c1_i32_100 = arith.constant 1 : i32
    %258 = tpu.dynamic_rotate %217 by %c1_i32_100 dim 1 : vector<16x256xf32>, i32 -> vector<16x256xf32>
    %c3_101 = arith.constant 3 : index
    %c0_102 = arith.constant 0 : index
    %c0_103 = arith.constant 0 : index
    %259 = vector.load %arg2[%c3_101, %c0_102, %c0_103] : memref<16x1x256xf32, #tpu.memory_space<vmem>>, vector<1x1x256xf32>
    %260 = vector.shape_cast %259 : vector<1x1x256xf32> to vector<1x256xf32>
    %261 = vector.broadcast %260 : vector<1x256xf32> to vector<16x256xf32>
    %262 = arith.mulf %258, %261 : vector<16x256xf32>
    %263 = vector.extract_strided_slice %219 {offsets = [3, 0, 0], sizes = [1, 16, 1], strides = [1, 1, 1]} : vector<9x16x1xf32> to vector<1x16x1xf32>
    %264 = vector.shape_cast %263 : vector<1x16x1xf32> to vector<16x1xf32>
    %265 = vector.broadcast %264 : vector<16x1xf32> to vector<16x256xf32>
    %266 = arith.mulf %262, %265 : vector<16x256xf32>
    %267 = arith.addf %257, %266 : vector<16x256xf32>
    %c255_i32_104 = arith.constant 255 : i32
    %268 = tpu.dynamic_rotate %217 by %c255_i32_104 dim 1 : vector<16x256xf32>, i32 -> vector<16x256xf32>
    %c4_105 = arith.constant 4 : index
    %c0_106 = arith.constant 0 : index
    %c0_107 = arith.constant 0 : index
    %269 = vector.load %arg2[%c4_105, %c0_106, %c0_107] : memref<16x1x256xf32, #tpu.memory_space<vmem>>, vector<1x1x256xf32>
    %270 = vector.shape_cast %269 : vector<1x1x256xf32> to vector<1x256xf32>
    %271 = vector.broadcast %270 : vector<1x256xf32> to vector<16x256xf32>
    %272 = arith.mulf %268, %271 : vector<16x256xf32>
    %273 = vector.extract_strided_slice %219 {offsets = [5, 0, 0], sizes = [1, 16, 1], strides = [1, 1, 1]} : vector<9x16x1xf32> to vector<1x16x1xf32>
    %274 = vector.shape_cast %273 : vector<1x16x1xf32> to vector<16x1xf32>
    %275 = vector.broadcast %274 : vector<16x1xf32> to vector<16x256xf32>
    %276 = arith.mulf %272, %275 : vector<16x256xf32>
    %277 = arith.addf %267, %276 : vector<16x256xf32>
    %c241_i32_108 = arith.constant 241 : i32
    %278 = tpu.dynamic_rotate %217 by %c241_i32_108 dim 1 : vector<16x256xf32>, i32 -> vector<16x256xf32>
    %c5_109 = arith.constant 5 : index
    %c0_110 = arith.constant 0 : index
    %c0_111 = arith.constant 0 : index
    %279 = vector.load %arg2[%c5_109, %c0_110, %c0_111] : memref<16x1x256xf32, #tpu.memory_space<vmem>>, vector<1x1x256xf32>
    %280 = vector.shape_cast %279 : vector<1x1x256xf32> to vector<1x256xf32>
    %281 = vector.broadcast %280 : vector<1x256xf32> to vector<16x256xf32>
    %282 = arith.mulf %278, %281 : vector<16x256xf32>
    %283 = vector.extract_strided_slice %219 {offsets = [6, 0, 0], sizes = [1, 16, 1], strides = [1, 1, 1]} : vector<9x16x1xf32> to vector<1x16x1xf32>
    %284 = vector.shape_cast %283 : vector<1x16x1xf32> to vector<16x1xf32>
    %285 = vector.broadcast %284 : vector<16x1xf32> to vector<16x256xf32>
    %286 = arith.mulf %282, %285 : vector<16x256xf32>
    %287 = arith.addf %277, %286 : vector<16x256xf32>
    %c240_i32_112 = arith.constant 240 : i32
    %288 = tpu.dynamic_rotate %217 by %c240_i32_112 dim 1 : vector<16x256xf32>, i32 -> vector<16x256xf32>
    %c6_113 = arith.constant 6 : index
    %c0_114 = arith.constant 0 : index
    %c0_115 = arith.constant 0 : index
    %289 = vector.load %arg2[%c6_113, %c0_114, %c0_115] : memref<16x1x256xf32, #tpu.memory_space<vmem>>, vector<1x1x256xf32>
    %290 = vector.shape_cast %289 : vector<1x1x256xf32> to vector<1x256xf32>
    %291 = vector.broadcast %290 : vector<1x256xf32> to vector<16x256xf32>
    %292 = arith.mulf %288, %291 : vector<16x256xf32>
    %293 = vector.extract_strided_slice %219 {offsets = [7, 0, 0], sizes = [1, 16, 1], strides = [1, 1, 1]} : vector<9x16x1xf32> to vector<1x16x1xf32>
    %294 = vector.shape_cast %293 : vector<1x16x1xf32> to vector<16x1xf32>
    %295 = vector.broadcast %294 : vector<16x1xf32> to vector<16x256xf32>
    %296 = arith.mulf %292, %295 : vector<16x256xf32>
    %297 = arith.addf %287, %296 : vector<16x256xf32>
    %c239_i32_116 = arith.constant 239 : i32
    %298 = tpu.dynamic_rotate %217 by %c239_i32_116 dim 1 : vector<16x256xf32>, i32 -> vector<16x256xf32>
    %c7_117 = arith.constant 7 : index
    %c0_118 = arith.constant 0 : index
    %c0_119 = arith.constant 0 : index
    %299 = vector.load %arg2[%c7_117, %c0_118, %c0_119] : memref<16x1x256xf32, #tpu.memory_space<vmem>>, vector<1x1x256xf32>
    %300 = vector.shape_cast %299 : vector<1x1x256xf32> to vector<1x256xf32>
    %301 = vector.broadcast %300 : vector<1x256xf32> to vector<16x256xf32>
    %302 = arith.mulf %298, %301 : vector<16x256xf32>
    %303 = vector.extract_strided_slice %219 {offsets = [8, 0, 0], sizes = [1, 16, 1], strides = [1, 1, 1]} : vector<9x16x1xf32> to vector<1x16x1xf32>
    %304 = vector.shape_cast %303 : vector<1x16x1xf32> to vector<16x1xf32>
    %305 = vector.broadcast %304 : vector<16x1xf32> to vector<16x256xf32>
    %306 = arith.mulf %302, %305 : vector<16x256xf32>
    %307 = arith.addf %297, %306 : vector<16x256xf32>
    %308 = vector.extract_strided_slice %216 {offsets = [16, 0], sizes = [16, 256], strides = [1, 1]} : vector<32x256xf32> to vector<16x256xf32>
    %c3_120 = arith.constant 3 : index
    %c0_121 = arith.constant 0 : index
    %c0_122 = arith.constant 0 : index
    %c0_123 = arith.constant 0 : index
    %309 = vector.load %arg6[%c3_120, %c0_121, %c0_122, %c0_123] : memref<6x9x16x1xf32, #tpu.memory_space<vmem>>, vector<1x9x16x1xf32>
    %310 = vector.shape_cast %309 : vector<1x9x16x1xf32> to vector<9x16x1xf32>
    %311 = vector.extract_strided_slice %310 {offsets = [4, 0, 0], sizes = [1, 16, 1], strides = [1, 1, 1]} : vector<9x16x1xf32> to vector<1x16x1xf32>
    %312 = vector.shape_cast %311 : vector<1x16x1xf32> to vector<16x1xf32>
    %313 = vector.broadcast %312 : vector<16x1xf32> to vector<16x256xf32>
    %314 = arith.mulf %308, %313 : vector<16x256xf32>
    %c3_124 = arith.constant 3 : index
    %c0_125 = arith.constant 0 : index
    %c0_126 = arith.constant 0 : index
    %315 = vector.load %arg7[%c3_124, %c0_125, %c0_126] : memref<6x16x1xf32, #tpu.memory_space<vmem>>, vector<1x16x1xf32>
    %316 = vector.shape_cast %315 : vector<1x16x1xf32> to vector<16x1xf32>
    %317 = vector.broadcast %316 : vector<16x1xf32> to vector<16x256xf32>
    %318 = arith.addf %314, %317 : vector<16x256xf32>
    %c34_i32_127 = arith.constant 34 : i32
    %319 = tpu.dynamic_rotate %308 by %c34_i32_127 dim 1 : vector<16x256xf32>, i32 -> vector<16x256xf32>
    %c8_128 = arith.constant 8 : index
    %c0_129 = arith.constant 0 : index
    %c0_130 = arith.constant 0 : index
    %320 = vector.load %arg2[%c8_128, %c0_129, %c0_130] : memref<16x1x256xf32, #tpu.memory_space<vmem>>, vector<1x1x256xf32>
    %321 = vector.shape_cast %320 : vector<1x1x256xf32> to vector<1x256xf32>
    %322 = vector.broadcast %321 : vector<1x256xf32> to vector<16x256xf32>
    %323 = arith.mulf %319, %322 : vector<16x256xf32>
    %324 = vector.extract_strided_slice %310 {offsets = [0, 0, 0], sizes = [1, 16, 1], strides = [1, 1, 1]} : vector<9x16x1xf32> to vector<1x16x1xf32>
    %325 = vector.shape_cast %324 : vector<1x16x1xf32> to vector<16x1xf32>
    %326 = vector.broadcast %325 : vector<16x1xf32> to vector<16x256xf32>
    %327 = arith.mulf %323, %326 : vector<16x256xf32>
    %328 = arith.addf %318, %327 : vector<16x256xf32>
    %c32_i32_131 = arith.constant 32 : i32
    %329 = tpu.dynamic_rotate %308 by %c32_i32_131 dim 1 : vector<16x256xf32>, i32 -> vector<16x256xf32>
    %c9_132 = arith.constant 9 : index
    %c0_133 = arith.constant 0 : index
    %c0_134 = arith.constant 0 : index
    %330 = vector.load %arg2[%c9_132, %c0_133, %c0_134] : memref<16x1x256xf32, #tpu.memory_space<vmem>>, vector<1x1x256xf32>
    %331 = vector.shape_cast %330 : vector<1x1x256xf32> to vector<1x256xf32>
    %332 = vector.broadcast %331 : vector<1x256xf32> to vector<16x256xf32>
    %333 = arith.mulf %329, %332 : vector<16x256xf32>
    %334 = vector.extract_strided_slice %310 {offsets = [1, 0, 0], sizes = [1, 16, 1], strides = [1, 1, 1]} : vector<9x16x1xf32> to vector<1x16x1xf32>
    %335 = vector.shape_cast %334 : vector<1x16x1xf32> to vector<16x1xf32>
    %336 = vector.broadcast %335 : vector<16x1xf32> to vector<16x256xf32>
    %337 = arith.mulf %333, %336 : vector<16x256xf32>
    %338 = arith.addf %328, %337 : vector<16x256xf32>
    %c30_i32_135 = arith.constant 30 : i32
    %339 = tpu.dynamic_rotate %308 by %c30_i32_135 dim 1 : vector<16x256xf32>, i32 -> vector<16x256xf32>
    %c10_136 = arith.constant 10 : index
    %c0_137 = arith.constant 0 : index
    %c0_138 = arith.constant 0 : index
    %340 = vector.load %arg2[%c10_136, %c0_137, %c0_138] : memref<16x1x256xf32, #tpu.memory_space<vmem>>, vector<1x1x256xf32>
    %341 = vector.shape_cast %340 : vector<1x1x256xf32> to vector<1x256xf32>
    %342 = vector.broadcast %341 : vector<1x256xf32> to vector<16x256xf32>
    %343 = arith.mulf %339, %342 : vector<16x256xf32>
    %344 = vector.extract_strided_slice %310 {offsets = [2, 0, 0], sizes = [1, 16, 1], strides = [1, 1, 1]} : vector<9x16x1xf32> to vector<1x16x1xf32>
    %345 = vector.shape_cast %344 : vector<1x16x1xf32> to vector<16x1xf32>
    %346 = vector.broadcast %345 : vector<16x1xf32> to vector<16x256xf32>
    %347 = arith.mulf %343, %346 : vector<16x256xf32>
    %348 = arith.addf %338, %347 : vector<16x256xf32>
    %c2_i32_139 = arith.constant 2 : i32
    %349 = tpu.dynamic_rotate %308 by %c2_i32_139 dim 1 : vector<16x256xf32>, i32 -> vector<16x256xf32>
    %c11_140 = arith.constant 11 : index
    %c0_141 = arith.constant 0 : index
    %c0_142 = arith.constant 0 : index
    %350 = vector.load %arg2[%c11_140, %c0_141, %c0_142] : memref<16x1x256xf32, #tpu.memory_space<vmem>>, vector<1x1x256xf32>
    %351 = vector.shape_cast %350 : vector<1x1x256xf32> to vector<1x256xf32>
    %352 = vector.broadcast %351 : vector<1x256xf32> to vector<16x256xf32>
    %353 = arith.mulf %349, %352 : vector<16x256xf32>
    %354 = vector.extract_strided_slice %310 {offsets = [3, 0, 0], sizes = [1, 16, 1], strides = [1, 1, 1]} : vector<9x16x1xf32> to vector<1x16x1xf32>
    %355 = vector.shape_cast %354 : vector<1x16x1xf32> to vector<16x1xf32>
    %356 = vector.broadcast %355 : vector<16x1xf32> to vector<16x256xf32>
    %357 = arith.mulf %353, %356 : vector<16x256xf32>
    %358 = arith.addf %348, %357 : vector<16x256xf32>
    %c254_i32_143 = arith.constant 254 : i32
    %359 = tpu.dynamic_rotate %308 by %c254_i32_143 dim 1 : vector<16x256xf32>, i32 -> vector<16x256xf32>
    %c12_144 = arith.constant 12 : index
    %c0_145 = arith.constant 0 : index
    %c0_146 = arith.constant 0 : index
    %360 = vector.load %arg2[%c12_144, %c0_145, %c0_146] : memref<16x1x256xf32, #tpu.memory_space<vmem>>, vector<1x1x256xf32>
    %361 = vector.shape_cast %360 : vector<1x1x256xf32> to vector<1x256xf32>
    %362 = vector.broadcast %361 : vector<1x256xf32> to vector<16x256xf32>
    %363 = arith.mulf %359, %362 : vector<16x256xf32>
    %364 = vector.extract_strided_slice %310 {offsets = [5, 0, 0], sizes = [1, 16, 1], strides = [1, 1, 1]} : vector<9x16x1xf32> to vector<1x16x1xf32>
    %365 = vector.shape_cast %364 : vector<1x16x1xf32> to vector<16x1xf32>
    %366 = vector.broadcast %365 : vector<16x1xf32> to vector<16x256xf32>
    %367 = arith.mulf %363, %366 : vector<16x256xf32>
    %368 = arith.addf %358, %367 : vector<16x256xf32>
    %c226_i32_147 = arith.constant 226 : i32
    %369 = tpu.dynamic_rotate %308 by %c226_i32_147 dim 1 : vector<16x256xf32>, i32 -> vector<16x256xf32>
    %c13_148 = arith.constant 13 : index
    %c0_149 = arith.constant 0 : index
    %c0_150 = arith.constant 0 : index
    %370 = vector.load %arg2[%c13_148, %c0_149, %c0_150] : memref<16x1x256xf32, #tpu.memory_space<vmem>>, vector<1x1x256xf32>
    %371 = vector.shape_cast %370 : vector<1x1x256xf32> to vector<1x256xf32>
    %372 = vector.broadcast %371 : vector<1x256xf32> to vector<16x256xf32>
    %373 = arith.mulf %369, %372 : vector<16x256xf32>
    %374 = vector.extract_strided_slice %310 {offsets = [6, 0, 0], sizes = [1, 16, 1], strides = [1, 1, 1]} : vector<9x16x1xf32> to vector<1x16x1xf32>
    %375 = vector.shape_cast %374 : vector<1x16x1xf32> to vector<16x1xf32>
    %376 = vector.broadcast %375 : vector<16x1xf32> to vector<16x256xf32>
    %377 = arith.mulf %373, %376 : vector<16x256xf32>
    %378 = arith.addf %368, %377 : vector<16x256xf32>
    %c224_i32_151 = arith.constant 224 : i32
    %379 = tpu.dynamic_rotate %308 by %c224_i32_151 dim 1 : vector<16x256xf32>, i32 -> vector<16x256xf32>
    %c14_152 = arith.constant 14 : index
    %c0_153 = arith.constant 0 : index
    %c0_154 = arith.constant 0 : index
    %380 = vector.load %arg2[%c14_152, %c0_153, %c0_154] : memref<16x1x256xf32, #tpu.memory_space<vmem>>, vector<1x1x256xf32>
    %381 = vector.shape_cast %380 : vector<1x1x256xf32> to vector<1x256xf32>
    %382 = vector.broadcast %381 : vector<1x256xf32> to vector<16x256xf32>
    %383 = arith.mulf %379, %382 : vector<16x256xf32>
    %384 = vector.extract_strided_slice %310 {offsets = [7, 0, 0], sizes = [1, 16, 1], strides = [1, 1, 1]} : vector<9x16x1xf32> to vector<1x16x1xf32>
    %385 = vector.shape_cast %384 : vector<1x16x1xf32> to vector<16x1xf32>
    %386 = vector.broadcast %385 : vector<16x1xf32> to vector<16x256xf32>
    %387 = arith.mulf %383, %386 : vector<16x256xf32>
    %388 = arith.addf %378, %387 : vector<16x256xf32>
    %c222_i32_155 = arith.constant 222 : i32
    %389 = tpu.dynamic_rotate %308 by %c222_i32_155 dim 1 : vector<16x256xf32>, i32 -> vector<16x256xf32>
    %c15_156 = arith.constant 15 : index
    %c0_157 = arith.constant 0 : index
    %c0_158 = arith.constant 0 : index
    %390 = vector.load %arg2[%c15_156, %c0_157, %c0_158] : memref<16x1x256xf32, #tpu.memory_space<vmem>>, vector<1x1x256xf32>
    %391 = vector.shape_cast %390 : vector<1x1x256xf32> to vector<1x256xf32>
    %392 = vector.broadcast %391 : vector<1x256xf32> to vector<16x256xf32>
    %393 = arith.mulf %389, %392 : vector<16x256xf32>
    %394 = vector.extract_strided_slice %310 {offsets = [8, 0, 0], sizes = [1, 16, 1], strides = [1, 1, 1]} : vector<9x16x1xf32> to vector<1x16x1xf32>
    %395 = vector.shape_cast %394 : vector<1x16x1xf32> to vector<16x1xf32>
    %396 = vector.broadcast %395 : vector<16x1xf32> to vector<16x256xf32>
    %397 = arith.mulf %393, %396 : vector<16x256xf32>
    %398 = arith.addf %388, %397 : vector<16x256xf32>
    %c2_159 = arith.constant 2 : index
    %c0_160 = arith.constant 0 : index
    %c0_161 = arith.constant 0 : index
    %399 = vector.load %arg8[%c2_159, %c0_160, %c0_161] : memref<6x16x16xf32, #tpu.memory_space<vmem>>, vector<1x16x16xf32>
    %400 = vector.shape_cast %399 : vector<1x16x16xf32> to vector<16x16xf32>
    %cst_162 = arith.constant dense<0.000000e+00> : vector<16x256xf32>
    %401 = tpu.matmul %400, %307, %cst_162 {dimension_numbers = #tpu.dot_dimension_numbers<[1], [0], [0], [1], [0, 0, 1, 1], [], []>} : vector<16x16xf32>, vector<16x256xf32>, vector<16x256xf32> -> vector<16x256xf32>
    %c3_163 = arith.constant 3 : index
    %c0_164 = arith.constant 0 : index
    %c0_165 = arith.constant 0 : index
    %402 = vector.load %arg8[%c3_163, %c0_164, %c0_165] : memref<6x16x16xf32, #tpu.memory_space<vmem>>, vector<1x16x16xf32>
    %403 = vector.shape_cast %402 : vector<1x16x16xf32> to vector<16x16xf32>
    %cst_166 = arith.constant dense<0.000000e+00> : vector<16x256xf32>
    %404 = tpu.matmul %403, %398, %cst_166 {dimension_numbers = #tpu.dot_dimension_numbers<[1], [0], [0], [1], [0, 0, 1, 1], [], []>} : vector<16x16xf32>, vector<16x256xf32>, vector<16x256xf32> -> vector<16x256xf32>
    %405 = arith.addf %401, %404 : vector<16x256xf32>
    %c1_167 = arith.constant 1 : index
    %c0_168 = arith.constant 0 : index
    %c0_169 = arith.constant 0 : index
    %406 = vector.load %arg9[%c1_167, %c0_168, %c0_169] : memref<3x16x1xf32, #tpu.memory_space<vmem>>, vector<1x16x1xf32>
    %407 = vector.shape_cast %406 : vector<1x16x1xf32> to vector<16x1xf32>
    %408 = vector.broadcast %407 : vector<16x1xf32> to vector<16x256xf32>
    %409 = arith.addf %405, %408 : vector<16x256xf32>
    %cst_170 = arith.constant 2.000000e-01 : f32
    %410 = vector.broadcast %cst_170 : f32 to vector<16x256xf32>
    %411 = arith.mulf %410, %409 : vector<16x256xf32>
    %412 = arith.maximumf %409, %411 : vector<16x256xf32>
    %cst_171 = arith.constant dense<0.000000e+00> : vector<32x256xf32>
    %413 = tpu.matmul %4, %412, %cst_171 {dimension_numbers = #tpu.dot_dimension_numbers<[1], [0], [0], [1], [0, 0, 1, 1], [], []>} : vector<32x16xf32>, vector<16x256xf32>, vector<32x256xf32> -> vector<32x256xf32>
    %c2_172 = arith.constant 2 : index
    %c0_173 = arith.constant 0 : index
    %c0_174 = arith.constant 0 : index
    %414 = vector.load %arg5[%c2_172, %c0_173, %c0_174] : memref<3x32x1xf32, #tpu.memory_space<vmem>>, vector<1x32x1xf32>
    %415 = vector.shape_cast %414 : vector<1x32x1xf32> to vector<32x1xf32>
    %416 = vector.broadcast %415 : vector<32x1xf32> to vector<32x256xf32>
    %417 = arith.addf %413, %416 : vector<32x256xf32>
    %418 = vector.extract_strided_slice %417 {offsets = [0, 0], sizes = [16, 256], strides = [1, 1]} : vector<32x256xf32> to vector<16x256xf32>
    %c4_175 = arith.constant 4 : index
    %c0_176 = arith.constant 0 : index
    %c0_177 = arith.constant 0 : index
    %c0_178 = arith.constant 0 : index
    %419 = vector.load %arg6[%c4_175, %c0_176, %c0_177, %c0_178] : memref<6x9x16x1xf32, #tpu.memory_space<vmem>>, vector<1x9x16x1xf32>
    %420 = vector.shape_cast %419 : vector<1x9x16x1xf32> to vector<9x16x1xf32>
    %421 = vector.extract_strided_slice %420 {offsets = [4, 0, 0], sizes = [1, 16, 1], strides = [1, 1, 1]} : vector<9x16x1xf32> to vector<1x16x1xf32>
    %422 = vector.shape_cast %421 : vector<1x16x1xf32> to vector<16x1xf32>
    %423 = vector.broadcast %422 : vector<16x1xf32> to vector<16x256xf32>
    %424 = arith.mulf %418, %423 : vector<16x256xf32>
    %c4_179 = arith.constant 4 : index
    %c0_180 = arith.constant 0 : index
    %c0_181 = arith.constant 0 : index
    %425 = vector.load %arg7[%c4_179, %c0_180, %c0_181] : memref<6x16x1xf32, #tpu.memory_space<vmem>>, vector<1x16x1xf32>
    %426 = vector.shape_cast %425 : vector<1x16x1xf32> to vector<16x1xf32>
    %427 = vector.broadcast %426 : vector<16x1xf32> to vector<16x256xf32>
    %428 = arith.addf %424, %427 : vector<16x256xf32>
    %c17_i32_182 = arith.constant 17 : i32
    %429 = tpu.dynamic_rotate %418 by %c17_i32_182 dim 1 : vector<16x256xf32>, i32 -> vector<16x256xf32>
    %c0_183 = arith.constant 0 : index
    %c0_184 = arith.constant 0 : index
    %c0_185 = arith.constant 0 : index
    %430 = vector.load %arg2[%c0_183, %c0_184, %c0_185] : memref<16x1x256xf32, #tpu.memory_space<vmem>>, vector<1x1x256xf32>
    %431 = vector.shape_cast %430 : vector<1x1x256xf32> to vector<1x256xf32>
    %432 = vector.broadcast %431 : vector<1x256xf32> to vector<16x256xf32>
    %433 = arith.mulf %429, %432 : vector<16x256xf32>
    %434 = vector.extract_strided_slice %420 {offsets = [0, 0, 0], sizes = [1, 16, 1], strides = [1, 1, 1]} : vector<9x16x1xf32> to vector<1x16x1xf32>
    %435 = vector.shape_cast %434 : vector<1x16x1xf32> to vector<16x1xf32>
    %436 = vector.broadcast %435 : vector<16x1xf32> to vector<16x256xf32>
    %437 = arith.mulf %433, %436 : vector<16x256xf32>
    %438 = arith.addf %428, %437 : vector<16x256xf32>
    %c16_i32_186 = arith.constant 16 : i32
    %439 = tpu.dynamic_rotate %418 by %c16_i32_186 dim 1 : vector<16x256xf32>, i32 -> vector<16x256xf32>
    %c1_187 = arith.constant 1 : index
    %c0_188 = arith.constant 0 : index
    %c0_189 = arith.constant 0 : index
    %440 = vector.load %arg2[%c1_187, %c0_188, %c0_189] : memref<16x1x256xf32, #tpu.memory_space<vmem>>, vector<1x1x256xf32>
    %441 = vector.shape_cast %440 : vector<1x1x256xf32> to vector<1x256xf32>
    %442 = vector.broadcast %441 : vector<1x256xf32> to vector<16x256xf32>
    %443 = arith.mulf %439, %442 : vector<16x256xf32>
    %444 = vector.extract_strided_slice %420 {offsets = [1, 0, 0], sizes = [1, 16, 1], strides = [1, 1, 1]} : vector<9x16x1xf32> to vector<1x16x1xf32>
    %445 = vector.shape_cast %444 : vector<1x16x1xf32> to vector<16x1xf32>
    %446 = vector.broadcast %445 : vector<16x1xf32> to vector<16x256xf32>
    %447 = arith.mulf %443, %446 : vector<16x256xf32>
    %448 = arith.addf %438, %447 : vector<16x256xf32>
    %c15_i32_190 = arith.constant 15 : i32
    %449 = tpu.dynamic_rotate %418 by %c15_i32_190 dim 1 : vector<16x256xf32>, i32 -> vector<16x256xf32>
    %c2_191 = arith.constant 2 : index
    %c0_192 = arith.constant 0 : index
    %c0_193 = arith.constant 0 : index
    %450 = vector.load %arg2[%c2_191, %c0_192, %c0_193] : memref<16x1x256xf32, #tpu.memory_space<vmem>>, vector<1x1x256xf32>
    %451 = vector.shape_cast %450 : vector<1x1x256xf32> to vector<1x256xf32>
    %452 = vector.broadcast %451 : vector<1x256xf32> to vector<16x256xf32>
    %453 = arith.mulf %449, %452 : vector<16x256xf32>
    %454 = vector.extract_strided_slice %420 {offsets = [2, 0, 0], sizes = [1, 16, 1], strides = [1, 1, 1]} : vector<9x16x1xf32> to vector<1x16x1xf32>
    %455 = vector.shape_cast %454 : vector<1x16x1xf32> to vector<16x1xf32>
    %456 = vector.broadcast %455 : vector<16x1xf32> to vector<16x256xf32>
    %457 = arith.mulf %453, %456 : vector<16x256xf32>
    %458 = arith.addf %448, %457 : vector<16x256xf32>
    %c1_i32_194 = arith.constant 1 : i32
    %459 = tpu.dynamic_rotate %418 by %c1_i32_194 dim 1 : vector<16x256xf32>, i32 -> vector<16x256xf32>
    %c3_195 = arith.constant 3 : index
    %c0_196 = arith.constant 0 : index
    %c0_197 = arith.constant 0 : index
    %460 = vector.load %arg2[%c3_195, %c0_196, %c0_197] : memref<16x1x256xf32, #tpu.memory_space<vmem>>, vector<1x1x256xf32>
    %461 = vector.shape_cast %460 : vector<1x1x256xf32> to vector<1x256xf32>
    %462 = vector.broadcast %461 : vector<1x256xf32> to vector<16x256xf32>
    %463 = arith.mulf %459, %462 : vector<16x256xf32>
    %464 = vector.extract_strided_slice %420 {offsets = [3, 0, 0], sizes = [1, 16, 1], strides = [1, 1, 1]} : vector<9x16x1xf32> to vector<1x16x1xf32>
    %465 = vector.shape_cast %464 : vector<1x16x1xf32> to vector<16x1xf32>
    %466 = vector.broadcast %465 : vector<16x1xf32> to vector<16x256xf32>
    %467 = arith.mulf %463, %466 : vector<16x256xf32>
    %468 = arith.addf %458, %467 : vector<16x256xf32>
    %c255_i32_198 = arith.constant 255 : i32
    %469 = tpu.dynamic_rotate %418 by %c255_i32_198 dim 1 : vector<16x256xf32>, i32 -> vector<16x256xf32>
    %c4_199 = arith.constant 4 : index
    %c0_200 = arith.constant 0 : index
    %c0_201 = arith.constant 0 : index
    %470 = vector.load %arg2[%c4_199, %c0_200, %c0_201] : memref<16x1x256xf32, #tpu.memory_space<vmem>>, vector<1x1x256xf32>
    %471 = vector.shape_cast %470 : vector<1x1x256xf32> to vector<1x256xf32>
    %472 = vector.broadcast %471 : vector<1x256xf32> to vector<16x256xf32>
    %473 = arith.mulf %469, %472 : vector<16x256xf32>
    %474 = vector.extract_strided_slice %420 {offsets = [5, 0, 0], sizes = [1, 16, 1], strides = [1, 1, 1]} : vector<9x16x1xf32> to vector<1x16x1xf32>
    %475 = vector.shape_cast %474 : vector<1x16x1xf32> to vector<16x1xf32>
    %476 = vector.broadcast %475 : vector<16x1xf32> to vector<16x256xf32>
    %477 = arith.mulf %473, %476 : vector<16x256xf32>
    %478 = arith.addf %468, %477 : vector<16x256xf32>
    %c241_i32_202 = arith.constant 241 : i32
    %479 = tpu.dynamic_rotate %418 by %c241_i32_202 dim 1 : vector<16x256xf32>, i32 -> vector<16x256xf32>
    %c5_203 = arith.constant 5 : index
    %c0_204 = arith.constant 0 : index
    %c0_205 = arith.constant 0 : index
    %480 = vector.load %arg2[%c5_203, %c0_204, %c0_205] : memref<16x1x256xf32, #tpu.memory_space<vmem>>, vector<1x1x256xf32>
    %481 = vector.shape_cast %480 : vector<1x1x256xf32> to vector<1x256xf32>
    %482 = vector.broadcast %481 : vector<1x256xf32> to vector<16x256xf32>
    %483 = arith.mulf %479, %482 : vector<16x256xf32>
    %484 = vector.extract_strided_slice %420 {offsets = [6, 0, 0], sizes = [1, 16, 1], strides = [1, 1, 1]} : vector<9x16x1xf32> to vector<1x16x1xf32>
    %485 = vector.shape_cast %484 : vector<1x16x1xf32> to vector<16x1xf32>
    %486 = vector.broadcast %485 : vector<16x1xf32> to vector<16x256xf32>
    %487 = arith.mulf %483, %486 : vector<16x256xf32>
    %488 = arith.addf %478, %487 : vector<16x256xf32>
    %c240_i32_206 = arith.constant 240 : i32
    %489 = tpu.dynamic_rotate %418 by %c240_i32_206 dim 1 : vector<16x256xf32>, i32 -> vector<16x256xf32>
    %c6_207 = arith.constant 6 : index
    %c0_208 = arith.constant 0 : index
    %c0_209 = arith.constant 0 : index
    %490 = vector.load %arg2[%c6_207, %c0_208, %c0_209] : memref<16x1x256xf32, #tpu.memory_space<vmem>>, vector<1x1x256xf32>
    %491 = vector.shape_cast %490 : vector<1x1x256xf32> to vector<1x256xf32>
    %492 = vector.broadcast %491 : vector<1x256xf32> to vector<16x256xf32>
    %493 = arith.mulf %489, %492 : vector<16x256xf32>
    %494 = vector.extract_strided_slice %420 {offsets = [7, 0, 0], sizes = [1, 16, 1], strides = [1, 1, 1]} : vector<9x16x1xf32> to vector<1x16x1xf32>
    %495 = vector.shape_cast %494 : vector<1x16x1xf32> to vector<16x1xf32>
    %496 = vector.broadcast %495 : vector<16x1xf32> to vector<16x256xf32>
    %497 = arith.mulf %493, %496 : vector<16x256xf32>
    %498 = arith.addf %488, %497 : vector<16x256xf32>
    %c239_i32_210 = arith.constant 239 : i32
    %499 = tpu.dynamic_rotate %418 by %c239_i32_210 dim 1 : vector<16x256xf32>, i32 -> vector<16x256xf32>
    %c7_211 = arith.constant 7 : index
    %c0_212 = arith.constant 0 : index
    %c0_213 = arith.constant 0 : index
    %500 = vector.load %arg2[%c7_211, %c0_212, %c0_213] : memref<16x1x256xf32, #tpu.memory_space<vmem>>, vector<1x1x256xf32>
    %501 = vector.shape_cast %500 : vector<1x1x256xf32> to vector<1x256xf32>
    %502 = vector.broadcast %501 : vector<1x256xf32> to vector<16x256xf32>
    %503 = arith.mulf %499, %502 : vector<16x256xf32>
    %504 = vector.extract_strided_slice %420 {offsets = [8, 0, 0], sizes = [1, 16, 1], strides = [1, 1, 1]} : vector<9x16x1xf32> to vector<1x16x1xf32>
    %505 = vector.shape_cast %504 : vector<1x16x1xf32> to vector<16x1xf32>
    %506 = vector.broadcast %505 : vector<16x1xf32> to vector<16x256xf32>
    %507 = arith.mulf %503, %506 : vector<16x256xf32>
    %508 = arith.addf %498, %507 : vector<16x256xf32>
    %509 = vector.extract_strided_slice %417 {offsets = [16, 0], sizes = [16, 256], strides = [1, 1]} : vector<32x256xf32> to vector<16x256xf32>
    %c5_214 = arith.constant 5 : index
    %c0_215 = arith.constant 0 : index
    %c0_216 = arith.constant 0 : index
    %c0_217 = arith.constant 0 : index
    %510 = vector.load %arg6[%c5_214, %c0_215, %c0_216, %c0_217] : memref<6x9x16x1xf32, #tpu.memory_space<vmem>>, vector<1x9x16x1xf32>
    %511 = vector.shape_cast %510 : vector<1x9x16x1xf32> to vector<9x16x1xf32>
    %512 = vector.extract_strided_slice %511 {offsets = [4, 0, 0], sizes = [1, 16, 1], strides = [1, 1, 1]} : vector<9x16x1xf32> to vector<1x16x1xf32>
    %513 = vector.shape_cast %512 : vector<1x16x1xf32> to vector<16x1xf32>
    %514 = vector.broadcast %513 : vector<16x1xf32> to vector<16x256xf32>
    %515 = arith.mulf %509, %514 : vector<16x256xf32>
    %c5_218 = arith.constant 5 : index
    %c0_219 = arith.constant 0 : index
    %c0_220 = arith.constant 0 : index
    %516 = vector.load %arg7[%c5_218, %c0_219, %c0_220] : memref<6x16x1xf32, #tpu.memory_space<vmem>>, vector<1x16x1xf32>
    %517 = vector.shape_cast %516 : vector<1x16x1xf32> to vector<16x1xf32>
    %518 = vector.broadcast %517 : vector<16x1xf32> to vector<16x256xf32>
    %519 = arith.addf %515, %518 : vector<16x256xf32>
    %c34_i32_221 = arith.constant 34 : i32
    %520 = tpu.dynamic_rotate %509 by %c34_i32_221 dim 1 : vector<16x256xf32>, i32 -> vector<16x256xf32>
    %c8_222 = arith.constant 8 : index
    %c0_223 = arith.constant 0 : index
    %c0_224 = arith.constant 0 : index
    %521 = vector.load %arg2[%c8_222, %c0_223, %c0_224] : memref<16x1x256xf32, #tpu.memory_space<vmem>>, vector<1x1x256xf32>
    %522 = vector.shape_cast %521 : vector<1x1x256xf32> to vector<1x256xf32>
    %523 = vector.broadcast %522 : vector<1x256xf32> to vector<16x256xf32>
    %524 = arith.mulf %520, %523 : vector<16x256xf32>
    %525 = vector.extract_strided_slice %511 {offsets = [0, 0, 0], sizes = [1, 16, 1], strides = [1, 1, 1]} : vector<9x16x1xf32> to vector<1x16x1xf32>
    %526 = vector.shape_cast %525 : vector<1x16x1xf32> to vector<16x1xf32>
    %527 = vector.broadcast %526 : vector<16x1xf32> to vector<16x256xf32>
    %528 = arith.mulf %524, %527 : vector<16x256xf32>
    %529 = arith.addf %519, %528 : vector<16x256xf32>
    %c32_i32_225 = arith.constant 32 : i32
    %530 = tpu.dynamic_rotate %509 by %c32_i32_225 dim 1 : vector<16x256xf32>, i32 -> vector<16x256xf32>
    %c9_226 = arith.constant 9 : index
    %c0_227 = arith.constant 0 : index
    %c0_228 = arith.constant 0 : index
    %531 = vector.load %arg2[%c9_226, %c0_227, %c0_228] : memref<16x1x256xf32, #tpu.memory_space<vmem>>, vector<1x1x256xf32>
    %532 = vector.shape_cast %531 : vector<1x1x256xf32> to vector<1x256xf32>
    %533 = vector.broadcast %532 : vector<1x256xf32> to vector<16x256xf32>
    %534 = arith.mulf %530, %533 : vector<16x256xf32>
    %535 = vector.extract_strided_slice %511 {offsets = [1, 0, 0], sizes = [1, 16, 1], strides = [1, 1, 1]} : vector<9x16x1xf32> to vector<1x16x1xf32>
    %536 = vector.shape_cast %535 : vector<1x16x1xf32> to vector<16x1xf32>
    %537 = vector.broadcast %536 : vector<16x1xf32> to vector<16x256xf32>
    %538 = arith.mulf %534, %537 : vector<16x256xf32>
    %539 = arith.addf %529, %538 : vector<16x256xf32>
    %c30_i32_229 = arith.constant 30 : i32
    %540 = tpu.dynamic_rotate %509 by %c30_i32_229 dim 1 : vector<16x256xf32>, i32 -> vector<16x256xf32>
    %c10_230 = arith.constant 10 : index
    %c0_231 = arith.constant 0 : index
    %c0_232 = arith.constant 0 : index
    %541 = vector.load %arg2[%c10_230, %c0_231, %c0_232] : memref<16x1x256xf32, #tpu.memory_space<vmem>>, vector<1x1x256xf32>
    %542 = vector.shape_cast %541 : vector<1x1x256xf32> to vector<1x256xf32>
    %543 = vector.broadcast %542 : vector<1x256xf32> to vector<16x256xf32>
    %544 = arith.mulf %540, %543 : vector<16x256xf32>
    %545 = vector.extract_strided_slice %511 {offsets = [2, 0, 0], sizes = [1, 16, 1], strides = [1, 1, 1]} : vector<9x16x1xf32> to vector<1x16x1xf32>
    %546 = vector.shape_cast %545 : vector<1x16x1xf32> to vector<16x1xf32>
    %547 = vector.broadcast %546 : vector<16x1xf32> to vector<16x256xf32>
    %548 = arith.mulf %544, %547 : vector<16x256xf32>
    %549 = arith.addf %539, %548 : vector<16x256xf32>
    %c2_i32_233 = arith.constant 2 : i32
    %550 = tpu.dynamic_rotate %509 by %c2_i32_233 dim 1 : vector<16x256xf32>, i32 -> vector<16x256xf32>
    %c11_234 = arith.constant 11 : index
    %c0_235 = arith.constant 0 : index
    %c0_236 = arith.constant 0 : index
    %551 = vector.load %arg2[%c11_234, %c0_235, %c0_236] : memref<16x1x256xf32, #tpu.memory_space<vmem>>, vector<1x1x256xf32>
    %552 = vector.shape_cast %551 : vector<1x1x256xf32> to vector<1x256xf32>
    %553 = vector.broadcast %552 : vector<1x256xf32> to vector<16x256xf32>
    %554 = arith.mulf %550, %553 : vector<16x256xf32>
    %555 = vector.extract_strided_slice %511 {offsets = [3, 0, 0], sizes = [1, 16, 1], strides = [1, 1, 1]} : vector<9x16x1xf32> to vector<1x16x1xf32>
    %556 = vector.shape_cast %555 : vector<1x16x1xf32> to vector<16x1xf32>
    %557 = vector.broadcast %556 : vector<16x1xf32> to vector<16x256xf32>
    %558 = arith.mulf %554, %557 : vector<16x256xf32>
    %559 = arith.addf %549, %558 : vector<16x256xf32>
    %c254_i32_237 = arith.constant 254 : i32
    %560 = tpu.dynamic_rotate %509 by %c254_i32_237 dim 1 : vector<16x256xf32>, i32 -> vector<16x256xf32>
    %c12_238 = arith.constant 12 : index
    %c0_239 = arith.constant 0 : index
    %c0_240 = arith.constant 0 : index
    %561 = vector.load %arg2[%c12_238, %c0_239, %c0_240] : memref<16x1x256xf32, #tpu.memory_space<vmem>>, vector<1x1x256xf32>
    %562 = vector.shape_cast %561 : vector<1x1x256xf32> to vector<1x256xf32>
    %563 = vector.broadcast %562 : vector<1x256xf32> to vector<16x256xf32>
    %564 = arith.mulf %560, %563 : vector<16x256xf32>
    %565 = vector.extract_strided_slice %511 {offsets = [5, 0, 0], sizes = [1, 16, 1], strides = [1, 1, 1]} : vector<9x16x1xf32> to vector<1x16x1xf32>
    %566 = vector.shape_cast %565 : vector<1x16x1xf32> to vector<16x1xf32>
    %567 = vector.broadcast %566 : vector<16x1xf32> to vector<16x256xf32>
    %568 = arith.mulf %564, %567 : vector<16x256xf32>
    %569 = arith.addf %559, %568 : vector<16x256xf32>
    %c226_i32_241 = arith.constant 226 : i32
    %570 = tpu.dynamic_rotate %509 by %c226_i32_241 dim 1 : vector<16x256xf32>, i32 -> vector<16x256xf32>
    %c13_242 = arith.constant 13 : index
    %c0_243 = arith.constant 0 : index
    %c0_244 = arith.constant 0 : index
    %571 = vector.load %arg2[%c13_242, %c0_243, %c0_244] : memref<16x1x256xf32, #tpu.memory_space<vmem>>, vector<1x1x256xf32>
    %572 = vector.shape_cast %571 : vector<1x1x256xf32> to vector<1x256xf32>
    %573 = vector.broadcast %572 : vector<1x256xf32> to vector<16x256xf32>
    %574 = arith.mulf %570, %573 : vector<16x256xf32>
    %575 = vector.extract_strided_slice %511 {offsets = [6, 0, 0], sizes = [1, 16, 1], strides = [1, 1, 1]} : vector<9x16x1xf32> to vector<1x16x1xf32>
    %576 = vector.shape_cast %575 : vector<1x16x1xf32> to vector<16x1xf32>
    %577 = vector.broadcast %576 : vector<16x1xf32> to vector<16x256xf32>
    %578 = arith.mulf %574, %577 : vector<16x256xf32>
    %579 = arith.addf %569, %578 : vector<16x256xf32>
    %c224_i32_245 = arith.constant 224 : i32
    %580 = tpu.dynamic_rotate %509 by %c224_i32_245 dim 1 : vector<16x256xf32>, i32 -> vector<16x256xf32>
    %c14_246 = arith.constant 14 : index
    %c0_247 = arith.constant 0 : index
    %c0_248 = arith.constant 0 : index
    %581 = vector.load %arg2[%c14_246, %c0_247, %c0_248] : memref<16x1x256xf32, #tpu.memory_space<vmem>>, vector<1x1x256xf32>
    %582 = vector.shape_cast %581 : vector<1x1x256xf32> to vector<1x256xf32>
    %583 = vector.broadcast %582 : vector<1x256xf32> to vector<16x256xf32>
    %584 = arith.mulf %580, %583 : vector<16x256xf32>
    %585 = vector.extract_strided_slice %511 {offsets = [7, 0, 0], sizes = [1, 16, 1], strides = [1, 1, 1]} : vector<9x16x1xf32> to vector<1x16x1xf32>
    %586 = vector.shape_cast %585 : vector<1x16x1xf32> to vector<16x1xf32>
    %587 = vector.broadcast %586 : vector<16x1xf32> to vector<16x256xf32>
    %588 = arith.mulf %584, %587 : vector<16x256xf32>
    %589 = arith.addf %579, %588 : vector<16x256xf32>
    %c222_i32_249 = arith.constant 222 : i32
    %590 = tpu.dynamic_rotate %509 by %c222_i32_249 dim 1 : vector<16x256xf32>, i32 -> vector<16x256xf32>
    %c15_250 = arith.constant 15 : index
    %c0_251 = arith.constant 0 : index
    %c0_252 = arith.constant 0 : index
    %591 = vector.load %arg2[%c15_250, %c0_251, %c0_252] : memref<16x1x256xf32, #tpu.memory_space<vmem>>, vector<1x1x256xf32>
    %592 = vector.shape_cast %591 : vector<1x1x256xf32> to vector<1x256xf32>
    %593 = vector.broadcast %592 : vector<1x256xf32> to vector<16x256xf32>
    %594 = arith.mulf %590, %593 : vector<16x256xf32>
    %595 = vector.extract_strided_slice %511 {offsets = [8, 0, 0], sizes = [1, 16, 1], strides = [1, 1, 1]} : vector<9x16x1xf32> to vector<1x16x1xf32>
    %596 = vector.shape_cast %595 : vector<1x16x1xf32> to vector<16x1xf32>
    %597 = vector.broadcast %596 : vector<16x1xf32> to vector<16x256xf32>
    %598 = arith.mulf %594, %597 : vector<16x256xf32>
    %599 = arith.addf %589, %598 : vector<16x256xf32>
    %c4_253 = arith.constant 4 : index
    %c0_254 = arith.constant 0 : index
    %c0_255 = arith.constant 0 : index
    %600 = vector.load %arg8[%c4_253, %c0_254, %c0_255] : memref<6x16x16xf32, #tpu.memory_space<vmem>>, vector<1x16x16xf32>
    %601 = vector.shape_cast %600 : vector<1x16x16xf32> to vector<16x16xf32>
    %cst_256 = arith.constant dense<0.000000e+00> : vector<16x256xf32>
    %602 = tpu.matmul %601, %508, %cst_256 {dimension_numbers = #tpu.dot_dimension_numbers<[1], [0], [0], [1], [0, 0, 1, 1], [], []>} : vector<16x16xf32>, vector<16x256xf32>, vector<16x256xf32> -> vector<16x256xf32>
    %c5_257 = arith.constant 5 : index
    %c0_258 = arith.constant 0 : index
    %c0_259 = arith.constant 0 : index
    %603 = vector.load %arg8[%c5_257, %c0_258, %c0_259] : memref<6x16x16xf32, #tpu.memory_space<vmem>>, vector<1x16x16xf32>
    %604 = vector.shape_cast %603 : vector<1x16x16xf32> to vector<16x16xf32>
    %cst_260 = arith.constant dense<0.000000e+00> : vector<16x256xf32>
    %605 = tpu.matmul %604, %599, %cst_260 {dimension_numbers = #tpu.dot_dimension_numbers<[1], [0], [0], [1], [0, 0, 1, 1], [], []>} : vector<16x16xf32>, vector<16x256xf32>, vector<16x256xf32> -> vector<16x256xf32>
    %606 = arith.addf %602, %605 : vector<16x256xf32>
    %c2_261 = arith.constant 2 : index
    %c0_262 = arith.constant 0 : index
    %c0_263 = arith.constant 0 : index
    %607 = vector.load %arg9[%c2_261, %c0_262, %c0_263] : memref<3x16x1xf32, #tpu.memory_space<vmem>>, vector<1x16x1xf32>
    %608 = vector.shape_cast %607 : vector<1x16x1xf32> to vector<16x1xf32>
    %609 = vector.broadcast %608 : vector<16x1xf32> to vector<16x256xf32>
    %610 = arith.addf %606, %609 : vector<16x256xf32>
    %cst_264 = arith.constant 2.000000e-01 : f32
    %611 = vector.broadcast %cst_264 : f32 to vector<16x256xf32>
    %612 = arith.mulf %611, %610 : vector<16x256xf32>
    %613 = arith.maximumf %610, %612 : vector<16x256xf32>
    %cst_265 = arith.constant dense<0.000000e+00> : vector<16x256xf32>
    %614 = tpu.matmul %5, %613, %cst_265 {dimension_numbers = #tpu.dot_dimension_numbers<[1], [0], [0], [1], [0, 0, 1, 1], [], []>} : vector<16x16xf32>, vector<16x256xf32>, vector<16x256xf32> -> vector<16x256xf32>
    %615 = vector.broadcast %6 : vector<16x1xf32> to vector<16x256xf32>
    %616 = arith.addf %614, %615 : vector<16x256xf32>
    %617 = vector.extract_strided_slice %616 {offsets = [0, 0], sizes = [12, 256], strides = [1, 1]} : vector<16x256xf32> to vector<12x256xf32>
    %618 = arith.addf %617, %8 : vector<12x256xf32>
    %c0_266 = arith.constant 0 : index
    %c0_267 = arith.constant 0 : index
    %c0_268 = arith.constant 0 : index
    %619 = vector.load %arg12[%c0_266, %c0_267, %c0_268] : memref<1x12x256xf32, #tpu.memory_space<vmem>>, vector<1x12x256xf32>
    %620 = vector.shape_cast %619 : vector<1x12x256xf32> to vector<12x256xf32>
    %621 = vector.shape_cast %618 : vector<12x256xf32> to vector<1x12x256xf32>
    tpu.vector_store %arg12[%c0_266, %c0_267, %c0_268], %621 {strides = array<i32>} : memref<1x12x256xf32, #tpu.memory_space<vmem>>, vector<1x12x256xf32>,
    return
  }
  func.func @transform_0(%arg0: i32) -> (i32, i32, i32) {
    %c0_i32 = arith.constant 0 : i32
    %c0_i32_0 = arith.constant 0 : i32
    %c0_i32_1 = arith.constant 0 : i32
    return %arg0, %c0_i32, %c0_i32_0 : i32, i32, i32
  }
  func.func @transform_1(%arg0: i32) -> (i32, i32, i32) {
    %c0_i32 = arith.constant 0 : i32
    %c0_i32_0 = arith.constant 0 : i32
    %c0_i32_1 = arith.constant 0 : i32
    %c0_i32_2 = arith.constant 0 : i32
    return %c0_i32, %c0_i32_0, %c0_i32_1 : i32, i32, i32
  }
  func.func @transform_2(%arg0: i32) -> (i32, i32) {
    %c0_i32 = arith.constant 0 : i32
    %c0_i32_0 = arith.constant 0 : i32
    %c0_i32_1 = arith.constant 0 : i32
    return %c0_i32, %c0_i32_0 : i32, i32
  }
  func.func @transform_3(%arg0: i32) -> (i32, i32, i32) {
    %c0_i32 = arith.constant 0 : i32
    %c0_i32_0 = arith.constant 0 : i32
    %c0_i32_1 = arith.constant 0 : i32
    %c0_i32_2 = arith.constant 0 : i32
    return %c0_i32, %c0_i32_0, %c0_i32_1 : i32, i32, i32
  }
  func.func @transform_4(%arg0: i32) -> (i32, i32, i32) {
    %c0_i32 = arith.constant 0 : i32
    %c0_i32_0 = arith.constant 0 : i32
    %c0_i32_1 = arith.constant 0 : i32
    %c0_i32_2 = arith.constant 0 : i32
    return %c0_i32, %c0_i32_0, %c0_i32_1 : i32, i32, i32
  }
  func.func @transform_5(%arg0: i32) -> (i32, i32, i32, i32) {
    %c0_i32 = arith.constant 0 : i32
    %c0_i32_0 = arith.constant 0 : i32
    %c0_i32_1 = arith.constant 0 : i32
    %c0_i32_2 = arith.constant 0 : i32
    %c0_i32_3 = arith.constant 0 : i32
    return %c0_i32, %c0_i32_0, %c0_i32_1, %c0_i32_2 : i32, i32, i32, i32
  }
  func.func @transform_6(%arg0: i32) -> (i32, i32, i32) {
    %c0_i32 = arith.constant 0 : i32
    %c0_i32_0 = arith.constant 0 : i32
    %c0_i32_1 = arith.constant 0 : i32
    %c0_i32_2 = arith.constant 0 : i32
    return %c0_i32, %c0_i32_0, %c0_i32_1 : i32, i32, i32
  }
  func.func @transform_7(%arg0: i32) -> (i32, i32, i32) {
    %c0_i32 = arith.constant 0 : i32
    %c0_i32_0 = arith.constant 0 : i32
    %c0_i32_1 = arith.constant 0 : i32
    %c0_i32_2 = arith.constant 0 : i32
    return %c0_i32, %c0_i32_0, %c0_i32_1 : i32, i32, i32
  }
  func.func @transform_8(%arg0: i32) -> (i32, i32, i32) {
    %c0_i32 = arith.constant 0 : i32
    %c0_i32_0 = arith.constant 0 : i32
    %c0_i32_1 = arith.constant 0 : i32
    %c0_i32_2 = arith.constant 0 : i32
    return %c0_i32, %c0_i32_0, %c0_i32_1 : i32, i32, i32
  }
  func.func @transform_9(%arg0: i32) -> (i32, i32) {
    %c0_i32 = arith.constant 0 : i32
    %c0_i32_0 = arith.constant 0 : i32
    %c0_i32_1 = arith.constant 0 : i32
    return %c0_i32, %c0_i32_0 : i32, i32
  }
  func.func @transform_10(%arg0: i32) -> (i32, i32) {
    %c0_i32 = arith.constant 0 : i32
    %c0_i32_0 = arith.constant 0 : i32
    %c0_i32_1 = arith.constant 0 : i32
    return %c0_i32, %c0_i32_0 : i32, i32
  }
  func.func @transform_11(%arg0: i32) -> (i32, i32, i32) {
    %c0_i32 = arith.constant 0 : i32
    %c0_i32_0 = arith.constant 0 : i32
    %c0_i32_1 = arith.constant 0 : i32
    return %arg0, %c0_i32, %c0_i32_0 : i32, i32, i32
  }
}

</mosaic_0001>

<bundles_post_ra>
// kernel: tpu_custom_call.1
= control target key start
LH: loop header
LB: loop body
LE: loop exit
PB: predicated region body
PF: predicated region fallthrough
CT: control target
= control target key end

     0   :  { %s4047_s17 = smov 0   ;;  %s6892_s0 = inlined_call_operand.vmem [shape: f32[2,12,256], index: 0, kind: input, shape index: {}]   ;;  %s6893_s1 = inlined_call_operand.vmem [shape: f32[16,1,256], index: 1, kind: input, shape index: {}]   ;;  %s6894_s2 = inlined_call_operand.vmem [shape: f32[32,16], index: 2, kind: input, shape index: {}]   ;;  %s6895_s3 = inlined_call_operand.vmem [shape: f32[2,32,16], index: 3, kind: input, shape index: {}]   ;;  %s6896_s4 = inlined_call_operand.vmem [shape: f32[3,32,1], index: 4, kind: input, shape index: {}]   ;;  %s6897_s5 = inlined_call_operand.vmem [shape: f32[6,9,16,1], index: 5, kind: input, shape index: {}]   ;;  %s6898_s6 = inlined_call_operand.vmem [shape: f32[6,16,1], index: 6, kind: input, shape index: {}]   ;;  %s6899_s7 = inlined_call_operand.vmem [shape: f32[6,16,16], index: 7, kind: input, shape index: {}]   ;;  %s6900_s8 = inlined_call_operand.vmem [shape: f32[3,16,1], index: 8, kind: input, shape index: {}]   ;;  %s6901_s9 = inlined_call_operand.vmem [shape: f32[16,16], index: 9, kind: input, shape index: {}]   ;;  %s6902_s10 = inlined_call_operand.vmem [shape: f32[16,1], index: 10, kind: input, shape index: {}]   ;;  %s6903_s11 = inlined_call_operand.vmem [shape: f32[2,12,256], index: 11, kind: output, shape index: {}]  }
   0x1 LB: > { %s3689_s18 = sadd.s32 4294967295, %s3966_s17   ;;  %p3693_p0 = scmp.ge.s32.totalorder %s3966_s17, 1  ;;  %s3966_s17 = sphi %s4047_s17, %s21_s17  }
   0x2   : > { %p337_p1 = scmp.lt.s32.totalorder %s3966_s17, 3 }
   0x4   : > { %p338_p2 = pnand %p3693_p0, %p337_p1 }
   0x6   : > { %341 = sbr.rel (%p338_p2) target bundleno = 2344 (0x928), region = 64 }
   0xd   : > { %v413_v0 = vld [vmem:[%s6896_s4 + $0x10] sm:$0xff]  ;;  %p377_p3 = scmp.lt.s32.totalorder %s3689_s18, 1  ;;  %v3968_v1 = vmov 0   ;;  %v6921_v2 = vmov 0.0   ;;  %v411_v3 = vld [vmem:[%s6896_s4] sm:$0xff]  ;;  %vm408_vm0 = vcmask 1043456  }
   0xe   : > { %3954 = vset.pattern.permute.xlu0 %v3968_v1  ;;  %512 = vmatprep.mubr.f32.mxu0 %v6921_v2  ;;  %v414_v4 = vld [vmem:[%s6896_s4 + $0x18] sm:$0xff]  ;;  %vm3970_vm1 = vmmov 1   ;;  %v412_v5 = vld [vmem:[%s6896_s4 + $0x8] sm:$0xff]  ;;  %v3723_v12 = vld [vmem:[%s6897_s5 + $0xd0] sm:$0xff]  ;;  %vm435_vm3 = vcmask 130048   ;;  %s7003_s29 = smov 34  }
   0xf   : > { %427 = vperm.xlu0 %3954, %v413_v0   ;;  %s7452_s18 = smov (!%p377_p3, %s3689_s18), 1  ;;  %530 = vmatprep.mubr.f32.mxu1 %v6921_v2  ;;  %vm3872_vm2 = vmpackc.low %vm408_vm0, %vm3970_vm1  ;;  %v3724_v13 = vld [vmem:[%s6897_s5 + $0xd8] sm:$0xff]  ;;  %v387_v14 = vld [vmem:[%s6894_s2] sm:$0xff]  ;;  %s7029_s30 = smov 17  }
  0x10   : > { %3955 = vset.pattern.permute.xlu1 %v3968_v1  ;;  %s6904_s25 = sshll.u32 %s7452_s18, 5  ;;  %v390_v15 = vld [vmem:[%s6894_s2 + $0x18] sm:$0xff]  ;;  %v3733_v16 = vld [vmem:[%s6898_s6 + $0x10] sm:$0xff]  ;;  %v388_v18 = vld [vmem:[%s6894_s2 + $0x8] sm:$0xff]  ;;  %s6917_s12 = smov 32  }
  0x11   : > { %417 = vperm.xlu1 %3955, %v411_v3   ;;  %s4074_s28 = scalar_lea.vmem %s6892_s0, %s6904_s25  ;;  %v3734_v17 = vld [vmem:[%s6898_s6 + $0x18] sm:$0xff]  ;;  %v3715_v19 = vld [vmem:[%s6897_s5 + $0x90] sm:$0xff]  ;;  %v3717_v22 = vld [vmem:[%s6897_s5 + $0xa0] sm:$0xff]  ;;  %s7027_s13 = smov 16  }
  0x12   : > { %v405_v6 = vld [vmem:[%s4074_s28 + $0x8] sm:$0xff]  ;;  %v407_v7 = vld [vmem:[%s4074_s28 + $0x18] sm:$0xf]  ;;  %v404_v8 = vld [vmem:[%s4074_s28] sm:$0xff]  ;;  %s6915_s14 = smov 30   ;;  %s7019_s15 = smov 15  }
  0x13   : > { %432 = vperm.xlu0 %3954, %v414_v4   ;;  %v3871_v9 = vpack.c.bf16 %v407_v7, %v405_v6  ;;  %v406_v10 = vld [vmem:[%s4074_s28 + $0x10] sm:$0xf]  ;;  %v3716_v20 = vld [vmem:[%s6897_s5 + $0x98] sm:$0xff]  ;;  %v3718_v23 = vld [vmem:[%s6897_s5 + $0xa8] sm:$0xff]  ;;  %s6913_s16 = smov 2   ;;  %s7017_s19 = smov 1  }
  0x14   : > { %v3874_v11 = vpack.c.bf16 %v406_v10, %v404_v8  ;;  %v389_v21 = vld [vmem:[%s6894_s2 + $0x10] sm:$0xff]  ;;  %v3720_v25 = vld [vmem:[%s6897_s5 + $0xb8] sm:$0xff]  ;;  %v545_v26 = vld [vmem:[%s6897_s5 + $0x40] sm:$0xff]  ;;  %s6911_s20 = smov 126   ;;  %s7014_s21 = smov 127  }
  0x15   : > { %422 = vperm.xlu1 %3955, %v412_v5   ;;  %3873 = vmatprep.subr.msk.bf16.mxu0 %vm3872_vm2, %v3871_v9  ;;  %v3719_v24 = vld [vmem:[%s6897_s5 + $0xb0] sm:$0xff]  ;;  %v546_v27 = vld [vmem:[%s6897_s5 + $0x48] sm:$0xff]  ;;  %v3721_v28 = vld [vmem:[%s6897_s5 + $0xc0] sm:$0xff]  ;;  %s6909_s22 = smov 98   ;;  %s7012_s23 = smov 113  }
  0x16   : > { %3913 = vmatprep.subr.msk.bf16.mxu1 %vm3872_vm2, %v3871_v9  ;;  %3876 = vmatpush1.bf16.msk.msra.mxu0 %vm3872_vm2, %v3874_v11  ;;  %v3722_v29 = vld [vmem:[%s6897_s5 + $0xc8] sm:$0xff]  ;;  %v569_v30 = vld [vmem:[%s6898_s6] sm:$0xff]  ;;  %v539_v36 = vld [vmem:[%s6897_s5 + $0x10] sm:$0xff]  ;;  %s6907_s24 = smov 96   ;;  %s7005_s26 = smov 112  }
  0x17   : > { %3914 = vmatpush1.bf16.msk.msra.mxu1 %vm3872_vm2, %v3874_v11  ;;  %991 = vperm.xlu0 %3954, %v3723_v12   ;;  %v570_v31 = vld [vmem:[%s6898_s6 + $0x8] sm:$0xff]  ;;  %v537_v32 = vld [vmem:[%s6897_s5] sm:$0xff]  ;;  %v540_v37 = vld [vmem:[%s6897_s5 + $0x18] sm:$0xff]  ;;  %s6905_s27 = smov 94   ;;  %s6919_s25 = smov 111  }
  0x18   : > { %v538_v33 = vld [vmem:[%s6897_s5 + $0x8] sm:$0xff]  ;;  %v3725_v34 = vld [vmem:[%s6897_s5 + $0xe0] sm:$0xff]  ;;  %v3727_v38 = vld [vmem:[%s6897_s5 + $0xf0] sm:$0xff] }
  0x19   : > { %996 = vperm.xlu1 %3955, %v3724_v13   ;;  %3704 = vmatmul.mubr.msk.f32.vlgmr.msra.gmra.mrb[0].mxu0 %vm435_vm3, %v387_v14  ;;  %v3726_v35 = vld [vmem:[%s6897_s5 + $0xe8] sm:$0xff]  ;;  %v3728_v39 = vld [vmem:[%s6897_s5 + $0xf8] sm:$0xff]  ;;  %v541_v40 = vld [vmem:[%s6897_s5 + $0x20] sm:$0xff] }
  0x1a   : > { %3707 = vmatmul.mubr.msk.f32.vlgmr.msra.gmra.mrb[0].mxu1 %vm435_vm3, %v390_v15  ;;  %518 = vmatprep.mubr.f32.mxu0 %v6921_v2  ;;  %v542_v41 = vld [vmem:[%s6897_s5 + $0x28] sm:$0xff]  ;;  %v3729_v42 = vld [vmem:[%s6897_s5 + $0x100] sm:$0xff]  ;;  %v543_v44 = vld [vmem:[%s6897_s5 + $0x30] sm:$0xff] }
  0x1b   : > { %1479 = vmatprep.mubr.f32.mxu1 %v6921_v2  ;;  %1008 = vperm.xlu0 %3954, %v3733_v16   ;;  %v3730_v43 = vld [vmem:[%s6897_s5 + $0x108] sm:$0xff]  ;;  %v544_v45 = vld [vmem:[%s6897_s5 + $0x38] sm:$0xff]  ;;  %v3731_v46 = vld [vmem:[%s6897_s5 + $0x110] sm:$0xff] }
  0x1c   : > { %v3732_v47 = vld [vmem:[%s6897_s5 + $0x118] sm:$0xff]  ;;  %v547_v48 = vld [vmem:[%s6897_s5 + $0x50] sm:$0xff]  ;;  %v549_v50 = vld [vmem:[%s6897_s5 + $0x60] sm:$0xff] }
  0x1d   : > { %1013 = vperm.xlu1 %3955, %v3734_v17   ;;  %3705 = vmatmul.mubr.msk.f32.gmra.mrb[2].mxu0 %vm435_vm3, %v388_v18  ;;  %v548_v49 = vld [vmem:[%s6897_s5 + $0x58] sm:$0xff]  ;;  %v550_v51 = vld [vmem:[%s6897_s5 + $0x68] sm:$0xff]  ;;  %v551_v52 = vld [vmem:[%s6897_s5 + $0x70] sm:$0xff] }
  0x1e   : > { %524 = vmatprep.mubr.f32.mxu0 %v6921_v2  ;;  %v552_v53 = vld [vmem:[%s6897_s5 + $0x78] sm:$0xff]  ;;  %v553_v54 = vld [vmem:[%s6897_s5 + $0x80] sm:$0xff]  ;;  %v554_v55 = vld [vmem:[%s6897_s5 + $0x88] sm:$0xff] }
  0x1f   : > { %1052 = vperm.xlu0 %3954, %v3715_v19  }
  0x21   : > { %1057 = vperm.xlu1 %3955, %v3716_v20   ;;  %3706 = vmatmul.mubr.msk.f32.gmra.mrb[4].mxu0 %vm435_vm3, %v389_v21 }
  0x22   : > { %1700 = vmatprep.mubr.f32.mxu0 %v6921_v2 }
  0x23   : > { %1100 = vperm.xlu0 %3954, %v3717_v22  }
  0x25   : > { %1105 = vperm.xlu1 %3955, %v3718_v23  }
  0x27   : > { %1148 = vperm.xlu0 %3954, %v3719_v24  }
  0x29   : > { %1153 = vperm.xlu1 %3955, %v3720_v25  }
  0x2b   : > { %557 = vperm.xlu0 %3954, %v545_v26  }
  0x2d   : > { %562 = vperm.xlu1 %3955, %v546_v27  }
  0x2f   : > { %1196 = vperm.xlu0 %3954, %v3721_v28  }
  0x31   : > { %1201 = vperm.xlu1 %3955, %v3722_v29  }
  0x33   : > { %573 = vperm.xlu0 %3954, %v569_v30  }
  0x35   : > { %578 = vperm.xlu1 %3955, %v570_v31  }
  0x37   : > { %618 = vperm.xlu0 %3954, %v537_v32  }
  0x39   : > { %623 = vperm.xlu1 %3955, %v538_v33  }
  0x3b   : > { %1244 = vperm.xlu0 %3954, %v3725_v34  }
  0x3d   : > { %1249 = vperm.xlu1 %3955, %v3726_v35  }
  0x3f   : > { %666 = vperm.xlu0 %3954, %v539_v36  }
  0x41   : > { %671 = vperm.xlu1 %3955, %v540_v37  }
  0x43   : > { %1292 = vperm.xlu0 %3954, %v3727_v38  }
  0x45   : > { %1297 = vperm.xlu1 %3955, %v3728_v39  }
  0x47   : > { %714 = vperm.xlu0 %3954, %v541_v40  }
  0x49   : > { %719 = vperm.xlu1 %3955, %v542_v41  }
  0x4b   : > { %1340 = vperm.xlu0 %3954, %v3729_v42  }
  0x4d   : > { %1345 = vperm.xlu1 %3955, %v3730_v43  }
  0x4f   : > { %762 = vperm.xlu0 %3954, %v543_v44  }
  0x51   : > { %767 = vperm.xlu1 %3955, %v544_v45  }
  0x53   : > { %1388 = vperm.xlu0 %3954, %v3731_v46  }
  0x55   : > { %1393 = vperm.xlu1 %3955, %v3732_v47  }
  0x57   : > { %810 = vperm.xlu0 %3954, %v547_v48  }
  0x59   : > { %815 = vperm.xlu1 %3955, %v548_v49  }
  0x5b   : > { %858 = vperm.xlu0 %3954, %v549_v50  }
  0x5d   : > { %863 = vperm.xlu1 %3955, %v550_v51  }
  0x5f   : > { %906 = vperm.xlu0 %3954, %v551_v52  }
  0x61   : > { %911 = vperm.xlu1 %3955, %v552_v53  }
  0x63   : > { %954 = vperm.xlu0 %3954, %v553_v54  }
  0x65   : > { %959 = vperm.xlu1 %3955, %v554_v55  }
  0x8e   : > { %v4223_v56 = vpop.permute.xlu0 %427 }
  0x90   : > { %v418_v57 = vpop.permute.xlu1 %417 }
  0x92   : > { %v433_v58 = vpop.permute.xlu0 %432 }
  0x94   : > { %v4225_v59 = vpop.permute.xlu1 %422 }
  0x96   : > { %v4227_v60 = vpop.permute.xlu0 %991 }
  0x98   : > { %v4229_v61 = vpop.permute.xlu1 %996 }
  0x9a   : > { %v4239_v5 = vpop.permute.xlu0 %1008 }
  0x9c   : > { %v4243_v7 = vpop.permute.xlu1 %1013 }
  0x9e   : > { %v4253_v11 = vpop.permute.xlu0 %1052 }
  0x9f   : > { %7117 = vst [vmem:[#allocation2_spill] sm:$0xff] %v4253_v11 }
  0xa0   : > { %v4255_v12 = vpop.permute.xlu1 %1057 }
  0xa2   : > { %v4265_v13 = vpop.permute.xlu0 %1100 }
  0xa3   : > { %7118 = vst [vmem:[#allocation3_spill] sm:$0xff] %v4265_v13  ;;  %v3783_v13 = vld [vmem:[%s6897_s5 + $0x1e0] sm:$0xff] }
  0xa4   : > { %v4267_v14 = vpop.permute.xlu1 %1105 }
  0xa6   : > { %v4273_v15 = vpop.permute.xlu0 %1148 }
  0xa7   : > { %7119 = vst [vmem:[#allocation4_spill] sm:$0xff] %v4273_v15  ;;  %v3765_v15 = vld [vmem:[%s6897_s5 + $0x160] sm:$0xff] }
  0xa8   : > { %v4275_v16 = vpop.permute.xlu1 %1153 }
  0xaa   : > { %v4285_v17 = vpop.permute.xlu0 %557 }
  0xac   : > { %v4287_v18 = vpop.permute.xlu1 %562 }
  0xae   : > { %v4297_v21 = vpop.permute.xlu0 %1196 }
  0xaf   : > { %7120 = vst [vmem:[#allocation5_spill] sm:$0xff] %v4297_v21  ;;  %v3766_v21 = vld [vmem:[%s6897_s5 + $0x168] sm:$0xff] }
  0xb0   : > { %v4299_v22 = vpop.permute.xlu1 %1201 }
  0xb1   : > { %7121 = vst [vmem:[#allocation6_spill] sm:$0xff] %v4299_v22 }
  0xb2   : > { %v4309_v23 = vpop.permute.xlu0 %573 }
  0xb4   : > { %v4311_v24 = vpop.permute.xlu1 %578 }
  0xb6   : > { %v4317_v25 = vpop.permute.xlu0 %618 }
  0xb8   : > { %v4319_v26 = vpop.permute.xlu1 %623 }
  0xb9   : > { %7122 = vst [vmem:[#allocation7_spill] sm:$0xff] %v4319_v26 }
  0xba   : > { %v4329_v27 = vpop.permute.xlu0 %1244 }
  0xbb   : > { %7123 = vst [vmem:[#allocation8_spill] sm:$0xff] %v4329_v27  ;;  %v3781_v27 = vld [vmem:[%s6897_s5 + $0x1d0] sm:$0xff] }
  0xbc   : > { %v4331_v28 = vpop.permute.xlu1 %1249 }
  0xbd   : > { %7124 = vst [vmem:[#allocation9_spill] sm:$0xff] %v4331_v28 }
  0xbe   : > { %v4340_v30 = vpop.permute.xlu0 %666 }
  0xc0   : > { %v4342_v31 = vpop.permute.xlu1 %671 }
  0xc1   : > { %7125 = vst [vmem:[#allocation10_spill] sm:$0xff] %v4342_v31 }
  0xc2   : > { %v4352_v32 = vpop.permute.xlu0 %1292 }
  0xc3   : > { %7126 = vst [vmem:[#allocation11_spill] sm:$0xff] %v4352_v32  ;;  %v3779_v32 = vld [vmem:[%s6897_s5 + $0x1c0] sm:$0xff] }
  0xc4   : > { %v4354_v33 = vpop.permute.xlu1 %1297 }
  0xc5   : > { %7127 = vst [vmem:[#allocation12_spill] sm:$0xff] %v4354_v33 }
  0xc6   : > { %v4364_v35 = vpop.permute.xlu0 %714 }
  0xc8   : > { %v4366_v36 = vpop.permute.xlu1 %719 }
  0xc9   : > { %7128 = vst [vmem:[#allocation13_spill] sm:$0xff] %v4366_v36 }
  0xca   : > { %v4376_v37 = vpop.permute.xlu0 %1340 }
  0xcb   : > { %7129 = vst [vmem:[#allocation14_spill] sm:$0xff] %v4376_v37  ;;  %v3777_v37 = vld [vmem:[%s6897_s5 + $0x1b0] sm:$0xff] }
  0xcc   : > { %v4378_v38 = vpop.permute.xlu1 %1345 }
  0xcd   : > { %7130 = vst [vmem:[#allocation15_spill] sm:$0xff] %v4378_v38  ;;  %v3776_v38 = vld [vmem:[%s6898_s6 + $0x28] sm:$0xff] }
  0xce   : > { %v4384_v39 = vpop.permute.xlu0 %762 }
  0xd0   : > { %v4386_v40 = vpop.permute.xlu1 %767 }
  0xd1   : > { %7131 = vst [vmem:[#allocation16_spill] sm:$0xff] %v4386_v40  ;;  %v3782_v40 = vld [vmem:[%s6897_s5 + $0x1d8] sm:$0xff] }
  0xd2   : > { %v4396_v41 = vpop.permute.xlu0 %1388 }
  0xd3   : > { %7132 = vst [vmem:[#allocation17_spill] sm:$0xff] %v4396_v41 }
  0xd4   : > { %v4398_v42 = vpop.permute.xlu1 %1393 }
  0xd5   : > { %7133 = vst [vmem:[#allocation18_spill] sm:$0xff] %v4398_v42 }
  0xd6   : > { %v4412_v45 = vpop.permute.xlu0 %810 }
  0xd7   : > { %7134 = vst [vmem:[#allocation19_spill] sm:$0xff] %v4412_v45 }
  0xd8   : > { %v4414_v46 = vpop.permute.xlu1 %815 }
  0xd9   : > { %7135 = vst [vmem:[#allocation20_spill] sm:$0xff] %v4414_v46  ;;  %v3780_v46 = vld [vmem:[%s6897_s5 + $0x1c8] sm:$0xff] }
  0xda   : > { %v4424_v47 = vpop.permute.xlu0 %858 }
  0xdb   : > { %7136 = vst [vmem:[#allocation21_spill] sm:$0xff] %v4424_v47 }
  0xdc   : > { %v4426_v48 = vpop.permute.xlu1 %863 }
  0xdd   : > { %7137 = vst [vmem:[#allocation22_spill] sm:$0xff] %v4426_v48  ;;  %v3778_v48 = vld [vmem:[%s6897_s5 + $0x1b8] sm:$0xff] }
  0xde   : > { %v4432_v49 = vpop.permute.xlu0 %906 }
  0xdf   : > { %7138 = vst [vmem:[#allocation23_spill] sm:$0xff] %v4432_v49 }
  0xe0   : > { %v4434_v50 = vpop.permute.xlu1 %911 }
  0xe1   : > { %7139 = vst [vmem:[#allocation24_spill] sm:$0xff] %v4434_v50  ;;  %v3796_v50 = vld [vmem:[%s6898_s6 + $0x38] sm:$0xff] }
  0xe2   : > { %v4444_v51 = vpop.permute.xlu0 %954 }
  0xe3   : > { %7140 = vst [vmem:[#allocation25_spill] sm:$0xff] %v4444_v51  ;;  %v3786_v51 = vld [vmem:[%s6897_s5 + $0x1f8] sm:$0xff] }
  0xe4   : > { %v4446_v52 = vpop.permute.xlu1 %959 }
  0xe5   : > { %7141 = vst [vmem:[#allocation26_spill] sm:$0xff] %v4446_v52 }
  0xec   : > { %v514_v62 = vpop.f32.mrb[0].mxu0 }
  0xed   : > { %v532_v63 = vpop.f32.mrb[0].mxu1  ;;  %v4231_v0 = vadd.f32 %v514_v62, %v418_v57  ;;  %v516_v3 = vpop.f32.mrb[1].mxu0  ;;  %v1575_v62 = vld [vmem:[%s6900_s8] sm:$0xff] }
  0xee   : > { %v4233_v1 = vadd.f32 %v532_v63, %v433_v58  ;;  %v534_v4 = vpop.f32.mrb[1].mxu1  ;;  %v4289_v19 = vadd.f32 %v516_v3, %v418_v57 }
  0xef   : > { %585 = vrot.lane.b32.xlu0 %v4231_v0, %s7029_s30  ;;  %v4295_v20 = vadd.f32 %v534_v4, %v433_v58  ;;  %v3752_v4 = vld [vmem:[%s6896_s4 + $0x38] sm:$0xff] }
  0xf0   : > { %1022 = vrot.lane.b32.xlu1 %v4233_v1, %s7003_s29  ;;  %v4241_v6 = vpop.f32.mrb[2].mxu0  ;;  %v566_v26 = vmul.f32 %v4285_v17, %v4289_v19 }
  0xf1   : > { %v4245_v8 = vpop.f32.mrb[3].mxu0  ;;  %v4358_v34 = vadd.f32 %v4241_v6, %v4225_v59  ;;  %v3751_v6 = vld [vmem:[%s6896_s4 + $0x30] sm:$0xff]  ;;  %v1002_v11 = vmul.f32 %v4229_v61, %v4295_v20 }
  0xf2   : > { %v4410_v44 = vadd.f32 %v4245_v8, %v4225_v59  ;;  %v1576_v59 = vld [vmem:[%s6900_s8 + $0x8] sm:$0xff] }
  0xf3   : > { %634 = vrot.lane.b32.xlu0 %v4231_v0, %s7027_s13 }
  0xf4   : > { %1070 = vrot.lane.b32.xlu1 %v4233_v1, %s6917_s12  ;;  %v526_v9 = vpop.f32.mrb[4].mxu0 }
  0xf5   : > { %v4251_v10 = vpop.f32.mrb[5].mxu0  ;;  %v4338_v29 = vadd.f32 %v526_v9, %v4223_v56 }
  0xf6   : > { %v4402_v43 = vadd.f32 %v4251_v10, %v4223_v56  ;;  %v3750_v10 = vld [vmem:[%s6896_s4 + $0x28] sm:$0xff] }
  0xf7   : > { %682 = vrot.lane.b32.xlu0 %v4231_v0, %s7019_s15 }
  0xf8   : > { %1118 = vrot.lane.b32.xlu1 %v4233_v1, %s6915_s14 }
  0xfb   : > { %730 = vrot.lane.b32.xlu0 %v4231_v0, %s7017_s19 }
  0xfc   : > { %1166 = vrot.lane.b32.xlu1 %v4233_v1, %s6913_s16 }
  0xff   : > { %778 = vrot.lane.b32.xlu0 %v4231_v0, %s7014_s21 }
 0x100   : > { %1214 = vrot.lane.b32.xlu1 %v4233_v1, %s6911_s20 }
 0x103   : > { %826 = vrot.lane.b32.xlu0 %v4231_v0, %s7012_s23 }
 0x104   : > { %1262 = vrot.lane.b32.xlu1 %v4233_v1, %s6909_s22 }
 0x107   : > { %874 = vrot.lane.b32.xlu0 %v4231_v0, %s7005_s26 }
 0x108   : > { %1310 = vrot.lane.b32.xlu1 %v4233_v1, %s6907_s24 }
 0x10b   : > { %589 = vrot.lane.b32.xlu0 %v4289_v19, %s7029_s30 }
 0x10c   : > { %1358 = vrot.lane.b32.xlu1 %v4233_v1, %s6905_s27 }
 0x10f   : > { %638 = vrot.lane.b32.xlu0 %v4289_v19, %s7027_s13 }
 0x110   : > { %1026 = vrot.lane.b32.xlu1 %v4295_v20, %s7003_s29 }
 0x113   : > { %686 = vrot.lane.b32.xlu0 %v4289_v19, %s7019_s15 }
 0x114   : > { %1074 = vrot.lane.b32.xlu1 %v4295_v20, %s6917_s12 }
 0x117   : > { %734 = vrot.lane.b32.xlu0 %v4289_v19, %s7017_s19 }
 0x118   : > { %1122 = vrot.lane.b32.xlu1 %v4295_v20, %s6915_s14 }
 0x11b   : > { %782 = vrot.lane.b32.xlu0 %v4289_v19, %s7014_s21 }
 0x11c   : > { %1170 = vrot.lane.b32.xlu1 %v4295_v20, %s6913_s16 }
 0x11f   : > { %830 = vrot.lane.b32.xlu0 %v4289_v19, %s7012_s23 }
 0x120   : > { %1218 = vrot.lane.b32.xlu1 %v4295_v20, %s6911_s20 }
 0x123   : > { %878 = vrot.lane.b32.xlu0 %v4289_v19, %s7005_s26 }
 0x124   : > { %1266 = vrot.lane.b32.xlu1 %v4295_v20, %s6909_s22 }
 0x127   : > { %1020 = vrot.lane.b32.xlu0 %v4338_v29, %s7003_s29 }
 0x128   : > { %1314 = vrot.lane.b32.xlu1 %v4295_v20, %s6907_s24 }
 0x12b   : > { %1068 = vrot.lane.b32.xlu0 %v4338_v29, %s6917_s12 }
 0x12c   : > { %1362 = vrot.lane.b32.xlu1 %v4295_v20, %s6905_s27  ;;  %v3775_v20 = vld [vmem:[%s6898_s6 + $0x20] sm:$0xff] }
 0x12f   : > { %1116 = vrot.lane.b32.xlu0 %v4338_v29, %s6915_s14 }
 0x130   : > { %587 = vrot.lane.b32.xlu1 %v4358_v34, %s7029_s30 }
 0x133   : > { %1164 = vrot.lane.b32.xlu0 %v4338_v29, %s6913_s16 }
 0x134   : > { %636 = vrot.lane.b32.xlu1 %v4358_v34, %s7027_s13 }
 0x137   : > { %1212 = vrot.lane.b32.xlu0 %v4338_v29, %s6911_s20 }
 0x138   : > { %684 = vrot.lane.b32.xlu1 %v4358_v34, %s7019_s15 }
 0x13b   : > { %1260 = vrot.lane.b32.xlu0 %v4338_v29, %s6909_s22 }
 0x13c   : > { %732 = vrot.lane.b32.xlu1 %v4358_v34, %s7017_s19 }
 0x13f   : > { %1308 = vrot.lane.b32.xlu0 %v4338_v29, %s6907_s24 }
 0x140   : > { %780 = vrot.lane.b32.xlu1 %v4358_v34, %s7014_s21 }
 0x143   : > { %1356 = vrot.lane.b32.xlu0 %v4338_v29, %s6905_s27 }
 0x144   : > { %828 = vrot.lane.b32.xlu1 %v4358_v34, %s7012_s23 }
 0x147   : > { %1024 = vrot.lane.b32.xlu0 %v4402_v43, %s7003_s29 }
 0x148   : > { %876 = vrot.lane.b32.xlu1 %v4358_v34, %s7005_s26 }
 0x14b   : > { %1072 = vrot.lane.b32.xlu0 %v4402_v43, %s6917_s12  ;;  %s7263_s12 = smov 30  }
 0x14c   : > { %591 = vrot.lane.b32.xlu1 %v4410_v44, %s7029_s30 }
 0x14f   : > { %1120 = vrot.lane.b32.xlu0 %v4402_v43, %s6915_s14  ;;  %s7265_s14 = smov 2  }
 0x150   : > { %640 = vrot.lane.b32.xlu1 %v4410_v44, %s7027_s13 }
 0x153   : > { %1168 = vrot.lane.b32.xlu0 %v4402_v43, %s6913_s16  ;;  %s7266_s16 = smov 126  }
 0x154   : > { %688 = vrot.lane.b32.xlu1 %v4410_v44, %s7019_s15 }
 0x157   : > { %1216 = vrot.lane.b32.xlu0 %v4402_v43, %s6911_s20  ;;  %s7268_s20 = smov 98  }
 0x158   : > { %736 = vrot.lane.b32.xlu1 %v4410_v44, %s7017_s19 }
 0x15b   : > { %1264 = vrot.lane.b32.xlu0 %v4402_v43, %s6909_s22  ;;  %s7270_s22 = smov 96  }
 0x15c   : > { %784 = vrot.lane.b32.xlu1 %v4410_v44, %s7014_s21 }
 0x15f   : > { %1312 = vrot.lane.b32.xlu0 %v4402_v43, %s6907_s24  ;;  %s7271_s24 = smov 94  }
 0x160   : > { %832 = vrot.lane.b32.xlu1 %v4410_v44, %s7012_s23 }
 0x161   : > { %v4454_v54 = vpop.permute.xlu0 %585 }
 0x162   : > { %v4452_v53 = vpop.permute.xlu1 %1022 }
 0x163   : > { %1360 = vrot.lane.b32.xlu0 %v4402_v43, %s6905_s27  ;;  %s7282_s27 = smov 111  }
 0x164   : > { %880 = vrot.lane.b32.xlu1 %v4410_v44, %s7005_s26 }
 0x165   : > { %v4462_v56 = vpop.permute.xlu0 %634 }
 0x166   : > { %v4460_v55 = vpop.permute.xlu1 %1070 }
 0x167   : > { %922 = vrot.lane.b32.xlu0 %v4231_v0, %s6919_s25 }
 0x168   : > { %924 = vrot.lane.b32.xlu1 %v4358_v34, %s6919_s25 }
 0x169   : > { %v4470_v58 = vpop.permute.xlu0 %682 }
 0x16a   : > { %v4468_v57 = vpop.permute.xlu1 %1118 }
 0x16b   : > { %926 = vrot.lane.b32.xlu0 %v4289_v19, %s6919_s25  ;;  %v568_v19 = vmul.f32 %v4287_v18, %v4410_v44 }
 0x16c   : > { %928 = vrot.lane.b32.xlu1 %v4410_v44, %s6919_s25  ;;  %s7261_s25 = smov 32  }
 0x16d   : > { %v4484_v3 = vpop.permute.xlu0 %730 }
 0x16e   : > { %v4482_v63 = vpop.permute.xlu1 %1166 }
 0x16f   : > { %1579 = vperm.xlu0 %3954, %v1575_v62  }
 0x170   : > { %1584 = vperm.xlu1 %3955, %v1576_v59   ;;  %v3749_v59 = vld [vmem:[%s6896_s4 + $0x20] sm:$0xff] }
 0x171   : > { %v4494_v9 = vpop.permute.xlu0 %778 }
 0x172   : > { %v4492_v8 = vpop.permute.xlu1 %1214 }
 0x173   : > { %1616 = vperm.xlu0 %3954, %v3751_v6  }
 0x174   : > { %1621 = vperm.xlu1 %3955, %v3752_v4   ;;  %v3785_v4 = vld [vmem:[%s6897_s5 + $0x1f0] sm:$0xff] }
 0x175   : > { %v4504_v2 = vpop.permute.xlu0 %826 }
 0x176   : > { %v4502_v62 = vpop.permute.xlu1 %1262 }
 0x177   : > { %7142 = vst [vmem:[#allocation27_spill] sm:$0xff] %v4502_v62  ;;  %1606 = vperm.xlu0 %3954, %v3749_v59  }
 0x178   : > { %1611 = vperm.xlu1 %3955, %v3750_v10   ;;  %v3795_v10 = vld [vmem:[%s6898_s6 + $0x30] sm:$0xff] }
 0x179   : > { %v4514_v52 = vpop.permute.xlu0 %874 }
 0x17a   : > { %v4512_v6 = vpop.permute.xlu1 %1310  ;;  %7144 = vst [vmem:[#allocation29_spill] sm:$0xff] %v4514_v52  ;;  %v3787_v52 = vld [vmem:[%s6897_s5 + $0x200] sm:$0xff] }
 0x17b   : > { %7143 = vst [vmem:[#allocation28_spill] sm:$0xff] %v4512_v6  ;;  %2068 = vperm.xlu0 %3954, %v3785_v4  }
 0x17c   : > { %2073 = vperm.xlu1 %3955, %v3786_v51  }
 0x17d   : > { %v4524_v41 = vpop.permute.xlu0 %589 }
 0x17e   : > { %v4522_v59 = vpop.permute.xlu1 %1358 }
 0x17f   : > { %7145 = vst [vmem:[#allocation30_spill] sm:$0xff] %v4522_v59  ;;  %2085 = vperm.xlu0 %3954, %v3795_v10   ;;  %v999_v59 = vmul.f32 %v4227_v60, %v4338_v29  ;;  %v1000_v29 = vmul.f32 %v4227_v60, %v4402_v43  ;;  %v4624_v60 = vadd.f32 %v4243_v7, %v1002_v11  ;;  %v3708_v43 = vld [vmem:[%s6893_s1 + $0x2] sm:$0x3] }
 0x180   : > { %2090 = vperm.xlu1 %3955, %v3796_v50  }
 0x181   : > { %v4531_v4 = vpop.permute.xlu0 %638 }
 0x182   : > { %v4529_v51 = vpop.permute.xlu1 %1026 }
 0x183   : > { %2115 = vperm.xlu0 %3954, %v3777_v37  }
 0x184   : > { %2120 = vperm.xlu1 %3955, %v3778_v48  }
 0x185   : > { %v4541_v10 = vpop.permute.xlu0 %686 }
 0x186   : > { %v4539_v50 = vpop.permute.xlu1 %1074 }
 0x187   : > { %2149 = vperm.xlu0 %3954, %v3779_v32  }
 0x188   : > { %2154 = vperm.xlu1 %3955, %v3780_v46   ;;  %v593_v46 = vlaneseq }
 0x189   : > { %v4551_v37 = vpop.permute.xlu0 %734 }
 0x18a   : > { %v4549_v48 = vpop.permute.xlu1 %1122 }
 0x18b   : > { %2183 = vperm.xlu0 %3954, %v3781_v27   ;;  %v603_v27 = vshrl.u32 %v593_v46, 7 }
 0x18c   : > { %2188 = vperm.xlu1 %3955, %v3782_v40   ;;  %v3784_v40 = vld [vmem:[%s6897_s5 + $0x1e8] sm:$0xff] }
 0x18d   : > { %v4561_v36 = vpop.permute.xlu0 %782 }
 0x18e   : > { %v4559_v32 = vpop.permute.xlu1 %1170 }
 0x18f   : > { %1746 = vperm.xlu0 %3954, %v3765_v15   ;;  %v1001_v15 = vmul.f32 %v4229_v61, %v4233_v1  ;;  %v4595_v1 = vsub.s32 0, %v603_v27 }
 0x190   : > { %1751 = vperm.xlu1 %3955, %v3766_v21   ;;  %v565_v21 = vmul.f32 %v4285_v17, %v4231_v0  ;;  %v567_v0 = vmul.f32 %v4287_v18, %v4358_v34  ;;  %v4593_v17 = vand.u32 127, %v593_v46  ;;  %v600_v18 = vld [vmem:[%s6893_s1] sm:$0x3]  ;;  %v4612_v34 = vadd.f32 %v4309_v23, %v566_v26  ;;  %v3735_v46 = vld [vmem:[%s6893_s1 + $0x10] sm:$0x3]  ;;  %v3758_v26 = vld [vmem:[%s6897_s5 + $0x128] sm:$0xff] }
 0x191   : > { %v4571_v31 = vpop.permute.xlu0 %830  ;;  %v4646_v11 = vrot.slane %v600_v18, %v4595_v1 }
 0x192   : > { %v4569_v42 = vpop.permute.xlu1 %1218  ;;  %v4615_v44 = vadd.f32 %v4309_v23, %v565_v21  ;;  %v3736_v23 = vld [vmem:[%s6893_s1 + $0x12] sm:$0x3]  ;;  %v4636_v21 = vadd.f32 %v4239_v5, %v999_v59  ;;  %vm595_vm4 = vcmp.lt.s32.totalorder %v4593_v17, 17  ;;  %vm1028_vm5 = vcmp.lt.s32.totalorder %v4593_v17, 34 }
 0x193   : > { %2217 = vperm.xlu0 %3954, %v3783_v13   ;;  %7151 = vst [vmem:[#allocation36_spill] sm:$0xff] %v4646_v11  ;;  %vm642_vm6 = vcmp.lt.s32.totalorder %v4593_v17, 16  ;;  %vm1076_vm7 = vcmp.lt.s32.totalorder %v4593_v17, 32  ;;  %vm690_vm8 = vcmp.lt.s32.totalorder %v4593_v17, 15  ;;  %vm7077_vm9 = vcmp.lt.s32.totalorder %v4593_v17, 30 }
 0x194   : > { %2222 = vperm.xlu1 %3955, %v3784_v40   ;;  %v4597_v40 = vsub.s32 1, %v603_v27  ;;  %v4621_v27 = vadd.f32 %v4243_v7, %v1001_v15  ;;  %7148 = vst [vmem:[#allocation33_spill] sm:$0xff] %v4636_v21  ;;  %v4642_v7 = vadd.f32 %v4311_v24, %v567_v0  ;;  %v4666_v0 = vrot.slane %v3735_v46, %v4595_v1 }
 0x195   : > { %v4601_v13 = vpop.permute.xlu0 %878  ;;  %v1032_v45 = vsel %vm1028_vm5, %v4529_v51, %v4452_v53  ;;  %vm738_vm10 = vcmp.lt.s32.totalorder %v4593_v17, 1  ;;  %vm7076_vm11 = vcmp.lt.s32.totalorder %v4593_v17, 2  ;;  %vm786_vm12 = vcmp.lt.s32.totalorder %v4593_v17, 127 }
 0x196   : > { %v4599_v61 = vpop.permute.xlu1 %1266  ;;  %7147 = vst [vmem:[#allocation32_spill] sm:$0xff] %v4601_v13  ;;  %7150 = vst [vmem:[#allocation35_spill] sm:$0xff] %v4642_v7  ;;  %v4649_v15 = vrot.slane %v600_v18, %v4597_v40  ;;  %v4669_v18 = vrot.slane %v3735_v46, %v4597_v40  ;;  %v3710_v7 = vld [vmem:[%s6893_s1 + $0x6] sm:$0x3]  ;;  %v4686_v46 = vrot.slane %v3736_v23, %v4595_v1  ;;  %vm1220_vm13 = vcmp.lt.s32.totalorder %v4593_v17, 126 }
 0x197   : > { %7146 = vst [vmem:[#allocation31_spill] sm:$0xff] %v4599_v61  ;;  %1763 = vperm.xlu0 %3954, %v3775_v20   ;;  %v3709_v20 = vld [vmem:[%s6893_s1 + $0x4] sm:$0x3]  ;;  %7156 = vst [vmem:[#allocation41_spill] sm:$0xff] %v4666_v0  ;;  %v4692_v49 = vrot.slane %v3736_v23, %v4597_v40  ;;  %v3760_v61 = vld [vmem:[%s6897_s5 + $0x138] sm:$0xff]  ;;  %vm834_vm14 = vcmp.lt.s32.totalorder %v4593_v17, 113 }
 0x198   : > { %1768 = vperm.xlu1 %3955, %v3776_v38   ;;  %v4639_v38 = vadd.f32 %v4311_v24, %v568_v19  ;;  %7152 = vst [vmem:[#allocation37_spill] sm:$0xff] %v4649_v15  ;;  %v3757_v24 = vld [vmem:[%s6897_s5 + $0x120] sm:$0xff]  ;;  %v4662_v19 = vadd.f32 %v4239_v5, %v1000_v29  ;;  %7157 = vst [vmem:[#allocation42_spill] sm:$0xff] %v4669_v18  ;;  %v4679_v5 = vrot.slane %v3708_v43, %v4595_v1 }
 0x199   : > { %v4656_v21 = vpop.permute.xlu0 %1020  ;;  %v4682_v29 = vrot.slane %v3708_v43, %v4597_v40  ;;  %7160 = vst [vmem:[#allocation45_spill] sm:$0xff] %v4686_v46  ;;  %7161 = vst [vmem:[#allocation46_spill] sm:$0xff] %v4692_v49  ;;  %v4696_v33 = vrot.slane %v3709_v20, %v4595_v1  ;;  %v4699_v43 = vrot.slane %v3709_v20, %v4597_v40  ;;  %vm6987_vm15 = vcmp.lt.s32.totalorder %v4593_v17, 98 }
 0x19a   : > { %7149 = vst [vmem:[#allocation34_spill] sm:$0xff] %v4639_v38  ;;  %v4654_v59 = vpop.permute.xlu1 %1314  ;;  %7154 = vst [vmem:[#allocation39_spill] sm:$0xff] %v4656_v21  ;;  %v3737_v38 = vld [vmem:[%s6893_s1 + $0x14] sm:$0x3]  ;;  %v3711_v21 = vld [vmem:[%s6893_s1 + $0x8] sm:$0x3]  ;;  %v4715_v20 = vrot.slane %v3710_v7, %v4595_v1 }
 0x19b   : > { %7153 = vst [vmem:[#allocation38_spill] sm:$0xff] %v4654_v59  ;;  %7155 = vst [vmem:[#allocation40_spill] sm:$0xff] %v4662_v19  ;;  %v3738_v19 = vld [vmem:[%s6893_s1 + $0x16] sm:$0x3]  ;;  %1793 = vperm.xlu0 %3954, %v3757_v24   ;;  %v4709_v23 = vrot.slane %v3737_v38, %v4595_v1  ;;  %v4712_v6 = vrot.slane %v3737_v38, %v4597_v40  ;;  %v4718_v59 = vrot.slane %v3710_v7, %v4597_v40  ;;  %v3739_v24 = vld [vmem:[%s6893_s1 + $0x18] sm:$0x3] }
 0x19c   : > { %7158 = vst [vmem:[#allocation43_spill] sm:$0xff] %v4679_v5  ;;  %7159 = vst [vmem:[#allocation44_spill] sm:$0xff] %v4682_v29  ;;  %1798 = vperm.xlu1 %3955, %v3758_v26   ;;  %v3788_v26 = vld [vmem:[%s6897_s5 + $0x208] sm:$0xff]  ;;  %v596_v38 = vsel %vm595_vm4, %v4454_v54, %v4524_v41  ;;  %v598_v7 = vsel %vm595_vm4, %v4524_v41, %v4454_v54  ;;  %v4739_v13 = vrot.slane %v3738_v19, %v4595_v1 }
 0x19d   : > { %7162 = vst [vmem:[#allocation47_spill] sm:$0xff] %v4709_v23  ;;  %7163 = vst [vmem:[#allocation48_spill] sm:$0xff] %v4712_v6  ;;  %v4725_v28 = vpop.permute.xlu0 %1068  ;;  %v4753_v62 = vrot.slane %v3711_v21, %v4595_v1  ;;  %v4756_v41 = vrot.slane %v3711_v21, %v4597_v40  ;;  %v3712_v54 = vld [vmem:[%s6893_s1 + $0xa] sm:$0x3]  ;;  %v4774_v21 = vrot.slane %v3739_v24, %v4597_v40  ;;  %vm882_vm0 = vcmp.lt.s32.totalorder %v4593_v17, 112 }
 0x19e   : > { %v4723_v47 = vpop.permute.xlu1 %1362  ;;  %7165 = vst [vmem:[#allocation50_spill] sm:$0xff] %v4725_v28  ;;  %7166 = vst [vmem:[#allocation51_spill] sm:$0xff] %v4739_v13  ;;  %v1030_v28 = vsel %vm1028_vm5, %v4452_v53, %v4529_v51  ;;  %v645_v53 = vsel %vm642_vm6, %v4531_v4, %v4462_v56  ;;  %v4771_v51 = vrot.slane %v3739_v24, %v4595_v1  ;;  %vm1316_vm1 = vcmp.lt.s32.totalorder %v4593_v17, 96 }
 0x19f   : > { %7164 = vst [vmem:[#allocation49_spill] sm:$0xff] %v4723_v47  ;;  %v4742_v47 = vrot.slane %v3738_v19, %v4597_v40  ;;  %v643_v19 = vsel %vm642_vm6, %v4462_v56, %v4531_v4  ;;  %7169 = vst [vmem:[#allocation54_spill] sm:$0xff] %v4774_v21  ;;  %2251 = vperm.xlu0 %3954, %v3787_v52   ;;  %v612_v22 = vmul.f32 %v4646_v11, %v598_v7  ;;  %v3713_v52 = vld [vmem:[%s6893_s1 + $0xc] sm:$0x3] }
 0x1a0   : > { %2256 = vperm.xlu1 %3955, %v3788_v26   ;;  %7168 = vst [vmem:[#allocation53_spill] sm:$0xff] %v4771_v51  ;;  %v3740_v26 = vld [vmem:[%s6893_s1 + $0x1a] sm:$0x3]  ;;  %v613_v56 = vmul.f32 %v4649_v15, %v596_v38  ;;  %v1078_v4 = vsel %vm1076_vm7, %v4460_v55, %v4539_v50  ;;  %v1080_v24 = vsel %vm1076_vm7, %v4539_v50, %v4460_v55  ;;  %v3759_v38 = vld [vmem:[%s6897_s5 + $0x130] sm:$0xff]  ;;  %vm1364_vm2 = vcmp.lt.s32.totalorder %v4593_v17, 94 }
 0x1a1   : > { %7167 = vst [vmem:[#allocation52_spill] sm:$0xff] %v4742_v47  ;;  %v4797_v51 = vpop.permute.xlu0 %1116  ;;  %v1048_v7 = vmul.f32 %v4666_v0, %v1032_v45  ;;  %v1049_v15 = vmul.f32 %v4669_v18, %v1030_v28  ;;  %v4806_v55 = vrot.slane %v3712_v54, %v4595_v1  ;;  %v4809_v50 = vrot.slane %v3712_v54, %v4597_v40 }
 0x1a2   : > { %v4795_v21 = vpop.permute.xlu1 %587  ;;  %7171 = vst [vmem:[#allocation56_spill] sm:$0xff] %v4797_v51  ;;  %v3741_v51 = vld [vmem:[%s6893_s1 + $0x1c] sm:$0x3]  ;;  %v660_v11 = vmul.f32 %v4679_v5, %v645_v53  ;;  %v4818_v28 = vrot.slane %v3740_v26, %v4595_v1  ;;  %v4821_v45 = vrot.slane %v3740_v26, %v4597_v40  ;;  %v1096_v54 = vmul.f32 %v4686_v46, %v1080_v24  ;;  %v3742_v53 = vld [vmem:[%s6893_s1 + $0x1e] sm:$0x3] }
 0x1a3   : > { %7170 = vst [vmem:[#allocation55_spill] sm:$0xff] %v4795_v21  ;;  %7172 = vst [vmem:[#allocation57_spill] sm:$0xff] %v4806_v55  ;;  %v661_v21 = vmul.f32 %v4682_v29, %v643_v19  ;;  %v1097_v18 = vmul.f32 %v4692_v49, %v1078_v4  ;;  %v4827_v0 = vrot.slane %v3713_v52, %v4595_v1  ;;  %1827 = vperm.xlu0 %3954, %v3759_v38   ;;  %v3789_v38 = vld [vmem:[%s6897_s5 + $0x210] sm:$0xff] }
 0x1a4   : > { %7173 = vst [vmem:[#allocation58_spill] sm:$0xff] %v4809_v50  ;;  %7174 = vst [vmem:[#allocation59_spill] sm:$0xff] %v4818_v28  ;;  %1832 = vperm.xlu1 %3955, %v3760_v61   ;;  %v4830_v19 = vrot.slane %v3713_v52, %v4597_v40  ;;  %v3790_v61 = vld [vmem:[%s6897_s5 + $0x218] sm:$0xff]  ;;  %v626_v26 = vmul.f32 %v4317_v25, %v612_v22  ;;  %v627_v4 = vmul.f32 %v4317_v25, %v613_v56 }
 0x1a5   : > { %7175 = vst [vmem:[#allocation60_spill] sm:$0xff] %v4821_v45  ;;  %7176 = vst [vmem:[#allocation61_spill] sm:$0xff] %v4827_v0  ;;  %v4842_v24 = vrot.slane %v3741_v51, %v4595_v1  ;;  %v4845_v52 = vrot.slane %v3741_v51, %v4597_v40  ;;  %v4849_v5 = vpop.permute.xlu0 %1164  ;;  %v1062_v22 = vmul.f32 %v4255_v12, %v1048_v7 }
 0x1a6   : > { %7177 = vst [vmem:[#allocation62_spill] sm:$0xff] %v4830_v19  ;;  %v4847_v29 = vpop.permute.xlu1 %636  ;;  %7181 = vst [vmem:[#allocation66_spill] sm:$0xff] %v4849_v5  ;;  %v1063_v25 = vmul.f32 %v4255_v12, %v1049_v15  ;;  %v691_v56 = vsel %vm690_vm8, %v4470_v58, %v4541_v10  ;;  %v693_v51 = vsel %vm690_vm8, %v4541_v10, %v4470_v58  ;;  %v3714_v5 = vld [vmem:[%s6893_s1 + $0xe] sm:$0x3] }
 0x1a7   : > { %7178 = vst [vmem:[#allocation63_spill] sm:$0xff] %v4842_v24  ;;  %7179 = vst [vmem:[#allocation64_spill] sm:$0xff] %v4845_v52  ;;  %v675_v7 = vmul.f32 %v4340_v30, %v661_v21  ;;  %v4870_v12 = vrot.slane %v3742_v53, %v4595_v1  ;;  %v4873_v15 = vrot.slane %v3742_v53, %v4597_v40  ;;  %2285 = vperm.xlu0 %3954, %v3789_v38   ;;  %v3762_v10 = vld [vmem:[%s6897_s5 + $0x148] sm:$0xff] }
 0x1a8   : > { %7180 = vst [vmem:[#allocation65_spill] sm:$0xff] %v4847_v29  ;;  %v674_v29 = vmul.f32 %v4340_v30, %v660_v11  ;;  %2290 = vperm.xlu1 %3955, %v3790_v61   ;;  %v1110_v49 = vmul.f32 %v4267_v14, %v1096_v54  ;;  %v1111_v46 = vmul.f32 %v4267_v14, %v1097_v18  ;;  %v3761_v54 = vld [vmem:[%s6897_s5 + $0x140] sm:$0xff] }
 0x1a9   : > { %7182 = vst [vmem:[#allocation67_spill] sm:$0xff] %v4870_v12  ;;  %7183 = vst [vmem:[#allocation68_spill] sm:$0xff] %v4873_v15  ;;  %v1126_v58 = vsel %vm7077_vm9, %v4468_v57, %v4549_v48  ;;  %v1128_v30 = vsel %vm7077_vm9, %v4549_v48, %v4468_v57  ;;  %v708_v11 = vmul.f32 %v4696_v33, %v693_v51  ;;  %v4893_v18 = vpop.permute.xlu0 %1212 }
 0x1aa   : > { %v709_v21 = vmul.f32 %v4699_v43, %v691_v56  ;;  %v4891_v14 = vpop.permute.xlu1 %684  ;;  %7184 = vst [vmem:[#allocation69_spill] sm:$0xff] %v4893_v18  ;;  %v4899_v57 = vrot.slane %v3714_v5, %v4595_v1  ;;  %v4902_v48 = vrot.slane %v3714_v5, %v4597_v40  ;;  %v630_v53 = vadd.f32 %v626_v26, %v4615_v44  ;;  %v3792_v5 = vld [vmem:[%s6897_s5 + $0x228] sm:$0xff] }
 0x1ab   : > { %v631_v61 = vadd.f32 %v627_v4, %v4612_v34  ;;  %v1066_v38 = vadd.f32 %v1062_v22, %v4621_v27  ;;  %v1067_v56 = vadd.f32 %v1063_v25, %v4624_v60  ;;  %v1144_v51 = vmul.f32 %v4709_v23, %v1128_v30  ;;  %1861 = vperm.xlu0 %3954, %v3761_v54  }
 0x1ac   : > { %7185 = vst [vmem:[#allocation70_spill] sm:$0xff] %v4899_v57  ;;  %7186 = vst [vmem:[#allocation71_spill] sm:$0xff] %v4902_v48  ;;  %v1145_v18 = vmul.f32 %v4712_v6, %v1126_v58  ;;  %v739_v1 = vsel %vm738_vm10, %v4484_v3, %v4551_v37  ;;  %v741_v40 = vsel %vm738_vm10, %v4551_v37, %v4484_v3  ;;  %1866 = vperm.xlu1 %3955, %v3762_v10  }
 0x1ad   : > { %v678_v34 = vadd.f32 %v674_v29, %v630_v53  ;;  %v679_v44 = vadd.f32 %v675_v7, %v631_v61  ;;  %v1114_v27 = vadd.f32 %v1110_v49, %v1066_v38  ;;  %v1115_v60 = vadd.f32 %v1111_v46, %v1067_v56  ;;  %v4934_v37 = vpop.permute.xlu0 %1260  ;;  %v3791_v29 = vld [vmem:[%s6897_s5 + $0x220] sm:$0xff]  ;;  %v3763_v61 = vld [vmem:[%s6897_s5 + $0x150] sm:$0xff]  ;;  %v7187_v38 = vld [vmem:[#allocation53_spill] sm:$0xff] }
 0x1ae   : > { %v722_v26 = vmul.f32 %v4364_v35, %v708_v11  ;;  %v723_v4 = vmul.f32 %v4364_v35, %v709_v21  ;;  %v1174_v22 = vsel %vm7076_vm11, %v4482_v63, %v4559_v32  ;;  %v1176_v49 = vsel %vm7076_vm11, %v4559_v32, %v4482_v63  ;;  %v4932_v3 = vpop.permute.xlu1 %732 }
 0x1af   : > { %v756_v35 = vmul.f32 %v4715_v20, %v741_v40  ;;  %v757_v46 = vmul.f32 %v4718_v59, %v739_v1  ;;  %v787_v25 = vsel %vm786_vm12, %v4494_v9, %v4561_v36  ;;  %v789_v63 = vsel %vm786_vm12, %v4561_v36, %v4494_v9  ;;  %2319 = vperm.xlu0 %3954, %v3791_v29   ;;  %v7191_v29 = vld [vmem:[#allocation27_spill] sm:$0xff] }
 0x1b0   : > { %v1158_v32 = vmul.f32 %v4275_v16, %v1144_v51  ;;  %v1159_v7 = vmul.f32 %v4275_v16, %v1145_v18  ;;  %v1222_v58 = vsel %vm1220_vm13, %v4492_v8, %v4569_v42  ;;  %v1224_v30 = vsel %vm1220_vm13, %v4569_v42, %v4492_v8  ;;  %2324 = vperm.xlu1 %3955, %v3792_v5   ;;  %v3764_v42 = vld [vmem:[%s6897_s5 + $0x158] sm:$0xff]  ;;  %v7188_v51 = vld [vmem:[#allocation54_spill] sm:$0xff] }
 0x1b1   : > { %v1192_v10 = vmul.f32 %v4739_v13, %v1176_v49  ;;  %v1193_v36 = vmul.f32 %v4742_v47, %v1174_v22  ;;  %v835_v16 = vsel %vm834_vm14, %v4504_v2, %v4571_v31  ;;  %v837_v9 = vsel %vm834_vm14, %v4571_v31, %v4504_v2  ;;  %v4977_v53 = vpop.permute.xlu0 %1308  ;;  %v7190_v49 = vld [vmem:[#allocation31_spill] sm:$0xff] }
 0x1b2   : > { %v726_v8 = vadd.f32 %v722_v26, %v678_v34  ;;  %v727_v11 = vadd.f32 %v723_v4, %v679_v44  ;;  %v804_v21 = vmul.f32 %v4753_v62, %v787_v25  ;;  %v805_v18 = vmul.f32 %v4756_v41, %v789_v63  ;;  %v4975_v54 = vpop.permute.xlu1 %780  ;;  %v7189_v26 = vld [vmem:[#allocation6_spill] sm:$0xff]  ;;  %v7193_v63 = vld [vmem:[#allocation32_spill] sm:$0xff] }
 0x1b3   : > { %v770_v2 = vmul.f32 %v4384_v39, %v756_v35  ;;  %v771_v31 = vmul.f32 %v4384_v39, %v757_v46  ;;  %v1240_v56 = vmul.f32 %v7187_v38, %v1222_v58  ;;  %v1241_v1 = vmul.f32 %v7188_v51, %v1224_v30  ;;  %1895 = vperm.xlu0 %3954, %v3763_v61   ;;  %v7192_v35 = vld [vmem:[#allocation19_spill] sm:$0xff]  ;;  %v7196_v61 = vld [vmem:[#allocation21_spill] sm:$0xff] }
 0x1b4   : > { %v1162_v40 = vadd.f32 %v1158_v32, %v1114_v27  ;;  %v1163_v34 = vadd.f32 %v1159_v7, %v1115_v60  ;;  %v852_v44 = vmul.f32 %v4806_v55, %v835_v16  ;;  %v853_v5 = vmul.f32 %v4809_v50, %v837_v9  ;;  %1900 = vperm.xlu1 %3955, %v3764_v42   ;;  %v3794_v60 = vld [vmem:[%s6897_s5 + $0x238] sm:$0xff] }
 0x1b5   : > { %v1206_v4 = vmul.f32 %v7189_v26, %v1192_v10  ;;  %v1207_v22 = vmul.f32 %v7189_v26, %v1193_v36  ;;  %v1270_v39 = vsel %vm6987_vm15, %v7191_v29, %v7190_v49  ;;  %v1272_v27 = vsel %vm6987_vm15, %v7190_v49, %v7191_v29  ;;  %v7194_v32 = vld [vmem:[#allocation29_spill] sm:$0xff]  ;;  %v5014_v10 = vpop.permute.xlu0 %1356  ;;  %v3793_v36 = vld [vmem:[%s6897_s5 + $0x230] sm:$0xff] }
 0x1b6   : > { %v818_v46 = vmul.f32 %v7192_v35, %v804_v21  ;;  %v819_v25 = vmul.f32 %v7192_v35, %v805_v18  ;;  %v883_v7 = vsel %vm882_vm0, %v7194_v32, %v7193_v63  ;;  %v885_v58 = vsel %vm882_vm0, %v7193_v63, %v7194_v32  ;;  %v5012_v30 = vpop.permute.xlu1 %828  ;;  %v7195_v42 = vld [vmem:[#allocation9_spill] sm:$0xff] }
 0x1b7   : > { %v774_v16 = vadd.f32 %v770_v2, %v726_v8  ;;  %v775_v9 = vadd.f32 %v771_v31, %v727_v11  ;;  %v1254_v21 = vmul.f32 %v7195_v42, %v1240_v56  ;;  %v1255_v18 = vmul.f32 %v7195_v42, %v1241_v1  ;;  %2353 = vperm.xlu0 %3954, %v3793_v36   ;;  %v3768_v11 = vld [vmem:[%s6897_s5 + $0x178] sm:$0xff]  ;;  %v7197_v56 = vld [vmem:[#allocation38_spill] sm:$0xff]  ;;  %v7198_v1 = vld [vmem:[#allocation28_spill] sm:$0xff] }
 0x1b8   : > { %v866_v26 = vmul.f32 %v7196_v61, %v852_v44  ;;  %v867_v49 = vmul.f32 %v7196_v61, %v853_v5  ;;  %v1288_v29 = vmul.f32 %v4818_v28, %v1270_v39  ;;  %v1289_v35 = vmul.f32 %v4821_v45, %v1272_v27  ;;  %2358 = vperm.xlu1 %3955, %v3794_v60   ;;  %v7199_v27 = vld [vmem:[#allocation39_spill] sm:$0xff] }
 0x1b9   : > { %v1210_v63 = vadd.f32 %v1206_v4, %v1162_v40  ;;  %v1211_v32 = vadd.f32 %v1207_v22, %v1163_v34  ;;  %v900_v48 = vmul.f32 %v4827_v0, %v883_v7  ;;  %v901_v8 = vmul.f32 %v4830_v19, %v885_v58  ;;  %v1025_v5 = vpop.permute.xlu0 %1024  ;;  %v3767_v4 = vld [vmem:[%s6897_s5 + $0x170] sm:$0xff] }
 0x1ba   : > { %v822_v2 = vadd.f32 %v818_v46, %v774_v16  ;;  %v823_v31 = vadd.f32 %v819_v25, %v775_v9  ;;  %v1318_v44 = vsel %vm1316_vm1, %v7198_v1, %v7197_v56  ;;  %v1320_v40 = vsel %vm1316_vm1, %v7197_v56, %v7198_v1  ;;  %v5038_v34 = vpop.permute.xlu1 %876  ;;  %v7200_v58 = vld [vmem:[#allocation12_spill] sm:$0xff]  ;;  %v7201_v9 = vld [vmem:[#allocation23_spill] sm:$0xff]  ;;  %v3769_v56 = vld [vmem:[%s6897_s5 + $0x180] sm:$0xff] }
 0x1bb   : > { %v1258_v22 = vadd.f32 %v1254_v21, %v1210_v63  ;;  %v1259_v39 = vadd.f32 %v1255_v18, %v1211_v32  ;;  %v1029_v60 = vsel %vm1028_vm5, %v7199_v27, %v1025_v5  ;;  %v1031_v46 = vsel %vm1028_vm5, %v1025_v5, %v7199_v27  ;;  %1929 = vperm.xlu0 %3954, %v3767_v4   ;;  %v3770_v63 = vld [vmem:[%s6897_s5 + $0x188] sm:$0xff]  ;;  %v7207_v5 = vld [vmem:[#allocation50_spill] sm:$0xff] }
 0x1bc   : > { %v870_v25 = vadd.f32 %v866_v26, %v822_v2  ;;  %v871_v7 = vadd.f32 %v867_v49, %v823_v31  ;;  %v1302_v36 = vmul.f32 %v7200_v58, %v1288_v29  ;;  %v1303_v16 = vmul.f32 %v7200_v58, %v1289_v35  ;;  %1934 = vperm.xlu1 %3955, %v3768_v11   ;;  %v7202_v26 = vld [vmem:[#allocation49_spill] sm:$0xff]  ;;  %v7203_v49 = vld [vmem:[#allocation30_spill] sm:$0xff]  ;;  %v7206_v1 = vld [vmem:[#allocation55_spill] sm:$0xff] }
 0x1bd   : > { %v914_v42 = vmul.f32 %v7201_v9, %v900_v48  ;;  %v915_v21 = vmul.f32 %v7201_v9, %v901_v8  ;;  %v1336_v18 = vmul.f32 %v4842_v24, %v1318_v44  ;;  %v1337_v61 = vmul.f32 %v4845_v52, %v1320_v40  ;;  %v7204_v35 = vld [vmem:[#allocation41_spill] sm:$0xff]  ;;  %v7205_v8 = vld [vmem:[#allocation42_spill] sm:$0xff]  ;;  %v1073_v31 = vpop.permute.xlu0 %1072  ;;  %v7208_v58 = vld [vmem:[#allocation36_spill] sm:$0xff] }
 0x1be   : > { %v1366_v29 = vsel %vm1364_vm2, %v7203_v49, %v7202_v26  ;;  %v1368_v48 = vsel %vm1364_vm2, %v7202_v26, %v7203_v49  ;;  %v1046_v32 = vmul.f32 %v7204_v35, %v1031_v46  ;;  %v1047_v11 = vmul.f32 %v7205_v8, %v1029_v60  ;;  %v592_v2 = vpop.permute.xlu1 %591  ;;  %v7209_v26 = vld [vmem:[#allocation37_spill] sm:$0xff]  ;;  %v7212_v35 = vld [vmem:[#allocation46_spill] sm:$0xff] }
 0x1bf   : > { %v597_v44 = vsel %vm595_vm4, %v7206_v1, %v592_v2  ;;  %v599_v40 = vsel %vm595_vm4, %v592_v2, %v7206_v1  ;;  %v1077_v4 = vsel %vm1076_vm7, %v7207_v5, %v1073_v31  ;;  %v1079_v27 = vsel %vm1076_vm7, %v1073_v31, %v7207_v5  ;;  %v7211_v2 = vld [vmem:[#allocation45_spill] sm:$0xff]  ;;  %1963 = vperm.xlu0 %3954, %v3769_v56   ;;  %v3771_v56 = vld [vmem:[%s6897_s5 + $0x190] sm:$0xff] }
 0x1c0   : > { %v5083_v60 = vadd.f32 %v1302_v36, %v1258_v22  ;;  %v5085_v46 = vadd.f32 %v1303_v16, %v1259_v39  ;;  %v614_v9 = vmul.f32 %v7208_v58, %v599_v40  ;;  %v615_v49 = vmul.f32 %v7209_v26, %v597_v44  ;;  %1968 = vperm.xlu1 %3955, %v3770_v63   ;;  %v3772_v31 = vld [vmem:[%s6897_s5 + $0x198] sm:$0xff]  ;;  %v7214_v39 = vld [vmem:[#allocation15_spill] sm:$0xff]  ;;  %v7216_v40 = vld [vmem:[#allocation2_spill] sm:$0xff] }
 0x1c1   : > { %v5089_v8 = vadd.f32 %v914_v42, %v870_v25  ;;  %v1094_v1 = vmul.f32 %v7211_v2, %v1079_v27  ;;  %v1095_v57 = vmul.f32 %v7212_v35, %v1077_v4  ;;  %v5096_v22 = vadd.f32 %v915_v21, %v871_v7  ;;  %v1121_v44 = vpop.permute.xlu0 %1120  ;;  %v7217_v21 = vld [vmem:[#allocation65_spill] sm:$0xff]  ;;  %v7219_v27 = vld [vmem:[#allocation43_spill] sm:$0xff]  ;;  %v7220_v35 = vld [vmem:[#allocation44_spill] sm:$0xff] }
 0x1c2   : > { %v5099_v36 = vmul.f32 %v7214_v39, %v1336_v18  ;;  %v5102_v16 = vmul.f32 %v7214_v39, %v1337_v61  ;;  %v1384_v25 = vmul.f32 %v4870_v12, %v1366_v29  ;;  %v1385_v42 = vmul.f32 %v4873_v15, %v1368_v48  ;;  %v641_v63 = vpop.permute.xlu1 %640  ;;  %v7218_v29 = vld [vmem:[#allocation7_spill] sm:$0xff] }
 0x1c3   : > { %7210 = vst [vmem:[#allocation6_spill] sm:$0xff] %v5089_v8  ;;  %7213 = vst [vmem:[#allocation31_spill] sm:$0xff] %v5096_v22  ;;  %v1060_v5 = vmul.f32 %v7216_v40, %v1046_v32  ;;  %v1061_v7 = vmul.f32 %v7216_v40, %v1047_v11  ;;  %v644_v18 = vsel %vm642_vm6, %v7217_v21, %v641_v63  ;;  %v7221_v32 = vld [vmem:[#allocation3_spill] sm:$0xff]  ;;  %v7222_v40 = vld [vmem:[#allocation56_spill] sm:$0xff]  ;;  %1997 = vperm.xlu0 %3954, %v3771_v56  }
 0x1c4   : > { %7215 = vst [vmem:[#allocation27_spill] sm:$0xff] %v5102_v16  ;;  %v646_v61 = vsel %vm642_vm6, %v641_v63, %v7217_v21  ;;  %v628_v48 = vmul.f32 %v7218_v29, %v614_v9  ;;  %v629_v4 = vmul.f32 %v7218_v29, %v615_v49  ;;  %v663_v2 = vmul.f32 %v7220_v35, %v644_v18  ;;  %v3774_v9 = vld [vmem:[%s6897_s5 + $0x1a8] sm:$0xff]  ;;  %v7223_v49 = vld [vmem:[#allocation10_spill] sm:$0xff] }
 0x1c5   : > { %v662_v39 = vmul.f32 %v7219_v27, %v646_v61  ;;  %2002 = vperm.xlu1 %3955, %v3772_v31   ;;  %v1108_v26 = vmul.f32 %v7221_v32, %v1094_v1  ;;  %v1109_v11 = vmul.f32 %v7221_v32, %v1095_v57  ;;  %v1125_v58 = vsel %vm7077_vm9, %v7222_v40, %v1121_v44  ;;  %v1169_v61 = vpop.permute.xlu0 %1168  ;;  %v3773_v29 = vld [vmem:[%s6897_s5 + $0x1a0] sm:$0xff]  ;;  %v7225_v32 = vld [vmem:[#allocation33_spill] sm:$0xff] }
 0x1c6   : > { %v1127_v63 = vsel %vm7077_vm9, %v1121_v44, %v7222_v40  ;;  %v677_v31 = vmul.f32 %v7223_v49, %v663_v2  ;;  %v1143_v57 = vmul.f32 %v4712_v6, %v1125_v58  ;;  %v689_v18 = vpop.permute.xlu1 %688  ;;  %v1064_v40 = vadd.f32 %v1060_v5, %v7225_v32  ;;  %v7227_v6 = vld [vmem:[#allocation35_spill] sm:$0xff]  ;;  %v7228_v35 = vld [vmem:[#allocation34_spill] sm:$0xff] }
 0x1c7   : > { %v676_v21 = vmul.f32 %v7223_v49, %v662_v39  ;;  %v1142_v1 = vmul.f32 %v4709_v23, %v1127_v63  ;;  %v692_v44 = vsel %vm690_vm8, %v4891_v14, %v689_v18  ;;  %v694_v56 = vsel %vm690_vm8, %v689_v18, %v4891_v14  ;;  %v7224_v39 = vld [vmem:[#allocation66_spill] sm:$0xff]  ;;  %v7226_v63 = vld [vmem:[#allocation40_spill] sm:$0xff]  ;;  %2031 = vperm.xlu0 %3954, %v3773_v29  }
 0x1c8   : > { %v1173_v2 = vsel %vm7076_vm11, %v7224_v39, %v1169_v61  ;;  %v1175_v58 = vsel %vm7076_vm11, %v1169_v61, %v7224_v39  ;;  %v1065_v49 = vadd.f32 %v1061_v7, %v7226_v63  ;;  %v632_v23 = vadd.f32 %v628_v48, %v7227_v6  ;;  %v7229_v16 = vld [vmem:[#allocation18_spill] sm:$0xff] }
 0x1c9   : > { %v633_v27 = vadd.f32 %v629_v4, %v7228_v35  ;;  %2036 = vperm.xlu1 %3955, %v3774_v9   ;;  %v710_v22 = vmul.f32 %v4696_v33, %v694_v56  ;;  %v711_v14 = vmul.f32 %v4699_v43, %v692_v44  ;;  %v1190_v18 = vmul.f32 %v4739_v13, %v1175_v58  ;;  %v1217_v35 = vpop.permute.xlu0 %1216  ;;  %v7230_v56 = vld [vmem:[#allocation4_spill] sm:$0xff] }
 0x1ca   : > { %v1191_v8 = vmul.f32 %v4742_v47, %v1173_v2  ;;  %v5160_v61 = vmul.f32 %v7229_v16, %v1384_v25  ;;  %v5163_v5 = vmul.f32 %v7229_v16, %v1385_v42  ;;  %v1112_v7 = vadd.f32 %v1108_v26, %v1064_v40  ;;  %v737_v48 = vpop.permute.xlu1 %736  ;;  %v7231_v16 = vld [vmem:[#allocation69_spill] sm:$0xff] }
 0x1cb   : > { %v1113_v6 = vadd.f32 %v1109_v11, %v1065_v49  ;;  %v680_v4 = vadd.f32 %v676_v21, %v632_v23  ;;  %v681_v9 = vadd.f32 %v677_v31, %v633_v27  ;;  %v1156_v39 = vmul.f32 %v7230_v56, %v1142_v1  ;;  %v7232_v42 = vld [vmem:[#allocation13_spill] sm:$0xff] }
 0x1cc   : > { %v1157_v44 = vmul.f32 %v7230_v56, %v1143_v57  ;;  %v740_v29 = vsel %vm738_vm10, %v4932_v3, %v737_v48  ;;  %v742_v25 = vsel %vm738_vm10, %v737_v48, %v4932_v3  ;;  %v1221_v26 = vsel %vm1220_vm13, %v7231_v16, %v1217_v35  ;;  %v7233_v21 = vld [vmem:[#allocation5_spill] sm:$0xff]  ;;  %v7234_v48 = vld [vmem:[#allocation8_spill] sm:$0xff] }
 0x1cd   : > { %v1223_v23 = vsel %vm1220_vm13, %v1217_v35, %v7231_v16  ;;  %v724_v27 = vmul.f32 %v7232_v42, %v710_v22  ;;  %v725_v11 = vmul.f32 %v7232_v42, %v711_v14  ;;  %v1204_v31 = vmul.f32 %v7233_v21, %v1190_v18  ;;  %v1265_v40 = vpop.permute.xlu0 %1264  ;;  %v3854_v47 = vld [vmem:[%s6898_s6 + $0x58] sm:$0xff] }
 0x1ce   : > { %v1205_v1 = vmul.f32 %v7233_v21, %v1191_v8  ;;  %v758_v57 = vmul.f32 %v4715_v20, %v742_v25  ;;  %v759_v3 = vmul.f32 %v4718_v59, %v740_v29  ;;  %v1238_v2 = vmul.f32 %v7187_v38, %v1221_v26  ;;  %v785_v32 = vpop.permute.xlu1 %784  ;;  %v3808_v38 = vld [vmem:[%s6896_s4 + $0x48] sm:$0xff] }
 0x1cf   : > { %v1239_v58 = vmul.f32 %v7188_v51, %v1223_v23  ;;  %v788_v22 = vsel %vm786_vm12, %v4975_v54, %v785_v32  ;;  %v790_v63 = vsel %vm786_vm12, %v785_v32, %v4975_v54  ;;  %v1269_v8 = vsel %vm6987_vm15, %v4934_v37, %v1265_v40 }
 0x1d0   : > { %v1271_v49 = vsel %vm6987_vm15, %v1265_v40, %v4934_v37  ;;  %v1160_v14 = vadd.f32 %v1156_v39, %v1112_v7  ;;  %v1161_v18 = vadd.f32 %v1157_v44, %v1113_v6  ;;  %v1252_v35 = vmul.f32 %v7234_v48, %v1238_v2  ;;  %v7235_v7 = vld [vmem:[#allocation16_spill] sm:$0xff]  ;;  %v7236_v44 = vld [vmem:[#allocation11_spill] sm:$0xff] }
 0x1d1   : > { %v1253_v56 = vmul.f32 %v7234_v48, %v1239_v58  ;;  %v806_v29 = vmul.f32 %v4753_v62, %v788_v22  ;;  %v807_v25 = vmul.f32 %v4756_v41, %v790_v63  ;;  %v1286_v54 = vmul.f32 %v4818_v28, %v1269_v8  ;;  %v1313_v37 = vpop.permute.xlu0 %1312  ;;  %v3810_v28 = vld [vmem:[%s6896_s4 + $0x58] sm:$0xff] }
 0x1d2   : > { %v1287_v16 = vmul.f32 %v4821_v45, %v1271_v49  ;;  %v728_v26 = vadd.f32 %v724_v27, %v680_v4  ;;  %v729_v23 = vadd.f32 %v725_v11, %v681_v9  ;;  %v1208_v42 = vadd.f32 %v1204_v31, %v1160_v14  ;;  %v833_v32 = vpop.permute.xlu1 %832 }
 0x1d3   : > { %v1209_v21 = vadd.f32 %v1205_v1, %v1161_v18  ;;  %v772_v6 = vmul.f32 %v7235_v7, %v758_v57  ;;  %v773_v39 = vmul.f32 %v7235_v7, %v759_v3  ;;  %v1300_v2 = vmul.f32 %v7236_v44, %v1286_v54  ;;  %v7237_v1 = vld [vmem:[#allocation20_spill] sm:$0xff] }
 0x1d4   : > { %v1301_v58 = vmul.f32 %v7236_v44, %v1287_v16  ;;  %v836_v40 = vsel %vm834_vm14, %v5012_v30, %v833_v32  ;;  %v838_v4 = vsel %vm834_vm14, %v833_v32, %v5012_v30  ;;  %v1317_v9 = vsel %vm1316_vm1, %v4977_v53, %v1313_v37  ;;  %v7239_v44 = vld [vmem:[#allocation22_spill] sm:$0xff] }
 0x1d5   : > { %v1319_v27 = vsel %vm1316_vm1, %v1313_v37, %v4977_v53  ;;  %vm930_vm15 = vcmp.lt.s32.totalorder %v4593_v17, 111  ;;  %v1256_v11 = vadd.f32 %v1252_v35, %v1208_v42  ;;  %v1257_v31 = vadd.f32 %v1253_v56, %v1209_v21  ;;  %v1361_v14 = vpop.permute.xlu0 %1360 }
 0x1d6   : > { %v820_v57 = vmul.f32 %v7237_v1, %v806_v29  ;;  %v821_v3 = vmul.f32 %v7237_v1, %v807_v25  ;;  %v854_v22 = vmul.f32 %v4806_v55, %v836_v40  ;;  %v855_v30 = vmul.f32 %v4809_v50, %v838_v4  ;;  %v881_v49 = vpop.permute.xlu1 %880  ;;  %v7238_v25 = vld [vmem:[#allocation14_spill] sm:$0xff]  ;;  %v7295_v55 = vld [vmem:[#allocation37_spill] sm:$0xff] }
 0x1d7   : > { %v1334_v63 = vmul.f32 %v4842_v24, %v1317_v9  ;;  %v1335_v8 = vmul.f32 %v4845_v52, %v1319_v27  ;;  %v884_v53 = vsel %vm882_vm0, %v5038_v34, %v881_v49  ;;  %v886_v18 = vsel %vm882_vm0, %v881_v49, %v5038_v34  ;;  %v7240_v9 = vld [vmem:[#allocation17_spill] sm:$0xff] }
 0x1d8   : > { %v1365_v48 = vsel %vm1364_vm2, %v5014_v10, %v1361_v14  ;;  %v1367_v35 = vsel %vm1364_vm2, %v1361_v14, %v5014_v10  ;;  %v1304_v56 = vadd.f32 %v1300_v2, %v1256_v11  ;;  %v1305_v29 = vadd.f32 %v1301_v58, %v1257_v31 }
 0x1d9   : > { %v1348_v54 = vmul.f32 %v7238_v25, %v1334_v63  ;;  %v1349_v16 = vmul.f32 %v7238_v25, %v1335_v8  ;;  %v902_v42 = vmul.f32 %v4827_v0, %v884_v53  ;;  %v903_v21 = vmul.f32 %v4830_v19, %v886_v18  ;;  %v923_v58 = vpop.permute.xlu0 %922  ;;  %v3823_v19 = vld [vmem:[%s6897_s5 + $0x280] sm:$0xff]  ;;  %v3824_v0 = vld [vmem:[%s6897_s5 + $0x288] sm:$0xff] }
 0x1da   : > { %v1382_v34 = vmul.f32 %v4870_v12, %v1365_v48  ;;  %v1383_v32 = vmul.f32 %v4873_v15, %v1367_v35  ;;  %v776_v37 = vadd.f32 %v772_v6, %v728_v26  ;;  %v777_v7 = vadd.f32 %v773_v39, %v729_v23  ;;  %v925_v2 = vpop.permute.xlu1 %924  ;;  %v7241_v26 = vld [vmem:[#allocation27_spill] sm:$0xff]  ;;  %v7242_v6 = vld [vmem:[#allocation24_spill] sm:$0xff] }
 0x1db   : > { %v868_v40 = vmul.f32 %v7239_v44, %v854_v22  ;;  %v869_v10 = vmul.f32 %v7239_v44, %v855_v30  ;;  %v1352_v4 = vadd.f32 %v1348_v54, %v1304_v56  ;;  %v1353_v31 = vadd.f32 %v1349_v16, %v1305_v29  ;;  %v7244_v29 = vld [vmem:[#allocation71_spill] sm:$0xff]  ;;  %v7246_v44 = vld [vmem:[#allocation25_spill] sm:$0xff] }
 0x1dc   : > { %v1396_v27 = vmul.f32 %v7240_v9, %v1382_v34  ;;  %v1397_v11 = vmul.f32 %v7240_v9, %v1383_v32  ;;  %v1354_v1 = vadd.f32 %v5099_v36, %v5083_v60  ;;  %v824_v63 = vadd.f32 %v820_v57, %v776_v37  ;;  %v7245_v32 = vld [vmem:[#allocation26_spill] sm:$0xff]  ;;  %v3743_v9 = vld [vmem:[%s6899_s7 + $0x10] sm:$0xff] }
 0x1dd   : > { %v825_v8 = vadd.f32 %v821_v3, %v777_v7  ;;  %v1355_v23 = vadd.f32 %v7241_v26, %v5085_v46  ;;  %v916_v39 = vmul.f32 %v7242_v6, %v902_v42  ;;  %v917_v22 = vmul.f32 %v7242_v6, %v903_v21  ;;  %v927_v35 = vpop.permute.xlu0 %926  ;;  %v7243_v3 = vld [vmem:[#allocation70_spill] sm:$0xff]  ;;  %v3744_v26 = vld [vmem:[%s6899_s7 + $0x18] sm:$0xff]  ;;  %v1405_v6 = vld [vmem:[%s6899_s7 + $0x8] sm:$0xff] }
 0x1de   : > { %v1400_v30 = vadd.f32 %v1396_v27, %v1352_v4  ;;  %v1401_v49 = vadd.f32 %v1397_v11, %v1353_v31  ;;  %v1402_v14 = vadd.f32 %v5160_v61, %v1354_v1  ;;  %v872_v53 = vadd.f32 %v868_v40, %v824_v63  ;;  %v929_v48 = vpop.permute.xlu1 %928  ;;  %v7248_v27 = vld [vmem:[#allocation31_spill] sm:$0xff] }
 0x1df   : > { %v873_v18 = vadd.f32 %v869_v10, %v825_v8  ;;  %v1403_v56 = vadd.f32 %v5163_v5, %v1355_v23  ;;  %v932_v60 = vsel %vm930_vm15, %v925_v2, %v929_v48  ;;  %v934_v46 = vsel %vm930_vm15, %v929_v48, %v925_v2  ;;  %v1404_v23 = vld [vmem:[%s6899_s7] sm:$0xff] }
 0x1e0   : > { %v931_v36 = vsel %vm930_vm15, %v923_v58, %v927_v35  ;;  %v933_v57 = vsel %vm930_vm15, %v927_v35, %v923_v58  ;;  %v950_v61 = vmul.f32 %v7243_v3, %v932_v60  ;;  %v951_v25 = vmul.f32 %v7244_v29, %v934_v46  ;;  %v7247_v58 = vld [vmem:[#allocation6_spill] sm:$0xff] }
 0x1e1   : > { %v948_v54 = vmul.f32 %v7243_v3, %v931_v36  ;;  %v949_v5 = vmul.f32 %v7244_v29, %v933_v57  ;;  %v920_v16 = vadd.f32 %v916_v39, %v872_v53  ;;  %v3877_v42 = vpack.c.bf16 %v1403_v56, %v1401_v49 }
 0x1e2   : > { %v3879_v21 = vpack.c.bf16 %v1402_v14, %v1400_v30  ;;  %v921_v34 = vadd.f32 %v917_v22, %v873_v18  ;;  %v964_v37 = vmul.f32 %v7245_v32, %v950_v61  ;;  %v965_v7 = vmul.f32 %v7245_v32, %v951_v25  ;;  %v393_v32 = vld [vmem:[%s6895_s3 + $0x10] sm:$0xff] }
 0x1e3   : > { %v962_v40 = vmul.f32 %v7246_v44, %v948_v54  ;;  %v963_v10 = vmul.f32 %v7246_v44, %v949_v5  ;;  %3878 = vmatprep.subr.bf16.mxu1 %v3877_v42  ;;  %v7249_v8 = vmov 0.0  }
 0x1e4   : > { %v968_v2 = vadd.f32 %v964_v37, %v920_v16  ;;  %3880 = vmatpush1.bf16.msra.mxu1 %v3879_v21  ;;  %v969_v31 = vadd.f32 %v965_v7, %v921_v34  ;;  %v391_v21 = vld [vmem:[%s6895_s3] sm:$0xff]  ;;  %v392_v34 = vld [vmem:[%s6895_s3 + $0x8] sm:$0xff]  ;;  %v394_v37 = vld [vmem:[%s6895_s3 + $0x18] sm:$0xff] }
 0x1e5   : > { %v966_v4 = vadd.f32 %v962_v40, %v7247_v58  ;;  %v967_v11 = vadd.f32 %v963_v10, %v7248_v27 }
 0x1e7   : > { %v3881_v1 = vpack.c.bf16 %v969_v31, %v967_v11  ;;  %v3883_v63 = vpack.c.bf16 %v968_v2, %v966_v4  ;;  %3745 = vmatmul.mubr.msk.f32.vlgmr.msra.gmra.mrb[2].mxu1 %vm435_vm3, %v3743_v9 }
 0x1e8   : > { %1485 = vmatprep.mubr.f32.mxu1 %v7249_v8 }
 0x1e9   : > { %3882 = vmatprep.subr.bf16.mxu1 %v3881_v1 }
 0x1ea   : > { %3884 = vmatpush1.bf16.msra.mxu1 %v3883_v63 }
 0x1eb   : > { %3746 = vmatmul.mubr.msk.f32.gmra.mrb[4].mxu1 %vm435_vm3, %v3744_v26 }
 0x1ec   : > { %1562 = vmatprep.mubr.f32.mxu1 %v7249_v8 }
 0x1ee   : > { %v1580_v39 = vpop.permute.xlu0 %1579 }
 0x1ef   : > { %3747 = vmatmul.mubr.msk.f32.vlgmr.msra.gmra.mrb[2].mxu1 %vm435_vm3, %v1404_v23  ;;  %v1585_v53 = vpop.permute.xlu1 %1584 }
 0x1f0   : > { %1568 = vmatprep.mubr.f32.mxu1 %v7249_v8 }
 0x1f2   : > { %v5316_v7 = vpop.permute.xlu0 %1616 }
 0x1f3   : > { %3748 = vmatmul.mubr.msk.f32.gmra.mrb[4].mxu1 %vm435_vm3, %v1405_v6  ;;  %v5318_v44 = vpop.permute.xlu1 %1621 }
 0x1f4   : > { %2445 = vmatprep.mubr.f32.mxu1 %v7249_v8 }
 0x1f6   : > { %v1607_v40 = vpop.permute.xlu0 %1606 }
 0x1f7   : > { %v1612_v10 = vpop.permute.xlu1 %1611 }
 0x1fa   : > { %v5320_v2 = vpop.permute.xlu0 %2068 }
 0x1fb   : > { %v5324_v27 = vpop.permute.xlu1 %2073 }
 0x1fe   : > { %v5328_v31 = vpop.permute.xlu0 %2085 }
 0x1ff   : > { %v5336_v23 = vpop.permute.xlu1 %2090 }
 0x200   : > { %7250 = vst [vmem:[#allocation19_spill] sm:$0xff] %v5336_v23 }
 0x2c2   : > { %v1564_v22 = vpop.f32.mrb[2].mxu1 }
 0x2c3   : > { %v1587_v30 = vadd.f32 %v1580_v39, %v1564_v22  ;;  %v1566_v49 = vpop.f32.mrb[3].mxu1 }
 0x2c4   : > { %v1588_v14 = vadd.f32 %v1580_v39, %v1566_v49  ;;  %v5340_v39 = vpop.permute.xlu0 %2115  ;;  %v5348_v49 = vpop.permute.xlu1 %2120 }
 0x2c5   : > { %v1591_v48 = vmul.f32 0.2, %v1587_v30  ;;  %7251 = vst [vmem:[#allocation32_spill] sm:$0xff] %v5340_v39  ;;  %7252 = vst [vmem:[#allocation29_spill] sm:$0xff] %v5348_v49  ;;  %v3839_v49 = vld [vmem:[%s6897_s5 + $0x2f0] sm:$0xff]  ;;  %v3841_v39 = vld [vmem:[%s6897_s5 + $0x300] sm:$0xff] }
 0x2c6   : > { %v1570_v18 = vpop.f32.mrb[4].mxu1  ;;  %v1592_v60 = vmul.f32 0.2, %v1588_v14 }
 0x2c7   : > { %v1589_v35 = vadd.f32 %v1585_v53, %v1570_v18  ;;  %v1572_v56 = vpop.f32.mrb[5].mxu1  ;;  %v1595_v61 = vmax.f32 %v1587_v30, %v1591_v48 }
 0x2c8   : > { %v1590_v46 = vadd.f32 %v1585_v53, %v1572_v56  ;;  %v1596_v54 = vmax.f32 %v1588_v14, %v1592_v60  ;;  %v5354_v14 = vpop.permute.xlu0 %2149  ;;  %v5360_v53 = vpop.permute.xlu1 %2154 }
 0x2c9   : > { %v1593_v36 = vmul.f32 0.2, %v1589_v35  ;;  %7253 = vst [vmem:[#allocation9_spill] sm:$0xff] %v5354_v14  ;;  %7254 = vst [vmem:[#allocation21_spill] sm:$0xff] %v5360_v53  ;;  %v3838_v14 = vld [vmem:[%s6897_s5 + $0x2e8] sm:$0xff] }
 0x2ca   : > { %v1594_v57 = vmul.f32 0.2, %v1590_v46 }
 0x2cb   : > { %v1597_v25 = vmax.f32 %v1589_v35, %v1593_v36 }
 0x2cc   : > { %v1598_v5 = vmax.f32 %v1590_v46, %v1594_v57  ;;  %v5362_v18 = vpop.permute.xlu0 %2183  ;;  %v5368_v48 = vpop.permute.xlu1 %2188 }
 0x2cd   : > { %v3887_v16 = vpack.c.bf16 %v1597_v25, %v1595_v61  ;;  %7255 = vst [vmem:[#allocation38_spill] sm:$0xff] %v5362_v18  ;;  %7256 = vst [vmem:[#allocation28_spill] sm:$0xff] %v5368_v48  ;;  %v3844_v48 = vld [vmem:[%s6897_s5 + $0x318] sm:$0xff] }
 0x2ce   : > { %v3885_v42 = vpack.c.bf16 %v1598_v5, %v1596_v54  ;;  %v3836_v18 = vld [vmem:[%s6897_s5 + $0x2d8] sm:$0xff] }
 0x2d0   : > { %3886 = vmatprep.subr.bf16.mxu0 %v3885_v42  ;;  %v5374_v35 = vpop.permute.xlu0 %1746  ;;  %v5382_v60 = vpop.permute.xlu1 %1751 }
 0x2d1   : > { %3888 = vmatpush1.bf16.msra.mxu0 %v3887_v16 }
 0x2d4   : > { %3753 = vmatmul.mubr.msk.f32.vlgmr.msra.gmra.mrb[6].mxu0 %vm435_vm3, %v391_v21  ;;  %v5386_v36 = vpop.permute.xlu0 %2217  ;;  %v5392_v57 = vpop.permute.xlu1 %2222 }
 0x2d5   : > { %1706 = vmatprep.mubr.f32.mxu0 %v7249_v8  ;;  %7257 = vst [vmem:[#allocation39_spill] sm:$0xff] %v5386_v36  ;;  %7258 = vst [vmem:[#allocation12_spill] sm:$0xff] %v5392_v57 }
 0x2d8   : > { %3754 = vmatmul.mubr.msk.f32.gmra.mrb[8].mxu0 %vm435_vm3, %v392_v34  ;;  %v5398_v61 = vpop.permute.xlu0 %1763  ;;  %v5404_v25 = vpop.permute.xlu1 %1768 }
 0x2d9   : > { %1712 = vmatprep.mubr.f32.mxu0 %v7249_v8 }
 0x2dc   : > { %3755 = vmatmul.mubr.msk.f32.gmra.mrb[10].mxu0 %vm435_vm3, %v393_v32  ;;  %v5406_v54 = vpop.permute.xlu0 %1793  ;;  %v5412_v5 = vpop.permute.xlu1 %1798 }
 0x2dd   : > { %1718 = vmatprep.mubr.f32.mxu0 %v7249_v8 }
 0x2e0   : > { %3756 = vmatmul.mubr.msk.f32.gmra.mrb[12].mxu0 %vm435_vm3, %v394_v37  ;;  %v5418_v16 = vpop.permute.xlu0 %2251  ;;  %v5424_v42 = vpop.permute.xlu1 %2256 }
 0x2e1   : > { %2667 = vmatprep.mubr.f32.mxu0 %v7249_v8  ;;  %7259 = vst [vmem:[#allocation23_spill] sm:$0xff] %v5418_v16  ;;  %7260 = vst [vmem:[#allocation49_spill] sm:$0xff] %v5424_v42  ;;  %v3809_v42 = vld [vmem:[%s6896_s4 + $0x50] sm:$0xff] }
 0x2e4   : > { %v5429_v34 = vpop.permute.xlu0 %1827  ;;  %v5438_v37 = vpop.permute.xlu1 %1832 }
 0x3a7   : > { %v1702_v58 = vpop.f32.mrb[6].mxu0 }
 0x3a8   : > { %v5322_v4 = vadd.f32 %v1702_v58, %v1607_v40  ;;  %v1704_v9 = vpop.f32.mrb[7].mxu0 }
 0x3a9   : > { %v5376_v56 = vadd.f32 %v1704_v9, %v1607_v40  ;;  %v5444_v40 = vpop.permute.xlu0 %2285 }
 0x3aa   : > { %1775 = vrot.lane.b32.xlu0 %v5322_v4, %s7029_s30  ;;  %7262 = vst [vmem:[#allocation30_spill] sm:$0xff] %v5444_v40  ;;  %v3806_v40 = vld [vmem:[%s6900_s8 + $0x18] sm:$0xff] }
 0x3ab   : > { %v1708_v11 = vpop.f32.mrb[8].mxu0 }
 0x3ac   : > { %v5330_v1 = vadd.f32 %v1708_v11, %v1612_v10  ;;  %v1710_v63 = vpop.f32.mrb[9].mxu0 }
 0x3ad   : > { %v5384_v46 = vadd.f32 %v1710_v63, %v1612_v10  ;;  %v5450_v10 = vpop.permute.xlu1 %2290  ;;  %v5452_v58 = vpop.permute.xlu0 %1861 }
 0x3ae   : > { %1777 = vrot.lane.b32.xlu1 %v5330_v1, %s7029_s30  ;;  %1809 = vrot.lane.b32.xlu0 %v5322_v4, %s7027_s13  ;;  %7264 = vst [vmem:[#allocation55_spill] sm:$0xff] %v5450_v10  ;;  %v3805_v10 = vld [vmem:[%s6900_s8 + $0x10] sm:$0xff] }
 0x3af   : > { %v1714_v26 = vpop.f32.mrb[10].mxu0 }
 0x3b0   : > { %v5338_v6 = vpop.f32.mrb[11].mxu0  ;;  %v5427_v21 = vadd.f32 %v1714_v26, %v5316_v7 }
 0x3b1   : > { %v5458_v9 = vpop.permute.xlu1 %1866  ;;  %v5464_v11 = vpop.permute.xlu0 %2319  ;;  %v5488_v29 = vadd.f32 %v5338_v6, %v5316_v7 }
 0x3b2   : > { %1811 = vrot.lane.b32.xlu1 %v5330_v1, %s7027_s13  ;;  %1843 = vrot.lane.b32.xlu0 %v5322_v4, %s7019_s15  ;;  %7267 = vst [vmem:[#allocation50_spill] sm:$0xff] %v5464_v11 }
 0x3b3   : > { %v1720_v22 = vpop.f32.mrb[12].mxu0 }
 0x3b4   : > { %v5346_v30 = vpop.f32.mrb[13].mxu0  ;;  %v5436_v32 = vadd.f32 %v1720_v22, %v5318_v44 }
 0x3b5   : > { %v5470_v63 = vpop.permute.xlu1 %2324  ;;  %v5472_v26 = vpop.permute.xlu0 %1895 }
 0x3b6   : > { %1845 = vrot.lane.b32.xlu1 %v5330_v1, %s7019_s15  ;;  %1877 = vrot.lane.b32.xlu0 %v5322_v4, %s7017_s19  ;;  %7269 = vst [vmem:[#allocation15_spill] sm:$0xff] %v5470_v63  ;;  %v5498_v63 = vadd.f32 %v5346_v30, %v5318_v44 }
 0x3b9   : > { %v5478_v22 = vpop.permute.xlu1 %1900  ;;  %v5484_v8 = vpop.permute.xlu0 %2353 }
 0x3ba   : > { %1879 = vrot.lane.b32.xlu1 %v5330_v1, %s7017_s19  ;;  %1911 = vrot.lane.b32.xlu0 %v5322_v4, %s7014_s21  ;;  %7272 = vst [vmem:[#allocation2_spill] sm:$0xff] %v5484_v8 }
 0x3bd   : > { %v5494_v3 = vpop.permute.xlu1 %2358  ;;  %v5500_v11 = vpop.permute.xlu0 %1929 }
 0x3be   : > { %1913 = vrot.lane.b32.xlu1 %v5330_v1, %s7014_s21  ;;  %1945 = vrot.lane.b32.xlu0 %v5322_v4, %s7012_s23  ;;  %7273 = vst [vmem:[#allocation65_spill] sm:$0xff] %v5494_v3  ;;  %7274 = vst [vmem:[#allocation7_spill] sm:$0xff] %v5500_v11 }
 0x3c1   : > { %v5506_v7 = vpop.permute.xlu1 %1934  ;;  %v5512_v6 = vpop.permute.xlu0 %1963 }
 0x3c2   : > { %1947 = vrot.lane.b32.xlu1 %v5330_v1, %s7012_s23  ;;  %1979 = vrot.lane.b32.xlu0 %v5322_v4, %s7005_s26  ;;  %7275 = vst [vmem:[#allocation3_spill] sm:$0xff] %v5506_v7  ;;  %7276 = vst [vmem:[#allocation56_spill] sm:$0xff] %v5512_v6  ;;  %v3834_v6 = vld [vmem:[%s6898_s6 + $0x48] sm:$0xff] }
 0x3c5   : > { %v5518_v44 = vpop.permute.xlu1 %1968  ;;  %v5520_v30 = vpop.permute.xlu0 %1997 }
 0x3c6   : > { %1981 = vrot.lane.b32.xlu1 %v5330_v1, %s7005_s26  ;;  %1779 = vrot.lane.b32.xlu0 %v5376_v56, %s7029_s30  ;;  %7277 = vst [vmem:[#allocation10_spill] sm:$0xff] %v5518_v44  ;;  %7278 = vst [vmem:[#allocation66_spill] sm:$0xff] %v5520_v30 }
 0x3c9   : > { %v5526_v3 = vpop.permute.xlu1 %2002  ;;  %v5532_v8 = vpop.permute.xlu0 %2031 }
 0x3ca   : > { %1781 = vrot.lane.b32.xlu1 %v5384_v46, %s7029_s30  ;;  %1813 = vrot.lane.b32.xlu0 %v5376_v56, %s7027_s13  ;;  %7279 = vst [vmem:[#allocation33_spill] sm:$0xff] %v5526_v3  ;;  %7280 = vst [vmem:[#allocation40_spill] sm:$0xff] %v5532_v8  ;;  %s7366_s30 = smov 15  }
 0x3cd   : > { %v5538_v30 = vpop.permute.xlu1 %2036 }
 0x3ce   : > { %1815 = vrot.lane.b32.xlu1 %v5384_v46, %s7027_s13  ;;  %1847 = vrot.lane.b32.xlu0 %v5376_v56, %s7019_s15  ;;  %7281 = vst [vmem:[#allocation35_spill] sm:$0xff] %v5538_v30  ;;  %s7368_s13 = smov 1  }
 0x3d2   : > { %1849 = vrot.lane.b32.xlu1 %v5384_v46, %s7019_s15  ;;  %1881 = vrot.lane.b32.xlu0 %v5376_v56, %s7017_s19  ;;  %s7375_s15 = smov 112  }
 0x3d6   : > { %1883 = vrot.lane.b32.xlu1 %v5384_v46, %s7017_s19  ;;  %1915 = vrot.lane.b32.xlu0 %v5376_v56, %s7014_s21  ;;  %s7380_s19 = smov 34  }
 0x3da   : > { %1917 = vrot.lane.b32.xlu1 %v5384_v46, %s7014_s21  ;;  %1949 = vrot.lane.b32.xlu0 %v5376_v56, %s7012_s23  ;;  %s7361_s21 = smov 17  }
 0x3de   : > { %1951 = vrot.lane.b32.xlu1 %v5384_v46, %s7012_s23  ;;  %1983 = vrot.lane.b32.xlu0 %v5376_v56, %s7005_s26  ;;  %s7363_s23 = smov 16  }
 0x3e2   : > { %1985 = vrot.lane.b32.xlu1 %v5384_v46, %s7005_s26  ;;  %2097 = vrot.lane.b32.xlu0 %v5427_v21, %s7003_s29  ;;  %s7373_s26 = smov 113  }
 0x3e6   : > { %2099 = vrot.lane.b32.xlu1 %v5436_v32, %s7003_s29  ;;  %2131 = vrot.lane.b32.xlu0 %v5427_v21, %s7261_s25 }
 0x3ea   : > { %2133 = vrot.lane.b32.xlu1 %v5436_v32, %s7261_s25  ;;  %2165 = vrot.lane.b32.xlu0 %v5427_v21, %s7263_s12 }
 0x3ee   : > { %2167 = vrot.lane.b32.xlu1 %v5436_v32, %s7263_s12  ;;  %2199 = vrot.lane.b32.xlu0 %v5427_v21, %s7265_s14 }
 0x3f2   : > { %2201 = vrot.lane.b32.xlu1 %v5436_v32, %s7265_s14  ;;  %2233 = vrot.lane.b32.xlu0 %v5427_v21, %s7266_s16 }
 0x3f6   : > { %2235 = vrot.lane.b32.xlu1 %v5436_v32, %s7266_s16  ;;  %2267 = vrot.lane.b32.xlu0 %v5427_v21, %s7268_s20 }
 0x3fa   : > { %2269 = vrot.lane.b32.xlu1 %v5436_v32, %s7268_s20  ;;  %2301 = vrot.lane.b32.xlu0 %v5427_v21, %s7270_s22 }
 0x3fe   : > { %2303 = vrot.lane.b32.xlu1 %v5436_v32, %s7270_s22  ;;  %2335 = vrot.lane.b32.xlu0 %v5427_v21, %s7271_s24 }
 0x402   : > { %2337 = vrot.lane.b32.xlu1 %v5436_v32, %s7271_s24  ;;  %2101 = vrot.lane.b32.xlu0 %v5488_v29, %s7003_s29 }
 0x406   : > { %2103 = vrot.lane.b32.xlu1 %v5498_v63, %s7003_s29  ;;  %2135 = vrot.lane.b32.xlu0 %v5488_v29, %s7261_s25  ;;  %s7370_s29 = smov 127  }
 0x40a   : > { %2137 = vrot.lane.b32.xlu1 %v5498_v63, %s7261_s25  ;;  %2169 = vrot.lane.b32.xlu0 %v5488_v29, %s7263_s12 }
 0x40e   : > { %2171 = vrot.lane.b32.xlu1 %v5498_v63, %s7263_s12  ;;  %2203 = vrot.lane.b32.xlu0 %v5488_v29, %s7265_s14 }
 0x412   : > { %2205 = vrot.lane.b32.xlu1 %v5498_v63, %s7265_s14  ;;  %2237 = vrot.lane.b32.xlu0 %v5488_v29, %s7266_s16 }
 0x416   : > { %2239 = vrot.lane.b32.xlu1 %v5498_v63, %s7266_s16  ;;  %2271 = vrot.lane.b32.xlu0 %v5488_v29, %s7268_s20 }
 0x41a   : > { %2273 = vrot.lane.b32.xlu1 %v5498_v63, %s7268_s20  ;;  %2305 = vrot.lane.b32.xlu0 %v5488_v29, %s7270_s22 }
 0x41c   : > { %v5540_v15 = vpop.permute.xlu0 %1775 }
 0x41e   : > { %2307 = vrot.lane.b32.xlu1 %v5498_v63, %s7270_s22  ;;  %2339 = vrot.lane.b32.xlu0 %v5488_v29, %s7271_s24 }
 0x420   : > { %v5546_v3 = vpop.permute.xlu1 %1777  ;;  %v5548_v12 = vpop.permute.xlu0 %1809 }
 0x422   : > { %2341 = vrot.lane.b32.xlu1 %v5498_v63, %s7271_s24  ;;  %2013 = vrot.lane.b32.xlu0 %v5322_v4, %s7282_s27 }
 0x424   : > { %v5554_v8 = vpop.permute.xlu1 %1811  ;;  %v5556_v30 = vpop.permute.xlu0 %1843 }
 0x426   : > { %2015 = vrot.lane.b32.xlu1 %v5330_v1, %s7282_s27  ;;  %2017 = vrot.lane.b32.xlu0 %v5376_v56, %s7282_s27 }
 0x428   : > { %v5565_v52 = vpop.permute.xlu1 %1845  ;;  %v5567_v24 = vpop.permute.xlu0 %1877 }
 0x42a   : > { %2019 = vrot.lane.b32.xlu1 %v5384_v46, %s7282_s27  ;;  %2546 = vperm.xlu0 %3954, %v3805_v10   ;;  %v3807_v10 = vld [vmem:[%s6896_s4 + $0x40] sm:$0xff] }
 0x42c   : > { %v5577_v16 = vpop.permute.xlu1 %1879  ;;  %v5579_v45 = vpop.permute.xlu0 %1911 }
 0x42e   : > { %2551 = vperm.xlu1 %3955, %v3806_v40   ;;  %2583 = vperm.xlu0 %3954, %v3809_v42   ;;  %v3843_v42 = vld [vmem:[%s6897_s5 + $0x310] sm:$0xff] }
 0x430   : > { %v5587_v57 = vpop.permute.xlu1 %1913  ;;  %v5589_v51 = vpop.permute.xlu0 %1945 }
 0x432   : > { %2588 = vperm.xlu1 %3955, %v3810_v28   ;;  %2573 = vperm.xlu0 %3954, %v3807_v10   ;;  %v3853_v28 = vld [vmem:[%s6898_s6 + $0x50] sm:$0xff] }
 0x434   : > { %v5597_v40 = vpop.permute.xlu1 %1947  ;;  %v5599_v36 = vpop.permute.xlu0 %1979 }
 0x435   : > { %7283 = vst [vmem:[#allocation34_spill] sm:$0xff] %v5597_v40  ;;  %7284 = vst [vmem:[#allocation18_spill] sm:$0xff] %v5599_v36  ;;  %v3842_v36 = vld [vmem:[%s6897_s5 + $0x308] sm:$0xff]  ;;  %v3833_v40 = vld [vmem:[%s6898_s6 + $0x40] sm:$0xff] }
 0x436   : > { %2578 = vperm.xlu1 %3955, %v3808_v38   ;;  %3035 = vperm.xlu0 %3954, %v3843_v42   ;;  %v3835_v42 = vld [vmem:[%s6897_s5 + $0x2d0] sm:$0xff] }
 0x438   : > { %v5607_v10 = vpop.permute.xlu1 %1981  ;;  %v1780_v44 = vpop.permute.xlu0 %1779 }
 0x439   : > { %7285 = vst [vmem:[#allocation4_spill] sm:$0xff] %v5607_v10  ;;  %v3840_v10 = vld [vmem:[%s6897_s5 + $0x2f8] sm:$0xff] }
 0x43a   : > { %3040 = vperm.xlu1 %3955, %v3844_v48   ;;  %3052 = vperm.xlu0 %3954, %v3853_v28   ;;  %v3837_v28 = vld [vmem:[%s6897_s5 + $0x2e0] sm:$0xff] }
 0x43c   : > { %v1782_v13 = vpop.permute.xlu1 %1781  ;;  %v5612_v38 = vpop.permute.xlu0 %1813 }
 0x43e   : > { %3057 = vperm.xlu1 %3955, %v3854_v47   ;;  %3082 = vperm.xlu0 %3954, %v3835_v42  }
 0x440   : > { %v5620_v53 = vpop.permute.xlu1 %1815  ;;  %v5622_v48 = vpop.permute.xlu0 %1847 }
 0x442   : > { %3087 = vperm.xlu1 %3955, %v3836_v18   ;;  %3116 = vperm.xlu0 %3954, %v3837_v28  }
 0x444   : > { %v5630_v47 = vpop.permute.xlu1 %1849  ;;  %v5632_v42 = vpop.permute.xlu0 %1881 }
 0x446   : > { %3121 = vperm.xlu1 %3955, %v3838_v14   ;;  %3150 = vperm.xlu0 %3954, %v3839_v49  }
 0x448   : > { %v5640_v18 = vpop.permute.xlu1 %1883  ;;  %v5642_v28 = vpop.permute.xlu0 %1915 }
 0x44a   : > { %3155 = vperm.xlu1 %3955, %v3840_v10   ;;  %2713 = vperm.xlu0 %3954, %v3823_v19  }
 0x44c   : > { %v5650_v14 = vpop.permute.xlu1 %1917  ;;  %v5652_v49 = vpop.permute.xlu0 %1949 }
 0x44e   : > { %2718 = vperm.xlu1 %3955, %v3824_v0   ;;  %3184 = vperm.xlu0 %3954, %v3841_v39  }
 0x450   : > { %v5660_v10 = vpop.permute.xlu1 %1951  ;;  %v5662_v19 = vpop.permute.xlu0 %1983 }
 0x451   : > { %7286 = vst [vmem:[#allocation69_spill] sm:$0xff] %v5660_v10  ;;  %7287 = vst [vmem:[#allocation13_spill] sm:$0xff] %v5662_v19  ;;  %v3815_v10 = vld [vmem:[%s6897_s5 + $0x240] sm:$0xff]  ;;  %v3816_v19 = vld [vmem:[%s6897_s5 + $0x248] sm:$0xff] }
 0x452   : > { %3189 = vperm.xlu1 %3955, %v3842_v36   ;;  %2730 = vperm.xlu0 %3954, %v3833_v40  }
 0x454   : > { %v5670_v0 = vpop.permute.xlu1 %1985  ;;  %v5672_v39 = vpop.permute.xlu0 %2097 }
 0x455   : > { %7288 = vst [vmem:[#allocation5_spill] sm:$0xff] %v5670_v0  ;;  %7289 = vst [vmem:[#allocation8_spill] sm:$0xff] %v5672_v39  ;;  %v3845_v0 = vld [vmem:[%s6897_s5 + $0x320] sm:$0xff]  ;;  %v1783_v39 = vsel %vm595_vm4, %v5540_v15, %v1780_v44 }
 0x456   : > { %2735 = vperm.xlu1 %3955, %v3834_v6   ;;  %2760 = vperm.xlu0 %3954, %v3815_v10   ;;  %v1785_v6 = vsel %vm595_vm4, %v1780_v44, %v5540_v15  ;;  %v3846_v10 = vld [vmem:[%s6897_s5 + $0x328] sm:$0xff]  ;;  %v3817_v15 = vld [vmem:[%s6897_s5 + $0x250] sm:$0xff]  ;;  %v1755_v44 = vmul.f32 %v5374_v35, %v5376_v56  ;;  %v1788_v11 = vmul.f32 %v1783_v39, %v7295_v55 }
 0x457   : > { %v2076_v39 = vmul.f32 %v5320_v2, %v5427_v21  ;;  %v1818_v21 = vsel %vm642_vm6, %v5554_v8, %v5620_v53 }
 0x458   : > { %v5680_v36 = vpop.permute.xlu1 %2099  ;;  %v5682_v40 = vpop.permute.xlu0 %2131 }
 0x459   : > { %7290 = vst [vmem:[#allocation16_spill] sm:$0xff] %v5680_v36  ;;  %7291 = vst [vmem:[#allocation11_spill] sm:$0xff] %v5682_v40  ;;  %v1784_v40 = vsel %vm595_vm4, %v5546_v3, %v1782_v13  ;;  %v1786_v36 = vsel %vm595_vm4, %v1782_v13, %v5546_v3  ;;  %v1757_v13 = vmul.f32 %v5382_v60, %v5384_v46  ;;  %v3847_v46 = vld [vmem:[%s6897_s5 + $0x330] sm:$0xff] }
 0x45a   : > { %2765 = vperm.xlu1 %3955, %v3816_v19   ;;  %3218 = vperm.xlu0 %3954, %v3845_v0   ;;  %v1754_v19 = vmul.f32 %v5374_v35, %v5322_v4  ;;  %v7294_v0 = vld [vmem:[#allocation36_spill] sm:$0xff]  ;;  %v1756_v3 = vmul.f32 %v5382_v60, %v5330_v1  ;;  %v1817_v4 = vsel %vm642_vm6, %v5548_v12, %v5612_v38  ;;  %v3818_v1 = vld [vmem:[%s6897_s5 + $0x258] sm:$0xff] }
 0x45b   : > { %v1787_v50 = vmul.f32 %v1785_v6, %v7294_v0  ;;  %v1819_v35 = vsel %vm642_vm6, %v5612_v38, %v5548_v12  ;;  %v1772_v12 = vadd.f32 %v5398_v61, %v1755_v44  ;;  %v1802_v6 = vmul.f32 %v5406_v54, %v1788_v11  ;;  %v3848_v11 = vld [vmem:[%s6897_s5 + $0x338] sm:$0xff] }
 0x45c   : > { %v5702_v7 = vpop.permute.xlu1 %2133  ;;  %v5704_v23 = vpop.permute.xlu0 %2165  ;;  %v1771_v38 = vadd.f32 %v5398_v61, %v1754_v19 }
 0x45d   : > { %7292 = vst [vmem:[#allocation20_spill] sm:$0xff] %v5702_v7  ;;  %7293 = vst [vmem:[#allocation14_spill] sm:$0xff] %v5704_v23  ;;  %v1789_v23 = vmul.f32 %v1786_v36, %v7294_v0  ;;  %v1790_v7 = vmul.f32 %v1784_v40, %v7295_v55  ;;  %v2077_v36 = vmul.f32 %v5320_v2, %v5488_v29  ;;  %v7297_v55 = vld [vmem:[#allocation44_spill] sm:$0xff] }
 0x45e   : > { %3223 = vperm.xlu1 %3955, %v3846_v10   ;;  %2794 = vperm.xlu0 %3954, %v3817_v15   ;;  %v1801_v40 = vmul.f32 %v5406_v54, %v1787_v50  ;;  %v7296_v10 = vld [vmem:[#allocation43_spill] sm:$0xff]  ;;  %v1822_v0 = vmul.f32 %v1817_v4, %v7297_v55  ;;  %v1820_v29 = vsel %vm642_vm6, %v5620_v53, %v5554_v8  ;;  %v3819_v8 = vld [vmem:[%s6897_s5 + $0x260] sm:$0xff] }
 0x45f   : > { %v1821_v15 = vmul.f32 %v1819_v35, %v7296_v10  ;;  %v1774_v2 = vadd.f32 %v5404_v25, %v1757_v13  ;;  %v1773_v50 = vadd.f32 %v5404_v25, %v1756_v3  ;;  %v1803_v61 = vmul.f32 %v5412_v5, %v1789_v23 }
 0x460   : > { %v5732_v56 = vpop.permute.xlu1 %2167  ;;  %v5734_v60 = vpop.permute.xlu0 %2199  ;;  %v1804_v54 = vmul.f32 %v5412_v5, %v1790_v7  ;;  %v5772_v53 = vadd.f32 %v5328_v31, %v2076_v39  ;;  %v5775_v23 = vadd.f32 %v5328_v31, %v2077_v36  ;;  %v5779_v25 = vmul.f32 %v5324_v27, %v5436_v32 }
 0x461   : > { %v5783_v5 = vmul.f32 %v5324_v27, %v5498_v63  ;;  %v1823_v7 = vmul.f32 %v1820_v29, %v7296_v10  ;;  %v1824_v13 = vmul.f32 %v1818_v21, %v7297_v55  ;;  %v1851_v3 = vsel %vm690_vm8, %v5556_v30, %v5622_v48 }
 0x462   : > { %2799 = vperm.xlu1 %3955, %v3818_v1   ;;  %3252 = vperm.xlu0 %3954, %v3847_v46   ;;  %v1853_v31 = vsel %vm690_vm8, %v5622_v48, %v5556_v30  ;;  %v1805_v32 = vadd.f32 %v1801_v40, %v1771_v38  ;;  %v1806_v4 = vadd.f32 %v1802_v6, %v1772_v12  ;;  %v3820_v30 = vld [vmem:[%s6897_s5 + $0x268] sm:$0xff]  ;;  %v3849_v12 = vld [vmem:[%s6897_s5 + $0x340] sm:$0xff] }
 0x463   : > { %v1835_v35 = vmul.f32 %v5429_v34, %v1821_v15  ;;  %v1836_v27 = vmul.f32 %v5429_v34, %v1822_v0  ;;  %v1807_v63 = vadd.f32 %v1803_v61, %v1773_v50  ;;  %v1808_v1 = vadd.f32 %v1804_v54, %v1774_v2 }
 0x464   : > { %v5764_v44 = vpop.permute.xlu1 %2201  ;;  %v5766_v19 = vpop.permute.xlu0 %2233  ;;  %v1852_v46 = vsel %vm690_vm8, %v5565_v52, %v5630_v47  ;;  %v1854_v39 = vsel %vm690_vm8, %v5630_v47, %v5565_v52  ;;  %v1855_v34 = vmul.f32 %v1853_v31, %v4696_v33  ;;  %v1856_v48 = vmul.f32 %v1851_v3, %v4699_v43 }
 0x465   : > { %v1885_v0 = vsel %vm738_vm10, %v5567_v24, %v5632_v42  ;;  %v1887_v36 = vsel %vm738_vm10, %v5632_v42, %v5567_v24  ;;  %v1837_v38 = vmul.f32 %v5438_v37, %v1823_v7  ;;  %v1838_v40 = vmul.f32 %v5438_v37, %v1824_v13  ;;  %v3821_v7 = vld [vmem:[%s6897_s5 + $0x270] sm:$0xff] }
 0x466   : > { %3257 = vperm.xlu1 %3955, %v3848_v11   ;;  %2828 = vperm.xlu0 %3954, %v3819_v8   ;;  %v1886_v6 = vsel %vm738_vm10, %v5577_v16, %v5640_v18  ;;  %v1888_v24 = vsel %vm738_vm10, %v5640_v18, %v5577_v16  ;;  %v1857_v42 = vmul.f32 %v1854_v39, %v4696_v33  ;;  %v3850_v18 = vld [vmem:[%s6897_s5 + $0x348] sm:$0xff] }
 0x467   : > { %v1858_v15 = vmul.f32 %v1852_v46, %v4699_v43  ;;  %v1919_v21 = vsel %vm786_vm12, %v5579_v45, %v5642_v28  ;;  %v1921_v37 = vsel %vm786_vm12, %v5642_v28, %v5579_v45  ;;  %v1839_v29 = vadd.f32 %v1835_v35, %v1805_v32 }
 0x468   : > { %v5818_v52 = vpop.permute.xlu1 %2235  ;;  %v5820_v47 = vpop.permute.xlu0 %2267  ;;  %v1840_v2 = vadd.f32 %v1836_v27, %v1806_v4  ;;  %v1889_v50 = vmul.f32 %v1887_v36, %v4715_v20  ;;  %v1890_v16 = vmul.f32 %v1885_v0, %v4718_v59  ;;  %v1869_v61 = vmul.f32 %v5452_v58, %v1855_v34  ;;  %v7298_v36 = vld [vmem:[#allocation7_spill] sm:$0xff] }
 0x469   : > { %v1870_v54 = vmul.f32 %v5452_v58, %v1856_v48  ;;  %v1891_v11 = vmul.f32 %v1888_v24, %v4715_v20  ;;  %v1892_v45 = vmul.f32 %v1886_v6, %v4718_v59  ;;  %v1923_v13 = vmul.f32 %v1919_v21, %v4753_v62  ;;  %v7299_v6 = vld [vmem:[#allocation57_spill] sm:$0xff] }
 0x46a   : > { %2833 = vperm.xlu1 %3955, %v3820_v30   ;;  %3286 = vperm.xlu0 %3954, %v3849_v12   ;;  %v1924_v3 = vmul.f32 %v1921_v37, %v4756_v41  ;;  %v1920_v58 = vsel %vm786_vm12, %v5587_v57, %v5650_v14  ;;  %v1922_v31 = vsel %vm786_vm12, %v5650_v14, %v5587_v57 }
 0x46b   : > { %v1841_v32 = vadd.f32 %v1837_v38, %v1807_v63  ;;  %v1842_v4 = vadd.f32 %v1838_v40, %v1808_v1  ;;  %v1871_v35 = vmul.f32 %v5458_v9, %v1857_v42  ;;  %v1872_v27 = vmul.f32 %v5458_v9, %v1858_v15  ;;  %v3822_v9 = vld [vmem:[%s6897_s5 + $0x278] sm:$0xff]  ;;  %v7300_v42 = vld [vmem:[#allocation58_spill] sm:$0xff] }
 0x46c   : > { %v5854_v28 = vpop.permute.xlu1 %2269  ;;  %v5856_v8 = vpop.permute.xlu0 %2301  ;;  %v1903_v46 = vmul.f32 %v5472_v26, %v1889_v50  ;;  %v1904_v39 = vmul.f32 %v5472_v26, %v1890_v16  ;;  %v1953_v30 = vsel %vm834_vm14, %v5589_v51, %v5652_v49  ;;  %v1955_v57 = vsel %vm834_vm14, %v5652_v49, %v5589_v51  ;;  %v3851_v51 = vld [vmem:[%s6897_s5 + $0x350] sm:$0xff]  ;;  %v3852_v50 = vld [vmem:[%s6897_s5 + $0x358] sm:$0xff] }
 0x46d   : > { %v1905_v14 = vmul.f32 %v5478_v22, %v1891_v11  ;;  %v1906_v63 = vmul.f32 %v5478_v22, %v1892_v45  ;;  %v1925_v26 = vmul.f32 %v1920_v58, %v4753_v62  ;;  %v1926_v1 = vmul.f32 %v1922_v31, %v4756_v41  ;;  %v7303_v31 = vld [vmem:[#allocation8_spill] sm:$0xff] }
 0x46e   : > { %3291 = vperm.xlu1 %3955, %v3850_v18   ;;  %2862 = vperm.xlu0 %3954, %v3821_v7   ;;  %v1873_v49 = vadd.f32 %v1869_v61, %v1839_v29  ;;  %v1874_v0 = vadd.f32 %v1870_v54, %v1840_v2  ;;  %v1937_v12 = vmul.f32 %v7298_v36, %v1923_v13  ;;  %v7301_v29 = vld [vmem:[#allocation19_spill] sm:$0xff] }
 0x46f   : > { %v1938_v38 = vmul.f32 %v7298_v36, %v1924_v3  ;;  %v1875_v40 = vadd.f32 %v1871_v35, %v1841_v32  ;;  %v1876_v22 = vadd.f32 %v1872_v27, %v1842_v4  ;;  %v1957_v24 = vmul.f32 %v1953_v30, %v7299_v6  ;;  %v7302_v54 = vld [vmem:[#allocation3_spill] sm:$0xff]  ;;  %v3825_v3 = vld [vmem:[%s6897_s5 + $0x290] sm:$0xff]  ;;  %v7306_v30 = vld [vmem:[#allocation42_spill] sm:$0xff] }
 0x470   : > { %v5890_v34 = vpop.permute.xlu1 %2303  ;;  %v5892_v48 = vpop.permute.xlu0 %2335  ;;  %v1958_v15 = vmul.f32 %v1955_v57, %v7300_v42  ;;  %v1907_v21 = vadd.f32 %v1903_v46, %v1873_v49  ;;  %v1908_v37 = vadd.f32 %v1904_v39, %v1874_v0  ;;  %v5906_v2 = vadd.f32 %v7301_v29, %v5779_v25  ;;  %v7304_v4 = vld [vmem:[#allocation56_spill] sm:$0xff]  ;;  %v7305_v46 = vld [vmem:[#allocation41_spill] sm:$0xff] }
 0x471   : > { %v5910_v16 = vadd.f32 %v7301_v29, %v5783_v5  ;;  %v1909_v18 = vadd.f32 %v1905_v14, %v1875_v40  ;;  %v1910_v61 = vadd.f32 %v1906_v63, %v1876_v22  ;;  %v1939_v11 = vmul.f32 %v7302_v54, %v1925_v26  ;;  %v7308_v14 = vld [vmem:[#allocation34_spill] sm:$0xff]  ;;  %v3826_v36 = vld [vmem:[%s6897_s5 + $0x298] sm:$0xff]  ;;  %v7311_v40 = vld [vmem:[#allocation32_spill] sm:$0xff] }
 0x472   : > { %2867 = vperm.xlu1 %3955, %v3822_v9   ;;  %3320 = vperm.xlu0 %3954, %v3851_v51   ;;  %v1940_v45 = vmul.f32 %v7302_v54, %v1926_v1  ;;  %v1941_v58 = vadd.f32 %v1937_v12, %v1907_v21  ;;  %v1942_v25 = vadd.f32 %v1938_v38, %v1908_v37  ;;  %v7307_v9 = vld [vmem:[#allocation69_spill] sm:$0xff]  ;;  %v7310_v51 = vld [vmem:[#allocation18_spill] sm:$0xff] }
 0x473   : > { %v1971_v35 = vmul.f32 %v7304_v4, %v1957_v24  ;;  %v1972_v27 = vmul.f32 %v7304_v4, %v1958_v15  ;;  %v1954_v63 = vsel %vm834_vm14, %v7308_v14, %v7307_v9  ;;  %v1956_v26 = vsel %vm834_vm14, %v7307_v9, %v7308_v14  ;;  %v7309_v1 = vld [vmem:[#allocation13_spill] sm:$0xff]  ;;  %v3827_v37 = vld [vmem:[%s6897_s5 + $0x2a0] sm:$0xff] }
 0x474   : > { %v5914_v7 = vpop.permute.xlu1 %2337  ;;  %v2102_v13 = vpop.permute.xlu0 %2101  ;;  %v1987_v49 = vsel %vm882_vm0, %v7310_v51, %v7309_v1  ;;  %v1989_v0 = vsel %vm882_vm0, %v7309_v1, %v7310_v51  ;;  %v5948_v12 = vadd.f32 %v1939_v11, %v1909_v18  ;;  %v5950_v38 = vadd.f32 %v1940_v45, %v1910_v61  ;;  %v7313_v61 = vld [vmem:[#allocation11_spill] sm:$0xff]  ;;  %v7314_v4 = vld [vmem:[#allocation45_spill] sm:$0xff]  ;;  %v7319_v51 = vld [vmem:[#allocation4_spill] sm:$0xff] }
 0x475   : > { %v2105_v5 = vsel %vm1028_vm5, %v7303_v31, %v2102_v13  ;;  %v2107_v32 = vsel %vm1028_vm5, %v2102_v13, %v7303_v31  ;;  %v5969_v45 = vadd.f32 %v1971_v35, %v1941_v58  ;;  %v5971_v13 = vadd.f32 %v1972_v27, %v1942_v25  ;;  %v3828_v58 = vld [vmem:[%s6897_s5 + $0x2a8] sm:$0xff]  ;;  %v7316_v25 = vld [vmem:[#allocation61_spill] sm:$0xff]  ;;  %v7317_v27 = vld [vmem:[#allocation62_spill] sm:$0xff] }
 0x476   : > { %v2109_v39 = vmul.f32 %v2107_v32, %v7305_v46  ;;  %v2110_v57 = vmul.f32 %v2105_v5, %v7306_v30  ;;  %3325 = vperm.xlu1 %3955, %v3852_v50   ;;  %2896 = vperm.xlu0 %3954, %v3825_v3   ;;  %v7312_v50 = vld [vmem:[#allocation16_spill] sm:$0xff]  ;;  %v1959_v5 = vmul.f32 %v1954_v63, %v7299_v6  ;;  %v7318_v1 = vld [vmem:[#allocation5_spill] sm:$0xff] }
 0x477   : > { %v1960_v32 = vmul.f32 %v1956_v26, %v7300_v42  ;;  %v5983_v35 = vmul.f32 %v1987_v49, %v7316_v25  ;;  %v5986_v14 = vmul.f32 %v1989_v0, %v7317_v27  ;;  %v5992_v63 = vsel %vm882_vm0, %v7319_v51, %v7318_v1  ;;  %v3829_v49 = vld [vmem:[%s6897_s5 + $0x2b0] sm:$0xff] }
 0x478   : > { %v2123_v22 = vmul.f32 %v7311_v40, %v2109_v39  ;;  %v2124_v24 = vmul.f32 %v7311_v40, %v2110_v57  ;;  %v2104_v15 = vpop.permute.xlu1 %2103  ;;  %v2136_v21 = vpop.permute.xlu0 %2135  ;;  %v7315_v57 = vld [vmem:[#allocation46_spill] sm:$0xff]  ;;  %v5998_v26 = vsel %vm882_vm0, %v7318_v1, %v7319_v51 }
 0x479   : > { %v2106_v29 = vsel %vm1028_vm5, %v7312_v50, %v2104_v15  ;;  %v2108_v18 = vsel %vm1028_vm5, %v2104_v15, %v7312_v50  ;;  %v2139_v54 = vsel %vm1076_vm7, %v7313_v61, %v2136_v21  ;;  %v2141_v11 = vsel %vm1076_vm7, %v2136_v21, %v7313_v61  ;;  %v7320_v21 = vld [vmem:[#allocation20_spill] sm:$0xff] }
 0x47a   : > { %v2111_v3 = vmul.f32 %v2108_v18, %v7305_v46  ;;  %v2112_v31 = vmul.f32 %v2106_v29, %v7306_v30  ;;  %2901 = vperm.xlu1 %3955, %v3826_v36   ;;  %v2143_v39 = vmul.f32 %v2141_v11, %v7314_v4  ;;  %v2144_v9 = vmul.f32 %v2139_v54, %v7315_v57  ;;  %v7321_v29 = vld [vmem:[#allocation29_spill] sm:$0xff]  ;;  %v7329_v46 = vld [vmem:[#allocation52_spill] sm:$0xff] }
 0x47b   : > { %2930 = vperm.xlu0 %3954, %v3827_v37   ;;  %v2127_v0 = vadd.f32 %v2123_v22, %v5772_v53  ;;  %v2128_v15 = vadd.f32 %v2124_v24, %v5775_v23  ;;  %v7322_v53 = vld [vmem:[#allocation9_spill] sm:$0xff]  ;;  %v7323_v24 = vld [vmem:[#allocation14_spill] sm:$0xff] }
 0x47c   : > { %v2138_v36 = vpop.permute.xlu1 %2137  ;;  %v2170_v40 = vpop.permute.xlu0 %2169  ;;  %v2125_v18 = vmul.f32 %v7321_v29, %v2111_v3  ;;  %v2126_v61 = vmul.f32 %v7321_v29, %v2112_v31  ;;  %v2157_v22 = vmul.f32 %v7322_v53, %v2143_v39  ;;  %v2158_v23 = vmul.f32 %v7322_v53, %v2144_v9  ;;  %v3830_v3 = vld [vmem:[%s6897_s5 + $0x2b8] sm:$0xff]  ;;  %v7325_v39 = vld [vmem:[#allocation47_spill] sm:$0xff]  ;;  %v7326_v9 = vld [vmem:[#allocation48_spill] sm:$0xff] }
 0x47d   : > { %v2140_v37 = vsel %vm1076_vm7, %v7320_v21, %v2138_v36  ;;  %v2142_v50 = vsel %vm1076_vm7, %v2138_v36, %v7320_v21  ;;  %v2173_v1 = vsel %vm7077_vm9, %v7323_v24, %v2170_v40  ;;  %v2175_v51 = vsel %vm7077_vm9, %v2170_v40, %v7323_v24  ;;  %v7324_v31 = vld [vmem:[#allocation21_spill] sm:$0xff]  ;;  %v3831_v53 = vld [vmem:[%s6897_s5 + $0x2c0] sm:$0xff] }
 0x47e   : > { %v2145_v54 = vmul.f32 %v2142_v50, %v7314_v4  ;;  %v2146_v11 = vmul.f32 %v2140_v37, %v7315_v57  ;;  %2935 = vperm.xlu1 %3955, %v3828_v58   ;;  %v2177_v21 = vmul.f32 %v2175_v51, %v7325_v39  ;;  %v2178_v37 = vmul.f32 %v2173_v1, %v7326_v9  ;;  %v7327_v51 = vld [vmem:[#allocation38_spill] sm:$0xff] }
 0x47f   : > { %2964 = vperm.xlu0 %3954, %v3829_v49   ;;  %v2129_v24 = vadd.f32 %v2125_v18, %v5906_v2  ;;  %v2130_v1 = vadd.f32 %v2126_v61, %v5910_v16  ;;  %v7330_v2 = vld [vmem:[#allocation10_spill] sm:$0xff]  ;;  %v2161_v61 = vadd.f32 %v2157_v22, %v2127_v0  ;;  %v7332_v22 = vld [vmem:[#allocation39_spill] sm:$0xff] }
 0x480   : > { %v2159_v36 = vmul.f32 %v7324_v31, %v2145_v54  ;;  %v2160_v58 = vmul.f32 %v7324_v31, %v2146_v11  ;;  %v2172_v50 = vpop.permute.xlu1 %2171  ;;  %v2204_v29 = vpop.permute.xlu0 %2203  ;;  %v2191_v31 = vmul.f32 %v7327_v51, %v2177_v21  ;;  %v2192_v57 = vmul.f32 %v7327_v51, %v2178_v37  ;;  %v7334_v51 = vld [vmem:[#allocation54_spill] sm:$0xff] }
 0x481   : > { %v2174_v40 = vsel %vm7077_vm9, %v5732_v56, %v2172_v50  ;;  %v2176_v49 = vsel %vm7077_vm9, %v2172_v50, %v5732_v56  ;;  %v2207_v54 = vsel %vm7076_vm11, %v5734_v60, %v2204_v29  ;;  %v2209_v11 = vsel %vm7076_vm11, %v2204_v29, %v5734_v60  ;;  %v7328_v50 = vld [vmem:[#allocation51_spill] sm:$0xff] }
 0x482   : > { %2969 = vperm.xlu1 %3955, %v3830_v3   ;;  %v2179_v4 = vmul.f32 %v2176_v49, %v7325_v39  ;;  %v2180_v56 = vmul.f32 %v2174_v40, %v7326_v9  ;;  %v2211_v30 = vmul.f32 %v2209_v11, %v7328_v50  ;;  %v2212_v42 = vmul.f32 %v2207_v54, %v7329_v46  ;;  %v3832_v60 = vld [vmem:[%s6897_s5 + $0x2c8] sm:$0xff]  ;;  %v7331_v49 = vld [vmem:[#allocation28_spill] sm:$0xff] }
 0x483   : > { %2998 = vperm.xlu0 %3954, %v3831_v53   ;;  %v6057_v16 = vmul.f32 %v7330_v2, %v1959_v5  ;;  %v6060_v18 = vmul.f32 %v7330_v2, %v1960_v32  ;;  %v2162_v3 = vadd.f32 %v2158_v23, %v2128_v15  ;;  %v2163_v29 = vadd.f32 %v2159_v36, %v2129_v24 }
 0x484   : > { %v2206_v21 = vpop.permute.xlu1 %2205  ;;  %v2238_v37 = vpop.permute.xlu0 %2237  ;;  %v2164_v40 = vadd.f32 %v2160_v58, %v2130_v1  ;;  %v2193_v11 = vmul.f32 %v7331_v49, %v2179_v4  ;;  %v2194_v53 = vmul.f32 %v7331_v49, %v2180_v56  ;;  %v2195_v4 = vadd.f32 %v2191_v31, %v2161_v61  ;;  %v7337_v61 = vld [vmem:[#allocation12_spill] sm:$0xff] }
 0x485   : > { %v2208_v54 = vsel %vm7076_vm11, %v5764_v44, %v2206_v21  ;;  %v2210_v5 = vsel %vm7076_vm11, %v2206_v21, %v5764_v44  ;;  %v2241_v32 = vsel %vm1220_vm13, %v5766_v19, %v2238_v37  ;;  %v2243_v0 = vsel %vm1220_vm13, %v2238_v37, %v5766_v19  ;;  %v7333_v44 = vld [vmem:[#allocation53_spill] sm:$0xff] }
 0x486   : > { %3003 = vperm.xlu1 %3955, %v3832_v60   ;;  %v2196_v15 = vadd.f32 %v2192_v57, %v2162_v3  ;;  %v2225_v23 = vmul.f32 %v7332_v22, %v2211_v30  ;;  %v2226_v36 = vmul.f32 %v7332_v22, %v2212_v42  ;;  %v2213_v58 = vmul.f32 %v2210_v5, %v7328_v50  ;;  %v7338_v5 = vld [vmem:[#allocation59_spill] sm:$0xff] }
 0x487   : > { %v2214_v24 = vmul.f32 %v2208_v54, %v7329_v46  ;;  %v2245_v1 = vmul.f32 %v2241_v32, %v7333_v44  ;;  %v2246_v56 = vmul.f32 %v2243_v0, %v7334_v51  ;;  %vm7335_vm11 = vcmp.lt.s32.totalorder %v4593_v17, 98  ;;  %v7339_v32 = vld [vmem:[#allocation60_spill] sm:$0xff] }
 0x488   : > { %v2240_v2 = vpop.permute.xlu1 %2239  ;;  %v2272_v21 = vpop.permute.xlu0 %2271  ;;  %vm7336_vm9 = vmmov %vm7335_vm11  ;;  %v2197_v31 = vadd.f32 %v2193_v11, %v2163_v29  ;;  %v2198_v60 = vadd.f32 %v2194_v53, %v2164_v40  ;;  %v2227_v3 = vmul.f32 %v7337_v61, %v2213_v58  ;;  %v6102_v22 = vmul.f32 %v5992_v63, %v7316_v25 }
 0x489   : > { %v2242_v19 = vsel %vm1220_vm13, %v5818_v52, %v2240_v2  ;;  %v2244_v30 = vsel %vm1220_vm13, %v2240_v2, %v5818_v52  ;;  %v2275_v42 = vsel %vm7335_vm11, %v5820_v47, %v2272_v21  ;;  %v2277_v57 = vsel %vm7336_vm9, %v2272_v21, %v5820_v47  ;;  %v7340_v2 = vld [vmem:[#allocation23_spill] sm:$0xff]  ;;  %vm7341_vm11 = vmmov %vm7336_vm9 }
 0x48a   : > { %v2228_v37 = vmul.f32 %v7337_v61, %v2214_v24  ;;  %v2247_v49 = vmul.f32 %v2242_v19, %v7333_v44  ;;  %v2248_v54 = vmul.f32 %v2244_v30, %v7334_v51  ;;  %v2279_v52 = vmul.f32 %v2275_v42, %v7338_v5  ;;  %v7345_v61 = vld [vmem:[#allocation64_spill] sm:$0xff]  ;;  %v7349_v51 = vld [vmem:[#allocation50_spill] sm:$0xff] }
 0x48b   : > { %v2280_v0 = vmul.f32 %v2277_v57, %v7339_v32  ;;  %v6106_v47 = vmul.f32 %v5998_v26, %v7317_v27  ;;  %v2229_v29 = vadd.f32 %v2225_v23, %v2195_v4  ;;  %v2230_v40 = vadd.f32 %v2226_v36, %v2196_v15  ;;  %v7342_v15 = vld [vmem:[#allocation49_spill] sm:$0xff] }
 0x48c   : > { %v2274_v11 = vpop.permute.xlu1 %2273  ;;  %v2306_v53 = vpop.permute.xlu0 %2305  ;;  %v2231_v58 = vadd.f32 %v2227_v3, %v2197_v31  ;;  %v2232_v24 = vadd.f32 %v2228_v37, %v2198_v60  ;;  %v2259_v21 = vmul.f32 %v7340_v2, %v2245_v1  ;;  %v2260_v19 = vmul.f32 %v7340_v2, %v2246_v56  ;;  %v7343_v1 = vld [vmem:[#allocation30_spill] sm:$0xff]  ;;  %v7344_v31 = vld [vmem:[#allocation63_spill] sm:$0xff] }
 0x48d   : > { %v2276_v30 = vsel %vm7336_vm9, %v5854_v28, %v2274_v11  ;;  %v2278_v63 = vsel %vm7341_vm11, %v2274_v11, %v5854_v28  ;;  %v2309_v26 = vsel %vm1316_vm1, %v5856_v8, %v2306_v53  ;;  %v2311_v4 = vsel %vm1316_vm1, %v2306_v53, %v5856_v8  ;;  %v7346_v2 = vld [vmem:[#allocation55_spill] sm:$0xff] }
 0x48e   : > { %v2261_v23 = vmul.f32 %v7342_v15, %v2247_v49  ;;  %v2262_v36 = vmul.f32 %v7342_v15, %v2248_v54  ;;  %v2293_v56 = vmul.f32 %v7343_v1, %v2279_v52  ;;  %v2294_v42 = vmul.f32 %v7343_v1, %v2280_v0  ;;  %v7347_v15 = vld [vmem:[#allocation67_spill] sm:$0xff]  ;;  %v7348_v1 = vld [vmem:[#allocation68_spill] sm:$0xff] }
 0x48f   : > { %v2281_v57 = vmul.f32 %v2276_v30, %v7338_v5  ;;  %v2282_v28 = vmul.f32 %v2278_v63, %v7339_v32  ;;  %v2313_v60 = vmul.f32 %v2309_v26, %v7344_v31  ;;  %v2314_v3 = vmul.f32 %v2311_v4, %v7345_v61 }
 0x490   : > { %v2308_v37 = vpop.permute.xlu1 %2307  ;;  %v2340_v11 = vpop.permute.xlu0 %2339  ;;  %v2263_v0 = vadd.f32 %v2259_v21, %v2229_v29  ;;  %v2264_v53 = vadd.f32 %v2260_v19, %v2230_v40  ;;  %v2265_v32 = vadd.f32 %v2261_v23, %v2231_v58  ;;  %v2266_v5 = vadd.f32 %v2262_v36, %v2232_v24  ;;  %v7351_v24 = vld [vmem:[#allocation2_spill] sm:$0xff] }
 0x491   : > { %v2310_v8 = vsel %vm1316_vm1, %v5890_v34, %v2308_v37  ;;  %v2312_v49 = vsel %vm1316_vm1, %v2308_v37, %v5890_v34  ;;  %v2343_v54 = vsel %vm1364_vm2, %v5892_v48, %v2340_v11  ;;  %v2345_v52 = vsel %vm1364_vm2, %v2340_v11, %v5892_v48 }
 0x492   : > { %v2295_v30 = vmul.f32 %v7346_v2, %v2281_v57  ;;  %v2296_v63 = vmul.f32 %v7346_v2, %v2282_v28  ;;  %v2315_v26 = vmul.f32 %v2310_v8, %v7344_v31  ;;  %v2316_v4 = vmul.f32 %v2312_v49, %v7345_v61  ;;  %v7350_v57 = vld [vmem:[#allocation15_spill] sm:$0xff] }
 0x493   : > { %v2347_v34 = vmul.f32 %v2343_v54, %v7347_v15  ;;  %v2348_v37 = vmul.f32 %v2345_v52, %v7348_v1  ;;  %v2327_v44 = vmul.f32 %v7349_v51, %v2313_v60  ;;  %v2328_v48 = vmul.f32 %v7349_v51, %v2314_v3 }
 0x494   : > { %v2342_v29 = vpop.permute.xlu1 %2341  ;;  %v2014_v40 = vpop.permute.xlu0 %2013  ;;  %v2297_v21 = vadd.f32 %v2293_v56, %v2263_v0  ;;  %v2298_v19 = vadd.f32 %v2294_v42, %v2264_v53  ;;  %v2329_v28 = vmul.f32 %v7350_v57, %v2315_v26  ;;  %v2330_v11 = vmul.f32 %v7350_v57, %v2316_v4  ;;  %v7352_v0 = vld [vmem:[#allocation65_spill] sm:$0xff]  ;;  %v7354_v4 = vld [vmem:[#allocation70_spill] sm:$0xff] }
 0x495   : > { %v2299_v8 = vadd.f32 %v2295_v30, %v2265_v32  ;;  %v2300_v49 = vadd.f32 %v2296_v63, %v2266_v5  ;;  %v2344_v54 = vsel %vm1364_vm2, %v5914_v7, %v2342_v29  ;;  %v2346_v58 = vsel %vm1364_vm2, %v2342_v29, %v5914_v7  ;;  %v7353_v63 = vld [vmem:[#allocation66_spill] sm:$0xff] }
 0x496   : > { %v2361_v51 = vmul.f32 %v7351_v24, %v2347_v34  ;;  %v2362_v23 = vmul.f32 %v7351_v24, %v2348_v37  ;;  %v2349_v36 = vmul.f32 %v2344_v54, %v7347_v15  ;;  %v2350_v56 = vmul.f32 %v2346_v58, %v7348_v1  ;;  %v7355_v37 = vld [vmem:[#allocation71_spill] sm:$0xff] }
 0x497   : > { %v2331_v42 = vadd.f32 %v2327_v44, %v2297_v21  ;;  %v2333_v60 = vadd.f32 %v2329_v28, %v2299_v8  ;;  %v2332_v3 = vadd.f32 %v2328_v48, %v2298_v19  ;;  %v2334_v52 = vadd.f32 %v2330_v11, %v2300_v49  ;;  %v7356_v11 = vld [vmem:[#allocation33_spill] sm:$0xff] }
 0x498   : > { %v2016_v32 = vpop.permute.xlu1 %2015  ;;  %v2018_v5 = vpop.permute.xlu0 %2017  ;;  %v2363_v53 = vmul.f32 %v7352_v0, %v2349_v36  ;;  %v2364_v2 = vmul.f32 %v7352_v0, %v2350_v56  ;;  %v2005_v26 = vmul.f32 %v7353_v63, %v5983_v35  ;;  %v2006_v44 = vmul.f32 %v7353_v63, %v5986_v14  ;;  %v7358_v36 = vld [vmem:[#allocation35_spill] sm:$0xff] }
 0x499   : > { %v2021_v7 = vsel %vm930_vm15, %v2014_v40, %v2018_v5  ;;  %v2023_v30 = vsel %vm930_vm15, %v2018_v5, %v2014_v40  ;;  %v2365_v29 = vadd.f32 %v2361_v51, %v2331_v42  ;;  %v2366_v19 = vadd.f32 %v2362_v23, %v2332_v3  ;;  %v7357_v51 = vld [vmem:[#allocation40_spill] sm:$0xff] }
 0x49a   : > { %v2025_v34 = vmul.f32 %v2021_v7, %v7354_v4  ;;  %v2026_v48 = vmul.f32 %v2023_v30, %v7355_v37  ;;  %v2367_v21 = vadd.f32 %v2363_v53, %v2333_v60  ;;  %v2368_v57 = vadd.f32 %v2364_v2, %v2334_v52  ;;  %v3799_v60 = vld [vmem:[%s6899_s7 + $0x30] sm:$0xff]  ;;  %v3797_v7 = vld [vmem:[%s6899_s7 + $0x20] sm:$0xff]  ;;  %v3798_v30 = vld [vmem:[%s6899_s7 + $0x28] sm:$0xff] }
 0x49b   : > { %v1977_v28 = vadd.f32 %v6057_v16, %v5948_v12  ;;  %v1978_v40 = vadd.f32 %v6060_v18, %v5950_v38  ;;  %v2007_v35 = vmul.f32 %v7356_v11, %v6102_v22  ;;  %v2008_v14 = vmul.f32 %v7356_v11, %v6106_v47 }
 0x49c   : > { %v2020_v8 = vpop.permute.xlu1 %2019  ;;  %v3889_v58 = vpack.c.bf16 %v2368_v57, %v2366_v19  ;;  %v3891_v24 = vpack.c.bf16 %v2367_v21, %v2365_v29  ;;  %v2039_v12 = vmul.f32 %v7357_v51, %v2025_v34  ;;  %v2040_v16 = vmul.f32 %v7357_v51, %v2026_v48 }
 0x49d   : > { %v2022_v49 = vsel %vm930_vm15, %v2016_v32, %v2020_v8  ;;  %v2024_v54 = vsel %vm930_vm15, %v2020_v8, %v2016_v32  ;;  %v2009_v22 = vadd.f32 %v2005_v26, %v5969_v45  ;;  %v2010_v47 = vadd.f32 %v2006_v44, %v5971_v13  ;;  %v3800_v13 = vld [vmem:[%s6899_s7 + $0x38] sm:$0xff] }
 0x49e   : > { %v2027_v38 = vmul.f32 %v2022_v49, %v7354_v4  ;;  %v2028_v18 = vmul.f32 %v2024_v54, %v7355_v37  ;;  %3890 = vmatprep.subr.bf16.mxu1 %v3889_v58  ;;  %v2011_v23 = vadd.f32 %v2007_v35, %v1977_v28  ;;  %v2012_v32 = vadd.f32 %v2008_v14, %v1978_v40 }
 0x49f   : > { %3892 = vmatpush1.bf16.msra.mxu1 %v3891_v24  ;;  %v2043_v5 = vadd.f32 %v2039_v12, %v2009_v22  ;;  %v2044_v52 = vadd.f32 %v2040_v16, %v2010_v47  ;;  %v7359_v45 = vmov 0.0   ;;  %v3698_v12 = vld [vmem:[%s6895_s3 + $0x20] sm:$0xff]  ;;  %v3699_v16 = vld [vmem:[%s6895_s3 + $0x28] sm:$0xff] }
 0x4a0   : > { %v2041_v56 = vmul.f32 %v7358_v36, %v2027_v38  ;;  %v2042_v42 = vmul.f32 %v7358_v36, %v2028_v18  ;;  %v3700_v38 = vld [vmem:[%s6895_s3 + $0x30] sm:$0xff]  ;;  %v3701_v18 = vld [vmem:[%s6895_s3 + $0x38] sm:$0xff] }
 0x4a2   : > { %v2045_v3 = vadd.f32 %v2041_v56, %v2011_v23  ;;  %v2046_v0 = vadd.f32 %v2042_v42, %v2012_v32  ;;  %3801 = vmatmul.mubr.msk.f32.vlgmr.msra.gmra.mrb[6].mxu1 %vm435_vm3, %v3799_v60 }
 0x4a3   : > { %2451 = vmatprep.mubr.f32.mxu1 %v7359_v45 }
 0x4a4   : > { %v3893_v53 = vpack.c.bf16 %v2046_v0, %v2044_v52  ;;  %v3895_v2 = vpack.c.bf16 %v2045_v3, %v2043_v5 }
 0x4a6   : > { %3894 = vmatprep.subr.bf16.mxu1 %v3893_v53  ;;  %3802 = vmatmul.mubr.msk.f32.gmra.mrb[8].mxu1 %vm435_vm3, %v3800_v13 }
 0x4a7   : > { %3896 = vmatpush1.bf16.msra.mxu1 %v3895_v2  ;;  %2528 = vmatprep.mubr.f32.mxu1 %v7359_v45 }
 0x4a9   : > { %v2547_v63 = vpop.permute.xlu0 %2546 }
 0x4aa   : > { %3803 = vmatmul.mubr.msk.f32.vlgmr.msra.gmra.mrb[6].mxu1 %vm435_vm3, %v3797_v7 }
 0x4ab   : > { %2534 = vmatprep.mubr.f32.mxu1 %v7359_v45 }
 0x4ad   : > { %v2552_v29 = vpop.permute.xlu1 %2551  ;;  %v6234_v22 = vpop.permute.xlu0 %2583 }
 0x4ae   : > { %3804 = vmatmul.mubr.msk.f32.gmra.mrb[8].mxu1 %vm435_vm3, %v3798_v30 }
 0x4af   : > { %3412 = vmatprep.mubr.f32.mxu1 %v7359_v45 }
 0x4b1   : > { %v6236_v47 = vpop.permute.xlu1 %2588  ;;  %v2574_v23 = vpop.permute.xlu0 %2573 }
 0x4b5   : > { %v2579_v36 = vpop.permute.xlu1 %2578  ;;  %v6238_v56 = vpop.permute.xlu0 %3035 }
 0x4b9   : > { %v6242_v5 = vpop.permute.xlu1 %3040  ;;  %v6246_v52 = vpop.permute.xlu0 %3052 }
 0x4ba   : > { %7360 = vst [vmem:[#allocation22_spill] sm:$0xff] %v6242_v5  ;;  %7362 = vst [vmem:[#allocation17_spill] sm:$0xff] %v6246_v52 }
 0x4bd   : > { %v6254_v2 = vpop.permute.xlu1 %3057  ;;  %v6258_v30 = vpop.permute.xlu0 %3082 }
 0x4be   : > { %7364 = vst [vmem:[#allocation27_spill] sm:$0xff] %v6254_v2  ;;  %7365 = vst [vmem:[#allocation24_spill] sm:$0xff] %v6258_v30 }
 0x57d   : > { %v2530_v26 = vpop.f32.mrb[6].mxu1 }
 0x57e   : > { %v2554_v44 = vadd.f32 %v2547_v63, %v2530_v26  ;;  %v2532_v34 = vpop.f32.mrb[7].mxu1 }
 0x57f   : > { %v2555_v48 = vadd.f32 %v2547_v63, %v2532_v34  ;;  %v6272_v34 = vpop.permute.xlu0 %3116 }
 0x580   : > { %v2558_v19 = vmul.f32 0.2, %v2554_v44  ;;  %7369 = vst [vmem:[#allocation25_spill] sm:$0xff] %v6272_v34 }
 0x581   : > { %v2536_v21 = vpop.f32.mrb[8].mxu1  ;;  %v2559_v40 = vmul.f32 0.2, %v2555_v48 }
 0x582   : > { %v2556_v57 = vadd.f32 %v2552_v29, %v2536_v21  ;;  %v2538_v28 = vpop.f32.mrb[9].mxu1  ;;  %v2562_v8 = vmax.f32 %v2554_v44, %v2558_v19  ;;  %v6266_v44 = vpop.permute.xlu1 %3087 }
 0x583   : > { %v2557_v11 = vadd.f32 %v2552_v29, %v2538_v28  ;;  %v2563_v54 = vmax.f32 %v2555_v48, %v2559_v40  ;;  %7367 = vst [vmem:[#allocation26_spill] sm:$0xff] %v6266_v44  ;;  %v6280_v29 = vpop.permute.xlu0 %3150  ;;  %v7393_v44 = vld [vmem:[#allocation37_spill] sm:$0xff] }
 0x584   : > { %v2560_v35 = vmul.f32 0.2, %v2556_v57  ;;  %7372 = vst [vmem:[#allocation31_spill] sm:$0xff] %v6280_v29 }
 0x585   : > { %v2561_v14 = vmul.f32 0.2, %v2557_v11 }
 0x586   : > { %v2564_v49 = vmax.f32 %v2556_v57, %v2560_v35  ;;  %v6278_v48 = vpop.permute.xlu1 %3121 }
 0x587   : > { %v2565_v58 = vmax.f32 %v2557_v11, %v2561_v14  ;;  %7371 = vst [vmem:[#allocation6_spill] sm:$0xff] %v6278_v48  ;;  %v6292_v19 = vpop.permute.xlu0 %2713 }
 0x588   : > { %v3899_v24 = vpack.c.bf16 %v2564_v49, %v2562_v8 }
 0x589   : > { %v3897_v51 = vpack.c.bf16 %v2565_v58, %v2563_v54 }
 0x58a   : > { %v6286_v21 = vpop.permute.xlu1 %3155 }
 0x58b   : > { %3898 = vmatprep.subr.bf16.mxu0 %v3897_v51  ;;  %7374 = vst [vmem:[#allocation43_spill] sm:$0xff] %v6286_v21  ;;  %v6304_v11 = vpop.permute.xlu0 %3184  ;;  %v403_v21 = vld [vmem:[%s6902_s10 + $0x8] sm:$0xff] }
 0x58c   : > { %3900 = vmatpush1.bf16.msra.mxu0 %v3899_v24  ;;  %7376 = vst [vmem:[#allocation44_spill] sm:$0xff] %v6304_v11 }
 0x58e   : > { %v6300_v28 = vpop.permute.xlu1 %2718 }
 0x58f   : > { %3811 = vmatmul.mubr.msk.f32.vlgmr.msra.gmra.mrb[14].mxu0 %vm435_vm3, %v3698_v12  ;;  %v6316_v14 = vpop.permute.xlu0 %2730 }
 0x590   : > { %2673 = vmatprep.mubr.f32.mxu0 %v7359_v45 }
 0x592   : > { %v6310_v35 = vpop.permute.xlu1 %3189 }
 0x593   : > { %3812 = vmatmul.mubr.msk.f32.gmra.mrb[16].mxu0 %vm435_vm3, %v3699_v16  ;;  %7377 = vst [vmem:[#allocation7_spill] sm:$0xff] %v6310_v35  ;;  %v6324_v49 = vpop.permute.xlu0 %2760 }
 0x594   : > { %2679 = vmatprep.mubr.f32.mxu0 %v7359_v45 }
 0x596   : > { %v6322_v8 = vpop.permute.xlu1 %2735 }
 0x597   : > { %3813 = vmatmul.mubr.msk.f32.gmra.mrb[18].mxu0 %vm435_vm3, %v3700_v38  ;;  %v6336_v58 = vpop.permute.xlu0 %3218 }
 0x598   : > { %2685 = vmatprep.mubr.f32.mxu0 %v7359_v45  ;;  %7378 = vst [vmem:[#allocation57_spill] sm:$0xff] %v6336_v58  ;;  %v402_v58 = vld [vmem:[%s6902_s10] sm:$0xff] }
 0x59a   : > { %v6330_v54 = vpop.permute.xlu1 %2765 }
 0x59b   : > { %3814 = vmatmul.mubr.msk.f32.gmra.mrb[20].mxu0 %vm435_vm3, %v3701_v18  ;;  %v6347_v12 = vpop.permute.xlu0 %2794 }
 0x59c   : > { %3613 = vmatprep.mubr.f32.mxu0 %v7359_v45 }
 0x59e   : > { %v6342_v24 = vpop.permute.xlu1 %3223 }
 0x59f   : > { %7379 = vst [vmem:[#allocation19_spill] sm:$0xff] %v6342_v24  ;;  %v6362_v18 = vpop.permute.xlu0 %3252  ;;  %v3864_v24 = vld [vmem:[%s6900_s8 + $0x28] sm:$0xff] }
 0x5a0   : > { %7382 = vst [vmem:[#allocation8_spill] sm:$0xff] %v6362_v18 }
 0x5a2   : > { %v6356_v38 = vpop.permute.xlu1 %2799 }
 0x662   : > { %v2669_v42 = vpop.f32.mrb[14].mxu0 }
 0x663   : > { %v6240_v60 = vadd.f32 %v2669_v42, %v2574_v23  ;;  %v2671_v32 = vpop.f32.mrb[15].mxu0 }
 0x664   : > { %v6294_v57 = vadd.f32 %v2671_v32, %v2574_v23  ;;  %v6368_v23 = vpop.permute.xlu1 %3257 }
 0x665   : > { %2742 = vrot.lane.b32.xlu0 %v6240_v60, %s7361_s21  ;;  %7383 = vst [vmem:[#allocation56_spill] sm:$0xff] %v6368_v23  ;;  %v2721_v39 = vmul.f32 %v6292_v19, %v6240_v60 }
 0x666   : > { %v2675_v3 = vpop.f32.mrb[16].mxu0  ;;  %v2722_v9 = vmul.f32 %v6292_v19, %v6294_v57 }
 0x667   : > { %v6248_v0 = vadd.f32 %v2675_v3, %v2579_v36  ;;  %v2677_v13 = vpop.f32.mrb[17].mxu0 }
 0x668   : > { %v6302_v40 = vadd.f32 %v2677_v13, %v2579_v36  ;;  %v6370_v36 = vpop.permute.xlu0 %2828  ;;  %v6376_v42 = vpop.permute.xlu1 %2833 }
 0x669   : > { %2744 = vrot.lane.b32.xlu1 %v6248_v0, %s7361_s21  ;;  %2776 = vrot.lane.b32.xlu0 %v6240_v60, %s7363_s23  ;;  %v2723_v5 = vmul.f32 %v6300_v28, %v6248_v0 }
 0x66a   : > { %v2681_v53 = vpop.f32.mrb[18].mxu0 }
 0x66b   : > { %v6256_v7 = vpop.f32.mrb[19].mxu0  ;;  %v6345_v51 = vadd.f32 %v2681_v53, %v6234_v22 }
 0x66c   : > { %v6382_v32 = vpop.permute.xlu0 %3286  ;;  %v6388_v3 = vpop.permute.xlu1 %3291  ;;  %v6406_v45 = vadd.f32 %v6256_v7, %v6234_v22 }
 0x66d   : > { %2778 = vrot.lane.b32.xlu1 %v6248_v0, %s7363_s23  ;;  %2810 = vrot.lane.b32.xlu0 %v6240_v60, %s7366_s30  ;;  %7384 = vst [vmem:[#allocation69_spill] sm:$0xff] %v6382_v32  ;;  %7385 = vst [vmem:[#allocation34_spill] sm:$0xff] %v6388_v3 }
 0x66e   : > { %v2687_v63 = vpop.f32.mrb[20].mxu0  ;;  %7387 = vst [vmem:[#allocation18_spill] sm:$0xff] %v6406_v45 }
 0x66f   : > { %v6264_v26 = vpop.f32.mrb[21].mxu0  ;;  %v6354_v16 = vadd.f32 %v2687_v63, %v6236_v47 }
 0x670   : > { %v6390_v13 = vpop.permute.xlu0 %2862  ;;  %v6396_v53 = vpop.permute.xlu1 %2867  ;;  %v6416_v4 = vadd.f32 %v6264_v26, %v6236_v47 }
 0x671   : > { %2812 = vrot.lane.b32.xlu1 %v6248_v0, %s7366_s30  ;;  %2844 = vrot.lane.b32.xlu0 %v6240_v60, %s7368_s13  ;;  %7381 = vst [vmem:[#allocation3_spill] sm:$0xff] %v6354_v16 }
 0x672   : > { %7389 = vst [vmem:[#allocation16_spill] sm:$0xff] %v6416_v4 }
 0x674   : > { %v6402_v63 = vpop.permute.xlu0 %3320  ;;  %v6412_v37 = vpop.permute.xlu1 %3325 }
 0x675   : > { %2846 = vrot.lane.b32.xlu1 %v6248_v0, %s7368_s13  ;;  %2878 = vrot.lane.b32.xlu0 %v6240_v60, %s7370_s29  ;;  %7386 = vst [vmem:[#allocation13_spill] sm:$0xff] %v6402_v63  ;;  %7388 = vst [vmem:[#allocation32_spill] sm:$0xff] %v6412_v37 }
 0x678   : > { %v6418_v3 = vpop.permute.xlu0 %2896  ;;  %v6424_v22 = vpop.permute.xlu1 %2901 }
 0x679   : > { %2880 = vrot.lane.b32.xlu1 %v6248_v0, %s7370_s29  ;;  %2912 = vrot.lane.b32.xlu0 %v6240_v60, %s7373_s26 }
 0x67c   : > { %v6430_v7 = vpop.permute.xlu0 %2930  ;;  %v6436_v47 = vpop.permute.xlu1 %2935 }
 0x67d   : > { %2914 = vrot.lane.b32.xlu1 %v6248_v0, %s7373_s26  ;;  %2946 = vrot.lane.b32.xlu0 %v6240_v60, %s7375_s15 }
 0x680   : > { %v6438_v26 = vpop.permute.xlu0 %2964  ;;  %v6444_v37 = vpop.permute.xlu1 %2969 }
 0x681   : > { %2948 = vrot.lane.b32.xlu1 %v6248_v0, %s7375_s15  ;;  %2746 = vrot.lane.b32.xlu0 %v6294_v57, %s7361_s21 }
 0x684   : > { %v6450_v63 = vpop.permute.xlu0 %2998  ;;  %v6456_v1 = vpop.permute.xlu1 %3003 }
 0x685   : > { %2748 = vrot.lane.b32.xlu1 %v6302_v40, %s7361_s21  ;;  %2780 = vrot.lane.b32.xlu0 %v6294_v57, %s7363_s23  ;;  %7390 = vst [vmem:[#allocation11_spill] sm:$0xff] %v6450_v63  ;;  %7391 = vst [vmem:[#allocation61_spill] sm:$0xff] %v6456_v1  ;;  %v3863_v1 = vld [vmem:[%s6900_s8 + $0x20] sm:$0xff] }
 0x689   : > { %2782 = vrot.lane.b32.xlu1 %v6302_v40, %s7363_s23  ;;  %2814 = vrot.lane.b32.xlu0 %v6294_v57, %s7366_s30 }
 0x68d   : > { %2816 = vrot.lane.b32.xlu1 %v6302_v40, %s7366_s30  ;;  %2848 = vrot.lane.b32.xlu0 %v6294_v57, %s7368_s13 }
 0x691   : > { %2850 = vrot.lane.b32.xlu1 %v6302_v40, %s7368_s13  ;;  %2882 = vrot.lane.b32.xlu0 %v6294_v57, %s7370_s29 }
 0x695   : > { %2884 = vrot.lane.b32.xlu1 %v6302_v40, %s7370_s29  ;;  %2916 = vrot.lane.b32.xlu0 %v6294_v57, %s7373_s26 }
 0x699   : > { %2918 = vrot.lane.b32.xlu1 %v6302_v40, %s7373_s26  ;;  %2950 = vrot.lane.b32.xlu0 %v6294_v57, %s7375_s15 }
 0x69d   : > { %2952 = vrot.lane.b32.xlu1 %v6302_v40, %s7375_s15  ;;  %3064 = vrot.lane.b32.xlu0 %v6345_v51, %s7380_s19 }
 0x6a1   : > { %3066 = vrot.lane.b32.xlu1 %v6354_v16, %s7380_s19  ;;  %3098 = vrot.lane.b32.xlu0 %v6345_v51, %s7261_s25 }
 0x6a5   : > { %3100 = vrot.lane.b32.xlu1 %v6354_v16, %s7261_s25  ;;  %3132 = vrot.lane.b32.xlu0 %v6345_v51, %s7263_s12 }
 0x6a9   : > { %3134 = vrot.lane.b32.xlu1 %v6354_v16, %s7263_s12  ;;  %3166 = vrot.lane.b32.xlu0 %v6345_v51, %s7265_s14 }
 0x6ad   : > { %3168 = vrot.lane.b32.xlu1 %v6354_v16, %s7265_s14  ;;  %3200 = vrot.lane.b32.xlu0 %v6345_v51, %s7266_s16 }
 0x6b1   : > { %3202 = vrot.lane.b32.xlu1 %v6354_v16, %s7266_s16  ;;  %3234 = vrot.lane.b32.xlu0 %v6345_v51, %s7268_s20 }
 0x6b5   : > { %3236 = vrot.lane.b32.xlu1 %v6354_v16, %s7268_s20  ;;  %3268 = vrot.lane.b32.xlu0 %v6345_v51, %s7270_s22 }
 0x6b9   : > { %3270 = vrot.lane.b32.xlu1 %v6354_v16, %s7270_s22  ;;  %3302 = vrot.lane.b32.xlu0 %v6345_v51, %s7271_s24 }
 0x6bd   : > { %3304 = vrot.lane.b32.xlu1 %v6354_v16, %s7271_s24  ;;  %3068 = vrot.lane.b32.xlu0 %v6406_v45, %s7380_s19 }
 0x6c1   : > { %3070 = vrot.lane.b32.xlu1 %v6416_v4, %s7380_s19  ;;  %3102 = vrot.lane.b32.xlu0 %v6406_v45, %s7261_s25 }
 0x6c5   : > { %3104 = vrot.lane.b32.xlu1 %v6416_v4, %s7261_s25  ;;  %3136 = vrot.lane.b32.xlu0 %v6406_v45, %s7263_s12 }
 0x6c9   : > { %3138 = vrot.lane.b32.xlu1 %v6416_v4, %s7263_s12  ;;  %3170 = vrot.lane.b32.xlu0 %v6406_v45, %s7265_s14 }
 0x6cd   : > { %3172 = vrot.lane.b32.xlu1 %v6416_v4, %s7265_s14  ;;  %3204 = vrot.lane.b32.xlu0 %v6406_v45, %s7266_s16 }
 0x6d1   : > { %3206 = vrot.lane.b32.xlu1 %v6416_v4, %s7266_s16  ;;  %3238 = vrot.lane.b32.xlu0 %v6406_v45, %s7268_s20 }
 0x6d5   : > { %3240 = vrot.lane.b32.xlu1 %v6416_v4, %s7268_s20  ;;  %3272 = vrot.lane.b32.xlu0 %v6406_v45, %s7270_s22  ;;  %s7450_s20 = sshll.u32 %s7452_s18, 5 }
 0x6d6   : > { %s386_s21 = scalar_lea.vmem %s6903_s11, %s7450_s20 }
 0x6d7   : > { %v2743_v32 = vpop.permute.xlu0 %2742 }
 0x6d9   : > { %3274 = vrot.lane.b32.xlu1 %v6416_v4, %s7270_s22  ;;  %3306 = vrot.lane.b32.xlu0 %v6406_v45, %s7271_s24 }
 0x6db   : > { %v2745_v15 = vpop.permute.xlu1 %2744  ;;  %v2777_v23 = vpop.permute.xlu0 %2776 }
 0x6dd   : > { %3308 = vrot.lane.b32.xlu1 %v6416_v4, %s7271_s24  ;;  %2980 = vrot.lane.b32.xlu0 %v6240_v60, %s7282_s27  ;;  %v2724_v4 = vmul.f32 %v6300_v28, %v6302_v40 }
 0x6df   : > { %v2779_v63 = vpop.permute.xlu1 %2778  ;;  %v6466_v61 = vpop.permute.xlu0 %2810 }
 0x6e1   : > { %2982 = vrot.lane.b32.xlu1 %v6248_v0, %s7282_s27  ;;  %2984 = vrot.lane.b32.xlu0 %v6294_v57, %s7282_s27  ;;  %v2739_v0 = vadd.f32 %v6316_v14, %v2722_v9 }
 0x6e3   : > { %v6475_v31 = vpop.permute.xlu1 %2812  ;;  %v6477_v18 = vpop.permute.xlu0 %2844 }
 0x6e5   : > { %2986 = vrot.lane.b32.xlu1 %v6302_v40, %s7282_s27  ;;  %3513 = vperm.xlu0 %3954, %v3863_v1  }
 0x6e7   : > { %v6487_v35 = vpop.permute.xlu1 %2846  ;;  %v6489_v11 = vpop.permute.xlu0 %2878 }
 0x6e9   : > { %3518 = vperm.xlu1 %3955, %v3864_v24   ;;  %3535 = vperm.xlu0 %3954, %v402_v58  }
 0x6eb   : > { %v6494_v29 = vpop.permute.xlu1 %2880  ;;  %v6496_v1 = vpop.permute.xlu0 %2912 }
 0x6ed   : > { %3540 = vperm.xlu1 %3955, %v403_v21   ;;  %v7392_v21 = vld [vmem:[#allocation36_spill] sm:$0xff] }
 0x6ef   : > { %v6498_v46 = vpop.permute.xlu1 %2914  ;;  %v6500_v50 = vpop.permute.xlu0 %2946 }
 0x6f3   : > { %v6502_v48 = vpop.permute.xlu1 %2948  ;;  %v2747_v2 = vpop.permute.xlu0 %2746 }
 0x6f4   : > { %v2750_v24 = vsel %vm595_vm4, %v2743_v32, %v2747_v2  ;;  %v2752_v58 = vsel %vm595_vm4, %v2747_v2, %v2743_v32 }
 0x6f5   : > { %v2754_v34 = vmul.f32 %v2752_v58, %v7392_v21  ;;  %v2755_v30 = vmul.f32 %v2750_v24, %v7393_v44  ;;  %v2740_v24 = vadd.f32 %v6322_v8, %v2723_v5 }
 0x6f7   : > { %v2768_v16 = vmul.f32 %v6324_v49, %v2754_v34  ;;  %v2769_v2 = vmul.f32 %v6324_v49, %v2755_v30  ;;  %v2749_v32 = vpop.permute.xlu1 %2748  ;;  %v2781_v52 = vpop.permute.xlu0 %2780  ;;  %v2738_v34 = vadd.f32 %v6316_v14, %v2721_v39  ;;  %v2741_v49 = vadd.f32 %v6322_v8, %v2724_v4 }
 0x6f8   : > { %v2751_v57 = vsel %vm595_vm4, %v2745_v15, %v2749_v32  ;;  %v2753_v60 = vsel %vm595_vm4, %v2749_v32, %v2745_v15  ;;  %v2784_v19 = vsel %vm642_vm6, %v2777_v23, %v2781_v52  ;;  %v2786_v40 = vsel %vm642_vm6, %v2781_v52, %v2777_v23 }
 0x6f9   : > { %v2756_v30 = vmul.f32 %v2753_v60, %v7392_v21  ;;  %v2757_v28 = vmul.f32 %v2751_v57, %v7393_v44  ;;  %v2788_v15 = vmul.f32 %v2786_v40, %v7296_v10  ;;  %v2789_v58 = vmul.f32 %v2784_v19, %v7297_v55 }
 0x6fa   : > { %v2772_v32 = vadd.f32 %v2768_v16, %v2738_v34  ;;  %v2773_v45 = vadd.f32 %v2769_v2, %v2739_v0  ;;  %vm7407_vm4 = vcmp.lt.s32.totalorder %v4593_v17, 30 }
 0x6fb   : > { %v2770_v52 = vmul.f32 %v6330_v54, %v2756_v30  ;;  %v2771_v9 = vmul.f32 %v6330_v54, %v2757_v28  ;;  %v2783_v23 = vpop.permute.xlu1 %2782  ;;  %v2815_v39 = vpop.permute.xlu0 %2814  ;;  %v2802_v14 = vmul.f32 %v6347_v12, %v2788_v15  ;;  %v2803_v44 = vmul.f32 %v6347_v12, %v2789_v58 }
 0x6fc   : > { %v2785_v4 = vsel %vm642_vm6, %v2779_v63, %v2783_v23  ;;  %v2787_v5 = vsel %vm642_vm6, %v2783_v23, %v2779_v63  ;;  %v2818_v60 = vsel %vm690_vm8, %v6466_v61, %v2815_v39  ;;  %v2820_v12 = vsel %vm690_vm8, %v2815_v39, %v6466_v61  ;;  %vm7411_vm6 = vmmov %vm7407_vm4 }
 0x6fd   : > { %v2774_v8 = vadd.f32 %v2770_v52, %v2740_v24  ;;  %v2775_v21 = vadd.f32 %v2771_v9, %v2741_v49  ;;  %v2790_v16 = vmul.f32 %v2787_v5, %v7296_v10  ;;  %v2791_v2 = vmul.f32 %v2785_v4, %v7297_v55 }
 0x6fe   : > { %v2806_v57 = vadd.f32 %v2802_v14, %v2772_v32  ;;  %v2807_v54 = vadd.f32 %v2803_v44, %v2773_v45  ;;  %v2822_v40 = vmul.f32 %v2820_v12, %v4696_v33  ;;  %v2823_v10 = vmul.f32 %v2818_v60, %v4699_v43 }
 0x6ff   : > { %v2804_v19 = vmul.f32 %v6356_v38, %v2790_v16  ;;  %v2805_v63 = vmul.f32 %v6356_v38, %v2791_v2  ;;  %v2817_v0 = vpop.permute.xlu1 %2816  ;;  %v2849_v55 = vpop.permute.xlu0 %2848 }
 0x700   : > { %v2819_v45 = vsel %vm690_vm8, %v6475_v31, %v2817_v0  ;;  %v2821_v34 = vsel %vm690_vm8, %v2817_v0, %v6475_v31  ;;  %v2852_v61 = vsel %vm738_vm10, %v6477_v18, %v2849_v55  ;;  %v2854_v38 = vsel %vm738_vm10, %v2849_v55, %v6477_v18 }
 0x701   : > { %v2808_v30 = vadd.f32 %v2804_v19, %v2774_v8  ;;  %v2809_v28 = vadd.f32 %v2805_v63, %v2775_v21  ;;  %v2836_v49 = vmul.f32 %v6370_v36, %v2822_v40  ;;  %v2837_v24 = vmul.f32 %v6370_v36, %v2823_v10 }
 0x702   : > { %v2824_v15 = vmul.f32 %v2821_v34, %v4696_v33  ;;  %v2825_v58 = vmul.f32 %v2819_v45, %v4699_v43  ;;  %v2856_v31 = vmul.f32 %v2854_v38, %v4715_v20  ;;  %v2857_v32 = vmul.f32 %v2852_v61, %v4718_v59  ;;  %v7394_v45 = vld [vmem:[#allocation58_spill] sm:$0xff] }
 0x703   : > { %v2840_v52 = vadd.f32 %v2836_v49, %v2806_v57  ;;  %v2841_v9 = vadd.f32 %v2837_v24, %v2807_v54  ;;  %v2851_v23 = vpop.permute.xlu1 %2850  ;;  %v2883_v39 = vpop.permute.xlu0 %2882  ;;  %vm7413_vm8 = vcmp.lt.s32.totalorder %v4593_v17, 2 }
 0x704   : > { %v2838_v18 = vmul.f32 %v6376_v42, %v2824_v15  ;;  %v2839_v14 = vmul.f32 %v6376_v42, %v2825_v58  ;;  %v2870_v44 = vmul.f32 %v6390_v13, %v2856_v31  ;;  %v2871_v36 = vmul.f32 %v6390_v13, %v2857_v32 }
 0x705   : > { %v2853_v33 = vsel %vm738_vm10, %v6487_v35, %v2851_v23  ;;  %v2855_v43 = vsel %vm738_vm10, %v2851_v23, %v6487_v35  ;;  %v2886_v4 = vsel %vm786_vm12, %v6489_v11, %v2883_v39  ;;  %v2888_v42 = vsel %vm786_vm12, %v2883_v39, %v6489_v11  ;;  %vm7414_vm10 = vmmov %vm7413_vm8 }
 0x706   : > { %v2842_v5 = vadd.f32 %v2838_v18, %v2808_v30  ;;  %v2843_v8 = vadd.f32 %v2839_v14, %v2809_v28  ;;  %v2874_v21 = vadd.f32 %v2870_v44, %v2840_v52  ;;  %v2875_v13 = vadd.f32 %v2871_v36, %v2841_v9 }
 0x707   : > { %v2858_v16 = vmul.f32 %v2855_v43, %v4715_v20  ;;  %v2859_v2 = vmul.f32 %v2853_v33, %v4718_v59  ;;  %v2890_v57 = vmul.f32 %v2886_v4, %v4753_v62  ;;  %v2891_v35 = vmul.f32 %v2888_v42, %v4756_v41  ;;  %v2885_v54 = vpop.permute.xlu1 %2884  ;;  %v2917_v60 = vpop.permute.xlu0 %2916 }
 0x708   : > { %v2887_v12 = vsel %vm786_vm12, %v6494_v29, %v2885_v54  ;;  %v2889_v11 = vsel %vm786_vm12, %v2885_v54, %v6494_v29  ;;  %v2920_v20 = vsel %vm834_vm14, %v6496_v1, %v2917_v60  ;;  %v2922_v59 = vsel %vm834_vm14, %v2917_v60, %v6496_v1  ;;  %vm7420_vm12 = vmmov %vm7413_vm8 }
 0x709   : > { %v2872_v19 = vmul.f32 %v6396_v53, %v2858_v16  ;;  %v2873_v63 = vmul.f32 %v6396_v53, %v2859_v2  ;;  %v2904_v40 = vmul.f32 %v6418_v3, %v2890_v57  ;;  %v2905_v10 = vmul.f32 %v6418_v3, %v2891_v35 }
 0x70a   : > { %v2892_v0 = vmul.f32 %v2887_v12, %v4753_v62  ;;  %v2893_v29 = vmul.f32 %v2889_v11, %v4756_v41  ;;  %v2924_v55 = vmul.f32 %v2920_v20, %v7299_v6  ;;  %v2925_v34 = vmul.f32 %v2922_v59, %v7394_v45 }
 0x70b   : > { %v2876_v61 = vadd.f32 %v2872_v19, %v2842_v5  ;;  %v2877_v38 = vadd.f32 %v2873_v63, %v2843_v8  ;;  %v2908_v30 = vadd.f32 %v2904_v40, %v2874_v21  ;;  %v2909_v1 = vadd.f32 %v2905_v10, %v2875_v13  ;;  %v2919_v28 = vpop.permute.xlu1 %2918  ;;  %v2951_v49 = vpop.permute.xlu0 %2950 }
 0x70c   : > { %v2906_v53 = vmul.f32 %v6424_v22, %v2892_v0  ;;  %v2907_v24 = vmul.f32 %v6424_v22, %v2893_v29  ;;  %v2938_v3 = vmul.f32 %v6430_v7, %v2924_v55  ;;  %v2939_v62 = vmul.f32 %v6430_v7, %v2925_v34 }
 0x70d   : > { %v2921_v41 = vsel %vm834_vm14, %v6498_v46, %v2919_v28  ;;  %v2923_v15 = vsel %vm834_vm14, %v2919_v28, %v6498_v46  ;;  %v2954_v58 = vsel %vm882_vm0, %v6500_v50, %v2951_v49  ;;  %v2956_v22 = vsel %vm882_vm0, %v2951_v49, %v6500_v50  ;;  %vm7421_vm14 = vmmov %vm7413_vm8 }
 0x70e   : > { %v2910_v31 = vadd.f32 %v2906_v53, %v2876_v61  ;;  %v2911_v32 = vadd.f32 %v2907_v24, %v2877_v38  ;;  %v2942_v52 = vadd.f32 %v2938_v3, %v2908_v30  ;;  %v2943_v7 = vadd.f32 %v2939_v62, %v2909_v1  ;;  %v7396_v53 = vld [vmem:[#allocation41_spill] sm:$0xff] }
 0x70f   : > { %v2926_v9 = vmul.f32 %v2921_v41, %v7299_v6  ;;  %v2927_v23 = vmul.f32 %v2923_v15, %v7394_v45  ;;  %v2958_v39 = vmul.f32 %v2954_v58, %v7316_v25  ;;  %v2959_v46 = vmul.f32 %v2956_v22, %v7317_v27  ;;  %v2953_v18 = vpop.permute.xlu1 %2952  ;;  %v3065_v14 = vpop.permute.xlu0 %3064  ;;  %v7395_v45 = vld [vmem:[#allocation18_spill] sm:$0xff]  ;;  %v7398_v41 = vld [vmem:[#allocation45_spill] sm:$0xff] }
 0x710   : > { %v2955_v44 = vsel %vm882_vm0, %v6502_v48, %v2953_v18  ;;  %v2957_v50 = vsel %vm882_vm0, %v2953_v18, %v6502_v48  ;;  %v3043_v55 = vmul.f32 %v6238_v56, %v6345_v51  ;;  %v3044_v34 = vmul.f32 %v6238_v56, %v7395_v45  ;;  %v7397_v51 = vld [vmem:[#allocation42_spill] sm:$0xff]  ;;  %v7399_v58 = vld [vmem:[#allocation17_spill] sm:$0xff]  ;;  %v7403_v18 = vld [vmem:[#allocation16_spill] sm:$0xff] }
 0x711   : > { %v2940_v36 = vmul.f32 %v6436_v47, %v2926_v9  ;;  %v2941_v6 = vmul.f32 %v6436_v47, %v2927_v23  ;;  %v2972_v33 = vmul.f32 %v6438_v26, %v2958_v39  ;;  %v2973_v43 = vmul.f32 %v6438_v26, %v2959_v46  ;;  %v7401_v23 = vld [vmem:[#allocation3_spill] sm:$0xff]  ;;  %v7402_v39 = vld [vmem:[#allocation22_spill] sm:$0xff]  ;;  %vm7426_vm0 = vmmov %vm7336_vm9 }
 0x712   : > { %v2960_v4 = vmul.f32 %v2955_v44, %v7316_v25  ;;  %v2961_v42 = vmul.f32 %v2957_v50, %v7317_v27  ;;  %v3060_v22 = vadd.f32 %v7399_v58, %v3043_v55  ;;  %v3045_v46 = vmul.f32 %v7402_v39, %v7401_v23  ;;  %v7419_v23 = vld [vmem:[#allocation31_spill] sm:$0xff]  ;;  %vm7427_vm9 = vmmov %vm7426_vm0 }
 0x713   : > { %v2944_v5 = vadd.f32 %v2940_v36, %v2910_v31  ;;  %v2945_v8 = vadd.f32 %v2941_v6, %v2911_v32  ;;  %v6646_v21 = vadd.f32 %v2972_v33, %v2942_v52  ;;  %v6648_v13 = vadd.f32 %v2973_v43, %v2943_v7  ;;  %v3067_v16 = vpop.permute.xlu1 %3066  ;;  %v3099_v48 = vpop.permute.xlu0 %3098  ;;  %v7400_v32 = vld [vmem:[#allocation46_spill] sm:$0xff]  ;;  %v7404_v36 = vld [vmem:[#allocation24_spill] sm:$0xff]  ;;  %vm7433_vm11 = vmmov %vm7426_vm0 }
 0x714   : > { %v2974_v2 = vmul.f32 %v6444_v37, %v2960_v4  ;;  %v2975_v47 = vmul.f32 %v6444_v37, %v2961_v42  ;;  %v3061_v31 = vadd.f32 %v7399_v58, %v3044_v34  ;;  %v7405_v43 = vld [vmem:[#allocation26_spill] sm:$0xff] }
 0x716   : > { %v6652_v57 = vadd.f32 %v2974_v2, %v2944_v5  ;;  %v6654_v35 = vadd.f32 %v2975_v47, %v2945_v8  ;;  %v7406_v5 = vld [vmem:[#allocation25_spill] sm:$0xff] }
 0x717   : > { %v3101_v26 = vpop.permute.xlu1 %3100  ;;  %v3133_v25 = vpop.permute.xlu0 %3132 }
 0x71b   : > { %v3135_v54 = vpop.permute.xlu1 %3134  ;;  %v3167_v27 = vpop.permute.xlu0 %3166 }
 0x71f   : > { %v6656_v60 = vpop.permute.xlu1 %3168  ;;  %v6658_v12 = vpop.permute.xlu0 %3200 }
 0x723   : > { %v6660_v11 = vpop.permute.xlu1 %3202  ;;  %v6662_v20 = vpop.permute.xlu0 %3234 }
 0x727   : > { %v6664_v59 = vpop.permute.xlu1 %3236  ;;  %v6666_v19 = vpop.permute.xlu0 %3268 }
 0x72b   : > { %v6668_v37 = vpop.permute.xlu1 %3270  ;;  %v6670_v63 = vpop.permute.xlu0 %3302 }
 0x72f   : > { %v6672_v40 = vpop.permute.xlu1 %3304  ;;  %v3069_v10 = vpop.permute.xlu0 %3068 }
 0x730   : > { %v3072_v0 = vsel %vm1028_vm5, %v3065_v14, %v3069_v10  ;;  %v3074_v29 = vsel %vm1028_vm5, %v3069_v10, %v3065_v14  ;;  %v3046_v14 = vmul.f32 %v7402_v39, %v7403_v18  ;;  %v7409_v10 = vld [vmem:[#allocation47_spill] sm:$0xff] }
 0x731   : > { %v3076_v24 = vmul.f32 %v3074_v29, %v7396_v53  ;;  %v3077_v3 = vmul.f32 %v3072_v0, %v7397_v51  ;;  %v7410_v29 = vld [vmem:[#allocation48_spill] sm:$0xff] }
 0x733   : > { %v3071_v61 = vpop.permute.xlu1 %3070  ;;  %v3103_v38 = vpop.permute.xlu0 %3102  ;;  %v3090_v6 = vmul.f32 %v7404_v36, %v3076_v24  ;;  %v3091_v33 = vmul.f32 %v7404_v36, %v3077_v3 }
 0x734   : > { %v3073_v30 = vsel %vm1028_vm5, %v3067_v16, %v3071_v61  ;;  %v3075_v1 = vsel %vm1028_vm5, %v3071_v61, %v3067_v16  ;;  %v3106_v28 = vsel %vm1076_vm7, %v3099_v48, %v3103_v38  ;;  %v3108_v49 = vsel %vm1076_vm7, %v3103_v38, %v3099_v48  ;;  %vm7408_vm5 = vmmov %vm7407_vm4 }
 0x735   : > { %v3078_v56 = vmul.f32 %v3075_v1, %v7396_v53  ;;  %v3079_v62 = vmul.f32 %v3073_v30, %v7397_v51  ;;  %v3110_v15 = vmul.f32 %v3108_v49, %v7398_v41  ;;  %v3111_v52 = vmul.f32 %v3106_v28, %v7400_v32  ;;  %v7415_v49 = vld [vmem:[#allocation27_spill] sm:$0xff]  ;;  %v7416_v51 = vld [vmem:[#allocation6_spill] sm:$0xff] }
 0x736   : > { %v3094_v1 = vadd.f32 %v3090_v6, %v3060_v22  ;;  %v3095_v28 = vadd.f32 %v3091_v33, %v3061_v31  ;;  %v3062_v53 = vadd.f32 %v7415_v49, %v3045_v46  ;;  %v3063_v24 = vadd.f32 %v7415_v49, %v3046_v14  ;;  %v7422_v6 = vld [vmem:[#allocation43_spill] sm:$0xff] }
 0x737   : > { %v3105_v7 = vpop.permute.xlu1 %3104  ;;  %v3137_v9 = vpop.permute.xlu0 %3136  ;;  %v3092_v4 = vmul.f32 %v7405_v43, %v3078_v56  ;;  %v3093_v42 = vmul.f32 %v7405_v43, %v3079_v62  ;;  %v3124_v8 = vmul.f32 %v7406_v5, %v3110_v15  ;;  %v3125_v47 = vmul.f32 %v7406_v5, %v3111_v52  ;;  %v7418_v52 = vld [vmem:[#allocation52_spill] sm:$0xff] }
 0x738   : > { %v3107_v44 = vsel %vm1076_vm7, %v3101_v26, %v3105_v7  ;;  %v3109_v50 = vsel %vm1076_vm7, %v3105_v7, %v3101_v26  ;;  %v3140_v48 = vsel %vm7407_vm4, %v3133_v25, %v3137_v9  ;;  %v3142_v2 = vsel %vm7408_vm5, %v3137_v9, %v3133_v25  ;;  %vm7412_vm7 = vmmov %vm7407_vm4 }
 0x739   : > { %v3112_v16 = vmul.f32 %v3109_v50, %v7398_v41  ;;  %v3113_v26 = vmul.f32 %v3107_v44, %v7400_v32  ;;  %v3144_v0 = vmul.f32 %v3142_v2, %v7409_v10  ;;  %v3145_v55 = vmul.f32 %v3140_v48, %v7410_v29  ;;  %v7417_v41 = vld [vmem:[#allocation51_spill] sm:$0xff] }
 0x73a   : > { %v3096_v15 = vadd.f32 %v3092_v4, %v3062_v53  ;;  %v3097_v58 = vadd.f32 %v3093_v42, %v3063_v24  ;;  %v3128_v32 = vadd.f32 %v3124_v8, %v3094_v1  ;;  %v3129_v31 = vadd.f32 %v3125_v47, %v3095_v28  ;;  %v7423_v4 = vld [vmem:[#allocation44_spill] sm:$0xff]  ;;  %v7429_v28 = vld [vmem:[#allocation59_spill] sm:$0xff] }
 0x73b   : > { %v3139_v45 = vpop.permute.xlu1 %3138  ;;  %v3171_v34 = vpop.permute.xlu0 %3170  ;;  %v3126_v3 = vmul.f32 %v7416_v51, %v3112_v16  ;;  %v3127_v9 = vmul.f32 %v7416_v51, %v3113_v26  ;;  %v3158_v39 = vmul.f32 %v7419_v23, %v3144_v0  ;;  %v3159_v46 = vmul.f32 %v7419_v23, %v3145_v55  ;;  %v7424_v16 = vld [vmem:[#allocation53_spill] sm:$0xff]  ;;  %v7425_v26 = vld [vmem:[#allocation54_spill] sm:$0xff] }
 0x73c   : > { %v3141_v61 = vsel %vm7411_vm6, %v3135_v54, %v3139_v45  ;;  %v3143_v38 = vsel %vm7412_vm7, %v3139_v45, %v3135_v54  ;;  %v3174_v30 = vsel %vm7413_vm8, %v3167_v27, %v3171_v34  ;;  %v3176_v25 = vsel %vm7414_vm10, %v3171_v34, %v3167_v27 }
 0x73d   : > { %v3146_v56 = vmul.f32 %v3143_v38, %v7409_v10  ;;  %v3147_v62 = vmul.f32 %v3141_v61, %v7410_v29  ;;  %v3178_v54 = vmul.f32 %v3176_v25, %v7417_v41  ;;  %v3179_v7 = vmul.f32 %v3174_v30, %v7418_v52  ;;  %v7428_v38 = vld [vmem:[#allocation7_spill] sm:$0xff] }
 0x73e   : > { %v3130_v36 = vadd.f32 %v3126_v3, %v3096_v15  ;;  %v3131_v55 = vadd.f32 %v3127_v9, %v3097_v58  ;;  %v3162_v45 = vadd.f32 %v3158_v39, %v3128_v32  ;;  %v3163_v34 = vadd.f32 %v3159_v46, %v3129_v31  ;;  %v7431_v15 = vld [vmem:[#allocation60_spill] sm:$0xff]  ;;  %v7434_v31 = vld [vmem:[#allocation19_spill] sm:$0xff] }
 0x73f   : > { %v3173_v27 = vpop.permute.xlu1 %3172  ;;  %v3205_v22 = vpop.permute.xlu0 %3204  ;;  %v3160_v33 = vmul.f32 %v7422_v6, %v3146_v56  ;;  %v3161_v43 = vmul.f32 %v7422_v6, %v3147_v62  ;;  %v3192_v42 = vmul.f32 %v7423_v4, %v3178_v54  ;;  %v3193_v5 = vmul.f32 %v7423_v4, %v3179_v7  ;;  %v7435_v39 = vld [vmem:[#allocation8_spill] sm:$0xff] }
 0x740   : > { %v3175_v18 = vsel %vm7420_vm12, %v6656_v60, %v3173_v27  ;;  %v3177_v14 = vsel %vm7421_vm14, %v3173_v27, %v6656_v60  ;;  %v3208_v44 = vsel %vm1220_vm13, %v6658_v12, %v3205_v22  ;;  %v3210_v50 = vsel %vm1220_vm13, %v3205_v22, %v6658_v12 }
 0x741   : > { %v3180_v8 = vmul.f32 %v3177_v14, %v7417_v41  ;;  %v3181_v60 = vmul.f32 %v3175_v18, %v7418_v52  ;;  %v3212_v48 = vmul.f32 %v3208_v44, %v7424_v16  ;;  %v3213_v10 = vmul.f32 %v3210_v50, %v7425_v26  ;;  %v7430_v41 = vld [vmem:[#allocation57_spill] sm:$0xff]  ;;  %v7437_v50 = vld [vmem:[#allocation64_spill] sm:$0xff] }
 0x742   : > { %v3165_v53 = vadd.f32 %v3161_v43, %v3131_v55  ;;  %v3196_v24 = vadd.f32 %v3192_v42, %v3162_v45  ;;  %v3197_v51 = vadd.f32 %v3193_v5, %v3163_v34 }
 0x743   : > { %v3207_v2 = vpop.permute.xlu1 %3206  ;;  %v3239_v47 = vpop.permute.xlu0 %3238  ;;  %v3194_v30 = vmul.f32 %v7428_v38, %v3180_v8  ;;  %v3195_v62 = vmul.f32 %v7428_v38, %v3181_v60  ;;  %v3226_v54 = vmul.f32 %v7430_v41, %v3212_v48 }
 0x744   : > { %v3209_v12 = vsel %vm1220_vm13, %v6660_v11, %v3207_v2  ;;  %v3211_v0 = vsel %vm1220_vm13, %v3207_v2, %v6660_v11  ;;  %v3242_v29 = vsel %vm7426_vm0, %v6662_v20, %v3239_v47  ;;  %v3244_v61 = vsel %vm7427_vm9, %v3239_v47, %v6662_v20  ;;  %vm7432_vm13 = vmmov %vm7426_vm0 }
 0x745   : > { %v3214_v25 = vmul.f32 %v3209_v12, %v7424_v16  ;;  %v3215_v1 = vmul.f32 %v3211_v0, %v7425_v26  ;;  %v3246_v49 = vmul.f32 %v3242_v29, %v7429_v28  ;;  %v3164_v11 = vadd.f32 %v3160_v33, %v3130_v36  ;;  %v7438_v16 = vld [vmem:[#allocation56_spill] sm:$0xff]  ;;  %v7439_v26 = vld [vmem:[#allocation67_spill] sm:$0xff]  ;;  %v7440_v0 = vld [vmem:[#allocation69_spill] sm:$0xff] }
 0x746   : > { %v3227_v20 = vmul.f32 %v7430_v41, %v3213_v10  ;;  %v3247_v58 = vmul.f32 %v3244_v61, %v7431_v15  ;;  %v3199_v5 = vadd.f32 %v3195_v62, %v3165_v53  ;;  %v3230_v8 = vadd.f32 %v3226_v54, %v3196_v24 }
 0x747   : > { %v3241_v3 = vpop.permute.xlu1 %3240  ;;  %v3273_v56 = vpop.permute.xlu0 %3272  ;;  %v3198_v22 = vadd.f32 %v3194_v30, %v3164_v11  ;;  %v3228_v9 = vmul.f32 %v7434_v31, %v3214_v25  ;;  %v3229_v23 = vmul.f32 %v7434_v31, %v3215_v1  ;;  %v3260_v46 = vmul.f32 %v7435_v39, %v3246_v49  ;;  %v7442_v1 = vld [vmem:[#allocation34_spill] sm:$0xff] }
 0x748   : > { %v3243_v32 = vsel %vm7432_vm13, %v6664_v59, %v3241_v3  ;;  %v3245_v52 = vsel %vm7433_vm11, %v3241_v3, %v6664_v59  ;;  %v3276_v7 = vsel %vm1316_vm1, %v6666_v19, %v3273_v56  ;;  %v3278_v27 = vsel %vm1316_vm1, %v3273_v56, %v6666_v19  ;;  %v7436_v59 = vld [vmem:[#allocation63_spill] sm:$0xff]  ;;  %v7443_v56 = vld [vmem:[#allocation13_spill] sm:$0xff] }
 0x749   : > { %v3248_v18 = vmul.f32 %v3243_v32, %v7429_v28  ;;  %v3249_v14 = vmul.f32 %v3245_v52, %v7431_v15  ;;  %v3280_v44 = vmul.f32 %v3276_v7, %v7436_v59  ;;  %v3281_v36 = vmul.f32 %v3278_v27, %v7437_v50  ;;  %v7444_v27 = vld [vmem:[#allocation32_spill] sm:$0xff] }
 0x74a   : > { %v3261_v60 = vmul.f32 %v7435_v39, %v3247_v58  ;;  %v3231_v12 = vadd.f32 %v3227_v20, %v3197_v51  ;;  %v3232_v38 = vadd.f32 %v3228_v9, %v3198_v22  ;;  %v3233_v30 = vadd.f32 %v3229_v23, %v3199_v5  ;;  %v7445_v39 = vld [vmem:[#allocation70_spill] sm:$0xff] }
 0x74b   : > { %v3275_v6 = vpop.permute.xlu1 %3274  ;;  %v3307_v33 = vpop.permute.xlu0 %3306  ;;  %v3262_v48 = vmul.f32 %v7438_v16, %v3248_v18  ;;  %v3263_v2 = vmul.f32 %v7438_v16, %v3249_v14  ;;  %v3294_v29 = vmul.f32 %v7440_v0, %v3280_v44  ;;  %v3295_v55 = vmul.f32 %v7440_v0, %v3281_v36  ;;  %v7446_v18 = vld [vmem:[#allocation71_spill] sm:$0xff] }
 0x74c   : > { %v3277_v19 = vsel %vm1316_vm1, %v6668_v37, %v3275_v6  ;;  %v3279_v43 = vsel %vm1316_vm1, %v3275_v6, %v6668_v37  ;;  %v3310_v4 = vsel %vm1364_vm2, %v6670_v63, %v3307_v33  ;;  %v3312_v42 = vsel %vm1364_vm2, %v3307_v33, %v6670_v63  ;;  %v7441_v63 = vld [vmem:[#allocation68_spill] sm:$0xff]  ;;  %v7447_v33 = vld [vmem:[#allocation11_spill] sm:$0xff] }
 0x74d   : > { %v3282_v47 = vmul.f32 %v3277_v19, %v7436_v59  ;;  %v3283_v37 = vmul.f32 %v3279_v43, %v7437_v50  ;;  %v3314_v10 = vmul.f32 %v3310_v4, %v7439_v26  ;;  %v3315_v45 = vmul.f32 %v3312_v42, %v7441_v63 }
 0x74e   : > { %v3264_v25 = vadd.f32 %v3260_v46, %v3230_v8  ;;  %v3265_v49 = vadd.f32 %v3261_v60, %v3231_v12  ;;  %v3266_v51 = vadd.f32 %v3262_v48, %v3232_v38  ;;  %v3267_v3 = vadd.f32 %v3263_v2, %v3233_v30  ;;  %v7448_v48 = vld [vmem:[#allocation61_spill] sm:$0xff] }
 0x74f   : > { %v3309_v34 = vpop.permute.xlu1 %3308  ;;  %v2981_v61 = vpop.permute.xlu0 %2980  ;;  %v3296_v28 = vmul.f32 %v7442_v1, %v3282_v47  ;;  %v3297_v11 = vmul.f32 %v7442_v1, %v3283_v37  ;;  %v3328_v62 = vmul.f32 %v7443_v56, %v3314_v10  ;;  %v3329_v15 = vmul.f32 %v7443_v56, %v3315_v45  ;;  %v3857_v37 = vld [vmem:[%s6899_s7 + $0x50] sm:$0xff] }
 0x750   : > { %v3311_v53 = vsel %vm1364_vm2, %v6672_v40, %v3309_v34  ;;  %v3313_v24 = vsel %vm1364_vm2, %v3309_v34, %v6672_v40  ;;  %v3298_v54 = vadd.f32 %v3294_v29, %v3264_v25  ;;  %v3299_v20 = vadd.f32 %v3295_v55, %v3265_v49 }
 0x751   : > { %v3316_v41 = vmul.f32 %v3311_v53, %v7439_v26  ;;  %v3317_v58 = vmul.f32 %v3313_v24, %v7441_v63  ;;  %v3300_v7 = vadd.f32 %v3296_v28, %v3266_v51  ;;  %v3301_v9 = vadd.f32 %v3297_v11, %v3267_v3  ;;  %v3858_v63 = vld [vmem:[%s6899_s7 + $0x58] sm:$0xff] }
 0x752   : > { %v3332_v59 = vadd.f32 %v3328_v62, %v3298_v54  ;;  %v3333_v36 = vadd.f32 %v3329_v15, %v3299_v20  ;;  %v7449_v55 = vmov 0.0   ;;  %v400_v20 = vld [vmem:[%s6901_s9] sm:$0xff]  ;;  %v401_v15 = vld [vmem:[%s6901_s9 + $0x8] sm:$0xff] }
 0x753   : > { %v2983_v32 = vpop.permute.xlu1 %2982  ;;  %v2985_v52 = vpop.permute.xlu0 %2984  ;;  %v3330_v22 = vmul.f32 %v7444_v27, %v3316_v41  ;;  %v3331_v23 = vmul.f32 %v7444_v27, %v3317_v58 }
 0x754   : > { %v2988_v40 = vsel %vm930_vm15, %v2981_v61, %v2985_v52  ;;  %v2990_v31 = vsel %vm930_vm15, %v2985_v52, %v2981_v61 }
 0x755   : > { %v2992_v46 = vmul.f32 %v2988_v40, %v7445_v39  ;;  %v2993_v14 = vmul.f32 %v2990_v31, %v7446_v18  ;;  %v3334_v44 = vadd.f32 %v3330_v22, %v3300_v7  ;;  %v3335_v6 = vadd.f32 %v3331_v23, %v3301_v9  ;;  %v3956_v22 = vld [vmem:[%s4074_s28] sm:$0xff]  ;;  %v3957_v9 = vld [vmem:[%s4074_s28 + $0x8] sm:$0xff] }
 0x757   : > { %v2987_v50 = vpop.permute.xlu1 %2986  ;;  %v3006_v19 = vmul.f32 %v7447_v33, %v2992_v46  ;;  %v3903_v42 = vpack.c.bf16 %v3334_v44, %v3332_v59  ;;  %v3007_v5 = vmul.f32 %v7447_v33, %v2993_v14  ;;  %v3901_v16 = vpack.c.bf16 %v3335_v6, %v3333_v36  ;;  %v3958_v59 = vld [vmem:[%s4074_s28 + $0x10] sm:$0xf] }
 0x758   : > { %v2989_v43 = vsel %vm930_vm15, %v2983_v32, %v2987_v50  ;;  %v2991_v4 = vsel %vm930_vm15, %v2987_v50, %v2983_v32  ;;  %v3959_v50 = vld [vmem:[%s4074_s28 + $0x18] sm:$0xf] }
 0x759   : > { %v2994_v8 = vmul.f32 %v2989_v43, %v7445_v39  ;;  %v2995_v60 = vmul.f32 %v2991_v4, %v7446_v18  ;;  %3902 = vmatprep.subr.bf16.mxu1 %v3901_v16  ;;  %v3010_v17 = vadd.f32 %v3006_v19, %v6646_v21  ;;  %v3011_v10 = vadd.f32 %v3007_v5, %v6648_v13  ;;  %v3855_v21 = vld [vmem:[%s6899_s7 + $0x40] sm:$0xff]  ;;  %v3856_v13 = vld [vmem:[%s6899_s7 + $0x48] sm:$0xff] }
 0x75a   : > { %3904 = vmatpush1.bf16.msra.mxu1 %v3903_v42 }
 0x75b   : > { %v3008_v2 = vmul.f32 %v7448_v48, %v2994_v8  ;;  %v3009_v47 = vmul.f32 %v7448_v48, %v2995_v60 }
 0x75d   : > { %v3012_v26 = vadd.f32 %v3008_v2, %v6652_v57  ;;  %v3013_v12 = vadd.f32 %v3009_v47, %v6654_v35  ;;  %3859 = vmatmul.mubr.msk.f32.vlgmr.msra.gmra.mrb[10].mxu1 %vm435_vm3, %v3857_v37 }
 0x75e   : > { %3418 = vmatprep.mubr.f32.mxu1 %v7449_v55 }
 0x75f   : > { %v3905_v0 = vpack.c.bf16 %v3013_v12, %v3011_v10  ;;  %v3907_v29 = vpack.c.bf16 %v3012_v26, %v3010_v17 }
 0x761   : > { %3906 = vmatprep.subr.bf16.mxu1 %v3905_v0  ;;  %3860 = vmatmul.mubr.msk.f32.gmra.mrb[12].mxu1 %vm435_vm3, %v3858_v63 }
 0x762   : > { %3908 = vmatpush1.bf16.msra.mxu1 %v3907_v29  ;;  %3495 = vmatprep.mubr.f32.mxu1 %v7449_v55 }
 0x764   : > { %v3514_v57 = vpop.permute.xlu0 %3513 }
 0x765   : > { %3861 = vmatmul.mubr.msk.f32.vlgmr.msra.gmra.mrb[10].mxu1 %vm435_vm3, %v3855_v21 }
 0x766   : > { %3501 = vmatprep.mubr.f32.mxu1 %v7449_v55 }
 0x768   : > { %v3519_v38 = vpop.permute.xlu1 %3518  ;;  %v3536_v58 = vpop.permute.xlu0 %3535 }
 0x769   : > { %3862 = vmatmul.mubr.msk.f32.gmra.mrb[12].mxu1 %vm435_vm3, %v3856_v13 }
 0x76c   : > { %v3541_v31 = vpop.permute.xlu1 %3540 }
 0x838   : > { %v3497_v35 = vpop.f32.mrb[10].mxu1 }
 0x839   : > { %v3521_v45 = vadd.f32 %v3514_v57, %v3497_v35  ;;  %v3499_v34 = vpop.f32.mrb[11].mxu1 }
 0x83a   : > { %v3522_v61 = vadd.f32 %v3514_v57, %v3499_v34 }
 0x83b   : > { %v3525_v25 = vmul.f32 0.2, %v3521_v45 }
 0x83c   : > { %v3503_v30 = vpop.f32.mrb[12].mxu1  ;;  %v3526_v49 = vmul.f32 0.2, %v3522_v61 }
 0x83d   : > { %v3523_v1 = vadd.f32 %v3519_v38, %v3503_v30  ;;  %v3505_v28 = vpop.f32.mrb[13].mxu1  ;;  %v3529_v51 = vmax.f32 %v3521_v45, %v3525_v25 }
 0x83e   : > { %v3524_v11 = vadd.f32 %v3519_v38, %v3505_v28  ;;  %v3530_v56 = vmax.f32 %v3522_v61, %v3526_v49 }
 0x83f   : > { %v3527_v53 = vmul.f32 0.2, %v3523_v1 }
 0x840   : > { %v3528_v24 = vmul.f32 0.2, %v3524_v11 }
 0x841   : > { %v3531_v3 = vmax.f32 %v3523_v1, %v3527_v53 }
 0x842   : > { %v3532_v62 = vmax.f32 %v3524_v11, %v3528_v24 }
 0x843   : > { %v3911_v41 = vpack.c.bf16 %v3531_v3, %v3529_v51 }
 0x844   : > { %v3909_v54 = vpack.c.bf16 %v3532_v62, %v3530_v56 }
 0x846   : > { %3910 = vmatprep.subr.bf16.mxu0 %v3909_v54 }
 0x847   : > { %3912 = vmatpush1.bf16.msra.mxu0 %v3911_v41 }
 0x84a   : > { %3865 = vmatmul.mubr.msk.f32.vlgmr.msra.gmra.mrb[22].mxu0 %vm435_vm3, %v400_v20 }
 0x84b   : > { %3619 = vmatprep.mubr.f32.mxu0 %v7449_v55 }
 0x84e   : > { %3866 = vmatmul.mubr.msk.f32.gmra.mrb[24].mxu0 %vm435_vm3, %v401_v15 }
 0x91d   : > { %v3615_v32 = vpop.f32.mrb[22].mxu0 }
 0x91e   : > { %v3616_v52 = vadd.f32 %v3615_v32, %v3536_v58  ;;  %v3617_v7 = vpop.f32.mrb[23].mxu0 }
 0x91f   : > { %v3618_v27 = vadd.f32 %v3617_v7, %v3536_v58 }
 0x920   : > { %v3626_v40 = vadd.f32 %v3956_v22, %v3616_v52 }
 0x921   : > { %v3627_v23 = vadd.f32 %v3957_v9, %v3618_v27  ;;  %v3621_v39 = vpop.f32.mrb[24].mxu0 }
 0x922   : > { %3630 = vst [vmem:[%s386_s21] sm:$0xff] %v3626_v40  ;;  %v3622_v46 = vadd.f32 %v3621_v39, %v3541_v31  ;;  %v3623_v18 = vpop.f32.mrb[25].mxu0 }
 0x923   : > { %3631 = vst [vmem:[%s386_s21 + $0x8] sm:$0xff] %v3627_v23  ;;  %v3624_v14 = vadd.f32 %v3623_v18, %v3541_v31 }
 0x924   : > { %v3628_v44 = vadd.f32 %v3958_v59, %v3622_v46 }
 0x925   : > { %v3629_v36 = vadd.f32 %v3959_v50, %v3624_v14 }
 0x926   : > { %3632 = vst [vmem:[%s386_s21 + $0x10] sm:$0xf] %v3628_v44 }
 0x927   : > { %3633 = vst [vmem:[%s386_s21 + $0x18] sm:$0xf] %v3629_v36 }
 0x928 PF: > { %s21_s17 = sadd.s32 1, %s3966_s17  }
 0x929   : > { %p18_p4 = scmp.ge.s32.totalorder %s21_s17, 4  }
 0x92b   :  { %20 = sbr.rel (!%p18_p4) target bundleno = 1 (0x1), region = 129 }

</bundles_post_ra>
